<compile_context>
chip_gen: v5e
topology: v5e:2x2
jax: 0.10.0
libtpu: 0.0.40
codegen_flags: <defaults>
</compile_context>

<pallas_src>
import functools

import numpy as np
import jax
import jax.numpy as jnp
from jax.experimental import pallas as pl
from jax.experimental.pallas import tpu as pltpu


def _round_up(v, m):
    return ((v + m - 1) // m) * m


# ----------------------------- Pallas kernels -----------------------------

def _mm_bias_act_kernel(x_ref, w_ref, b_ref, o_ref, *, relu):
    # bf16 operands on the MXU, f32 accumulate; epilogue stays in f32.
    acc = jnp.dot(x_ref[...], w_ref[...], preferred_element_type=jnp.float32)
    y = acc + b_ref[...]
    if relu:
        y = jnp.maximum(y, 0.0)
    o_ref[...] = y


def mm_bias_act(x, w, bias, relu=False):
    """y = act(x @ w + bias);  x:(M,K), w:(K,N), bias:(N,).

    - operands cast to bf16 (f32 accumulation in the kernel)
    - N zero-padded to a multiple of 128 -> lane-dense stores
    - M tiled (<=512 rows per block) on a "parallel" grid axis
    """
    x = jnp.asarray(x)
    w = jnp.asarray(w)
    bias = jnp.asarray(bias)
    M, K = x.shape
    K2, Nc = w.shape
    assert K == K2 and bias.shape == (Nc,)

    Ncp = _round_up(Nc, 128)
    nblk = max(1, -(-M // 512))
    TM = _round_up(-(-M // nblk), 8)
    Mp = TM * nblk

    xp = x.astype(jnp.bfloat16)
    if Mp != M:
        xp = jnp.pad(xp, ((0, Mp - M), (0, 0)))
    wp = w.astype(jnp.bfloat16)
    bp = bias.astype(jnp.float32).reshape(1, Nc)
    if Ncp != Nc:
        wp = jnp.pad(wp, ((0, 0), (0, Ncp - Nc)))
        bp = jnp.pad(bp, ((0, 0), (0, Ncp - Nc)))

    cost = pl.CostEstimate(
        flops=2 * Mp * K * Ncp,
        transcendentals=0,
        bytes_accessed=Mp * K * 2 + K * Ncp * 2 + Ncp * 4 + Mp * Ncp * 4)

    out = pl.pallas_call(
        functools.partial(_mm_bias_act_kernel, relu=relu),
        out_shape=jax.ShapeDtypeStruct((Mp, Ncp), jnp.float32),
        grid=(nblk,),
        in_specs=[
            pl.BlockSpec((TM, K), lambda i: (i, 0)),
            pl.BlockSpec((K, Ncp), lambda i: (0, 0)),
            pl.BlockSpec((1, Ncp), lambda i: (0, 0)),
        ],
        out_specs=pl.BlockSpec((TM, Ncp), lambda i: (i, 0)),
        compiler_params=pltpu.CompilerParams(
            dimension_semantics=("parallel",)),
        cost_estimate=cost,
    )(xp, wp, bp)
    return out[:M, :Nc]


def _max9_kernel(*refs):
    o_ref = refs[-1]
    m = refs[0][...]
    for r in refs[1:-1]:
        m = jnp.maximum(m, r[...])
    o_ref[...] = m


def maxpool_3x3_s2_p1(x):
    """MaxPool2d(3, stride=2, padding=1): VPU max over 9 shifted views,
    channels kept in the lane dimension."""
    N, H, W, C = x.shape
    Ho = (H + 2 - 3) // 2 + 1
    Wo = (W + 2 - 3) // 2 + 1
    xp = jnp.pad(x, ((0, 0), (1, 1), (1, 1), (0, 0)),
                 constant_values=-jnp.inf)
    views = []
    for i in range(3):
        for j in range(3):
            v = xp[:, i:i + 2 * (Ho - 1) + 1:2, j:j + 2 * (Wo - 1) + 1:2, :]
            views.append(v.reshape(N * Ho, Wo * C))
    R, L = N * Ho, Wo * C
    Rp = _round_up(R, 8)
    if Rp != R:
        views = [jnp.pad(v, ((0, Rp - R), (0, 0)), constant_values=-jnp.inf)
                 for v in views]
    out = pl.pallas_call(
        _max9_kernel,
        out_shape=jax.ShapeDtypeStruct((Rp, L), jnp.float32),
        grid=(1,),
        in_specs=[pl.BlockSpec((Rp, L), lambda i: (0, 0))] * 9,
        out_specs=pl.BlockSpec((Rp, L), lambda i: (0, 0)),
    )(*views)
    return out[:R].reshape(N, Ho, Wo, C)


# ----------------------------- glue (JAX/numpy) -----------------------------

def _im2col(x, kh, kw, stride, padding, dilation):
    N, H, W, C = x.shape
    Ho = (H + 2 * padding - dilation * (kh - 1) - 1) // stride + 1
    Wo = (W + 2 * padding - dilation * (kw - 1) - 1) // stride + 1
    xp = jnp.pad(x, ((0, 0), (padding, padding), (padding, padding), (0, 0)))
    cols = []
    for i in range(kh):
        for j in range(kw):
            y0 = i * dilation
            x0 = j * dilation
            patch = xp[:, y0:y0 + stride * (Ho - 1) + 1:stride,
                          x0:x0 + stride * (Wo - 1) + 1:stride, :]
            cols.append(patch)
    patches = jnp.concatenate(cols, axis=-1)          # (N, Ho, Wo, kh*kw*C)
    return patches.reshape(N * Ho * Wo, kh * kw * C), Ho, Wo


def conv_bias_act(x, w_hwio, bias, stride=1, padding=0, dilation=1, relu=True):
    """Conv2d (BN already folded into w/bias) + optional ReLU."""
    N = x.shape[0]
    kh, kw, cin, cout = w_hwio.shape
    patches, Ho, Wo = _im2col(x, kh, kw, stride, padding, dilation)
    y = mm_bias_act(patches, w_hwio.reshape(kh * kw * cin, cout), bias,
                    relu=relu)
    return y.reshape(N, Ho, Wo, cout)


def fold_bn_into_conv(w_hwio, gamma, beta, mean, var, eps=1e-5):
    """Fold BatchNorm (running stats) into the conv weight / bias (f32)."""
    scale = gamma / jnp.sqrt(var + eps)
    return w_hwio * scale, beta - mean * scale


def adaptive_avg_pool_matrix(src, dst):
    """Row-stochastic matrix reproducing nn.AdaptiveAvgPool2d (1D factor)."""
    m = np.zeros((dst, src), np.float32)
    for i in range(dst):
        s = (i * src) // dst
        e = -((-(i + 1) * src) // dst)       # ceil((i+1)*src/dst)
        m[i, s:e] = 1.0 / (e - s)
    return m


def bilinear_upsample_matrix(src, dst):
    """1D bilinear interpolation matrix with align_corners=True."""
    m = np.zeros((dst, src), np.float32)
    if src == 1:
        m[:, 0] = 1.0
        return m
    for i in range(dst):
        pos = 0.0 if dst == 1 else i * (src - 1) / (dst - 1)
        lo = int(np.floor(pos))
        hi = min(lo + 1, src - 1)
        frac = pos - lo
        m[i, lo] += 1.0 - frac
        m[i, hi] += frac
    return m


def upsample_bilinear_separable(x, oh, ow):
    """Bilinear (align_corners=True) resize via two separable matmuls."""
    N, h, w, C = x.shape
    Ah = bilinear_upsample_matrix(h, oh)              # (oh, h)
    Aw = bilinear_upsample_matrix(w, ow)              # (ow, w)
    X1 = jnp.transpose(x, (1, 0, 2, 3)).reshape(h, N * w * C)
    Y1 = mm_bias_act(Ah, X1, jnp.zeros((N * w * C,), jnp.float32))
    Y1 = Y1.reshape(oh, N, w, C)
    X2 = jnp.transpose(Y1, (2, 1, 0, 3)).reshape(w, N * oh * C)
    Y2 = mm_bias_act(Aw, X2, jnp.zeros((N * oh * C,), jnp.float32))
    Y2 = Y2.reshape(ow, N, oh, C)
    return jnp.transpose(Y2, (1, 2, 0, 3))            # (N, oh, ow, C)


# ----------------------------- parameters -----------------------------

NUM_CLASSES = 21
C_INITIAL, C_L1, C_L2, C_L3, C_L4 = 16, 16, 32, 48, 64   # scaled-down resnet
M_OUT_SZ = C_L4
PSP_OC = M_OUT_SZ // 4
BIN_SIZES = (1, 2, 3, 6)


def init_params(key):
    ks = list(jax.random.split(key, 64))
    idx = [0]

    def nk():
        k = ks[idx[0]]
        idx[0] += 1
        return k

    def conv_w(kh, kw, cin, cout):
        fan_in = kh * kw * cin
        return jax.random.normal(nk(), (kh, kw, cin, cout),
                                 jnp.float32) / np.sqrt(fan_in)

    def bn_p(c):
        return dict(
            gamma=1.0 + 0.1 * jax.random.normal(nk(), (c,), jnp.float32),
            beta=0.1 * jax.random.normal(nk(), (c,), jnp.float32),
            mean=0.1 * jax.random.normal(nk(), (c,), jnp.float32),
            var=1.0 + 0.1 * jnp.abs(jax.random.normal(nk(), (c,), jnp.float32)),
        )

    p = {}
    p['initial'] = dict(conv=conv_w(7, 7, 3, C_INITIAL), bn=bn_p(C_INITIAL))
    p['layer1'] = dict(conv=conv_w(3, 3, C_INITIAL, C_L1), bn=bn_p(C_L1))
    p['layer2'] = dict(conv=conv_w(3, 3, C_L1, C_L2), bn=bn_p(C_L2))
    p['layer3'] = dict(conv=conv_w(3, 3, C_L2, C_L3), bn=bn_p(C_L3))
    p['layer4'] = dict(conv=conv_w(3, 3, C_L3, C_L4), bn=bn_p(C_L4))
    p['psp_stages'] = [dict(conv=conv_w(1, 1, M_OUT_SZ, PSP_OC), bn=bn_p(PSP_OC))
                       for _ in BIN_SIZES]
    p['psp_bottleneck'] = dict(
        conv=conv_w(3, 3, M_OUT_SZ + PSP_OC * len(BIN_SIZES), PSP_OC),
        bn=bn_p(PSP_OC))
    p['classifier'] = dict(
        conv=conv_w(1, 1, PSP_OC, NUM_CLASSES),
        bias=0.1 * jax.random.normal(nk(), (NUM_CLASSES,), jnp.float32))
    return p


# ----------------------------- forward -----------------------------

def pspnet2_forward(params, x_nchw):
    x = jnp.transpose(x_nchw, (0, 2, 3, 1)).astype(jnp.float32)   # -> NHWC

    # initial: conv7x7/s2 + BN + ReLU + maxpool3x3/s2
    p = params['initial']
    wgt, b = fold_bn_into_conv(p['conv'], **p['bn'])
    x = conv_bias_act(x, wgt, b, stride=2, padding=3, relu=True)
    x = maxpool_3x3_s2_p1(x)

    # layer1..layer4 (stand-in stages, dilated-ResNet strides -> output stride 8)
    for name, stride, pad, dil in (('layer1', 1, 1, 1), ('layer2', 2, 1, 1),
                                   ('layer3', 1, 2, 2), ('layer4', 1, 4, 4)):
        p = params[name]
        wgt, b = fold_bn_into_conv(p['conv'], **p['bn'])
        x = conv_bias_act(x, wgt, b, stride=stride, padding=pad, dilation=dil,
                          relu=True)

    # ------------------------- _PSPModule (3 matmul calls total) ------------
    N, h, w_, C = x.shape
    HW = h * w_
    nst = len(BIN_SIZES)

    # (a) all adaptive average pools stacked into one matmul
    P_cat = np.concatenate(
        [np.kron(adaptive_avg_pool_matrix(h, bsz),
                 adaptive_avg_pool_matrix(w_, bsz)) for bsz in BIN_SIZES],
        axis=0)                                               # (R, h*w)
    R = P_cat.shape[0]
    X_sp = jnp.transpose(x, (1, 2, 0, 3)).reshape(HW, N * C)
    pooled = mm_bias_act(P_cat, X_sp, jnp.zeros((N * C,), jnp.float32))

    # (b) the four 1x1 conv+BN+ReLU stages batched (weights side-by-side)
    folded = [fold_bn_into_conv(st['conv'], **st['bn'])
              for st in params['psp_stages']]
    Wc = jnp.concatenate([fw.reshape(C, PSP_OC) for fw, _ in folded], axis=1)
    Bc = jnp.concatenate([fb for _, fb in folded], axis=0)
    conv_out = mm_bias_act(pooled.reshape(R * N, C), Wc, Bc, relu=True)
    conv_out = conv_out.reshape(R, N, nst * PSP_OC)

    # (c) the four bilinear (align_corners=True) upsamples in one matmul via a
    #     block-structured right operand.
    offs = np.cumsum([0] + [bsz * bsz for bsz in BIN_SIZES])
    pieces = []
    for s, bsz in enumerate(BIN_SIZES):
        blk = conv_out[offs[s]:offs[s + 1], :, s * PSP_OC:(s + 1) * PSP_OC]
        blk = blk.reshape(bsz * bsz, N * PSP_OC)
        blk = jnp.pad(blk, ((0, 0), (s * N * PSP_OC,
                                     (nst - 1 - s) * N * PSP_OC)))
        pieces.append(blk)
    X_block = jnp.concatenate(pieces, axis=0)                 # (R, nst*N*PSP_OC)
    B_cat = np.concatenate(
        [np.kron(bilinear_upsample_matrix(bsz, h),
                 bilinear_upsample_matrix(bsz, w_)) for bsz in BIN_SIZES],
        axis=1)                                               # (h*w, R)
    up = mm_bias_act(B_cat, X_block,
                     jnp.zeros((nst * N * PSP_OC,), jnp.float32))
    up = up.reshape(h, w_, nst, N, PSP_OC)
    up = jnp.transpose(up, (3, 0, 1, 2, 4)).reshape(N, h, w_, nst * PSP_OC)

    x = jnp.concatenate([x, up], axis=-1)       # [features, stage1..stage4]

    # bottleneck: 3x3 conv + BN + ReLU (+ Dropout2d, identity in eval mode)
    p = params['psp_bottleneck']
    wgt, b = fold_bn_into_conv(p['conv'], **p['bn'])
    x = conv_bias_act(x, wgt, b, stride=1, padding=1, relu=True)

    # classifier: 1x1 conv with bias (no BN, no ReLU)
    p = params['classifier']
    x = conv_bias_act(x, p['conv'], p['bias'], relu=False)

    # UpsamplingBilinear2d(scale_factor=8), align_corners=True -> separable
    x = upsample_bilinear_separable(x, h * 8, w_ * 8)

    return jnp.transpose(x, (0, 3, 1, 2))                     # -> NCHW


# ----------------------------- main -----------------------------

if __name__ == "__main__":
    key = jax.random.PRNGKey(0)
    params = init_params(key)
    x = jax.random.normal(jax.random.fold_in(key, 123), (2, 3, 48, 48),
                          jnp.float32)

    fwd = jax.jit(functools.partial(pspnet2_forward, params))
    out = jax.block_until_ready(fwd(x))

    assert out.shape == (2, NUM_CLASSES, 48, 48), out.shape
    assert bool(jnp.all(jnp.isfinite(out)))
    print("KERNEL_OK")
</pallas_src>

<mosaic_0001>
module attributes {stable_mosaic.version = 11 : i64} {
  func.func @_mm_bias_act_kernel(%arg0: i32, %arg1: memref<384x147xbf16, #tpu.memory_space<vmem>>, %arg2: memref<147x128xbf16, #tpu.memory_space<vmem>>, %arg3: memref<1x128xf32, #tpu.memory_space<vmem>>, %arg4: memref<384x128xf32, #tpu.memory_space<vmem>>) attributes {dimension_semantics = [#tpu.dimension_semantics<parallel>], iteration_bounds = array<i64: 3>, scalar_prefetch = 0 : i64, scratch_operands = 0 : i64, tpu.core_type = #tpu.core_type<tc>, window_params = [{transform_indices = @transform_0, window_bounds = array<i64: 384, 147>}, {pipeline_mode = #tpu.pipeline_mode<synchronous>, transform_indices = @transform_1, window_bounds = array<i64: 147, 128>}, {pipeline_mode = #tpu.pipeline_mode<synchronous>, transform_indices = @transform_2, window_bounds = array<i64: 1, 128>}, {transform_indices = @transform_3, window_bounds = array<i64: 384, 128>}]} {
    %c0 = arith.constant 0 : index
    %c0_0 = arith.constant 0 : index
    %0 = vector.load %arg1[%c0, %c0_0] : memref<384x147xbf16, #tpu.memory_space<vmem>>, vector<384x147xbf16>
    %c0_1 = arith.constant 0 : index
    %c0_2 = arith.constant 0 : index
    %1 = vector.load %arg2[%c0_1, %c0_2] : memref<147x128xbf16, #tpu.memory_space<vmem>>, vector<147x128xbf16>
    %cst = arith.constant dense<0.000000e+00> : vector<384x128xf32>
    %2 = tpu.matmul %0, %1, %cst {dimension_numbers = #tpu.dot_dimension_numbers<[1], [0], [0], [1], [0, 0, 1, 1], [], []>} : vector<384x147xbf16>, vector<147x128xbf16>, vector<384x128xf32> -> vector<384x128xf32>
    %c0_3 = arith.constant 0 : index
    %c0_4 = arith.constant 0 : index
    %3 = vector.load %arg3[%c0_3, %c0_4] : memref<1x128xf32, #tpu.memory_space<vmem>>, vector<1x128xf32>
    %4 = vector.broadcast %3 : vector<1x128xf32> to vector<384x128xf32>
    %5 = arith.addf %2, %4 : vector<384x128xf32>
    %cst_5 = arith.constant 0.000000e+00 : f32
    %6 = vector.broadcast %cst_5 : f32 to vector<384x128xf32>
    %7 = arith.maximumf %5, %6 : vector<384x128xf32>
    %c0_6 = arith.constant 0 : index
    %c0_7 = arith.constant 0 : index
    %8 = vector.load %arg4[%c0_6, %c0_7] : memref<384x128xf32, #tpu.memory_space<vmem>>, vector<384x128xf32>
    tpu.vector_store %arg4[%c0_6, %c0_7], %7 {strides = array<i32>} : memref<384x128xf32, #tpu.memory_space<vmem>>, vector<384x128xf32>,
    return
  }
  func.func @transform_0(%arg0: i32) -> (i32, i32) {
    %c0_i32 = arith.constant 0 : i32
    %c0_i32_0 = arith.constant 0 : i32
    return %arg0, %c0_i32 : i32, i32
  }
  func.func @transform_1(%arg0: i32) -> (i32, i32) {
    %c0_i32 = arith.constant 0 : i32
    %c0_i32_0 = arith.constant 0 : i32
    %c0_i32_1 = arith.constant 0 : i32
    return %c0_i32, %c0_i32_0 : i32, i32
  }
  func.func @transform_2(%arg0: i32) -> (i32, i32) {
    %c0_i32 = arith.constant 0 : i32
    %c0_i32_0 = arith.constant 0 : i32
    %c0_i32_1 = arith.constant 0 : i32
    return %c0_i32, %c0_i32_0 : i32, i32
  }
  func.func @transform_3(%arg0: i32) -> (i32, i32) {
    %c0_i32 = arith.constant 0 : i32
    %c0_i32_0 = arith.constant 0 : i32
    return %arg0, %c0_i32 : i32, i32
  }
}

module attributes {stable_mosaic.version = 11 : i64} {
  func.func @_max9_kernel(%arg0: i32, %arg1: memref<24x192xf32, #tpu.memory_space<vmem>>, %arg2: memref<24x192xf32, #tpu.memory_space<vmem>>, %arg3: memref<24x192xf32, #tpu.memory_space<vmem>>, %arg4: memref<24x192xf32, #tpu.memory_space<vmem>>, %arg5: memref<24x192xf32, #tpu.memory_space<vmem>>, %arg6: memref<24x192xf32, #tpu.memory_space<vmem>>, %arg7: memref<24x192xf32, #tpu.memory_space<vmem>>, %arg8: memref<24x192xf32, #tpu.memory_space<vmem>>, %arg9: memref<24x192xf32, #tpu.memory_space<vmem>>, %arg10: memref<24x192xf32, #tpu.memory_space<vmem>>) attributes {dimension_semantics = [#tpu.dimension_semantics<arbitrary>], iteration_bounds = array<i64: 1>, scalar_prefetch = 0 : i64, scratch_operands = 0 : i64, tpu.core_type = #tpu.core_type<tc>, window_params = [{pipeline_mode = #tpu.pipeline_mode<synchronous>, transform_indices = @transform_0, window_bounds = array<i64: 24, 192>}, {pipeline_mode = #tpu.pipeline_mode<synchronous>, transform_indices = @transform_1, window_bounds = array<i64: 24, 192>}, {pipeline_mode = #tpu.pipeline_mode<synchronous>, transform_indices = @transform_2, window_bounds = array<i64: 24, 192>}, {pipeline_mode = #tpu.pipeline_mode<synchronous>, transform_indices = @transform_3, window_bounds = array<i64: 24, 192>}, {pipeline_mode = #tpu.pipeline_mode<synchronous>, transform_indices = @transform_4, window_bounds = array<i64: 24, 192>}, {pipeline_mode = #tpu.pipeline_mode<synchronous>, transform_indices = @transform_5, window_bounds = array<i64: 24, 192>}, {pipeline_mode = #tpu.pipeline_mode<synchronous>, transform_indices = @transform_6, window_bounds = array<i64: 24, 192>}, {pipeline_mode = #tpu.pipeline_mode<synchronous>, transform_indices = @transform_7, window_bounds = array<i64: 24, 192>}, {pipeline_mode = #tpu.pipeline_mode<synchronous>, transform_indices = @transform_8, window_bounds = array<i64: 24, 192>}, {pipeline_mode = #tpu.pipeline_mode<synchronous>, transform_indices = @transform_9, window_bounds = array<i64: 24, 192>}]} {
    %c0 = arith.constant 0 : index
    %c0_0 = arith.constant 0 : index
    %0 = vector.load %arg1[%c0, %c0_0] : memref<24x192xf32, #tpu.memory_space<vmem>>, vector<24x192xf32>
    %c0_1 = arith.constant 0 : index
    %c0_2 = arith.constant 0 : index
    %1 = vector.load %arg2[%c0_1, %c0_2] : memref<24x192xf32, #tpu.memory_space<vmem>>, vector<24x192xf32>
    %2 = arith.maximumf %0, %1 : vector<24x192xf32>
    %c0_3 = arith.constant 0 : index
    %c0_4 = arith.constant 0 : index
    %3 = vector.load %arg3[%c0_3, %c0_4] : memref<24x192xf32, #tpu.memory_space<vmem>>, vector<24x192xf32>
    %4 = arith.maximumf %2, %3 : vector<24x192xf32>
    %c0_5 = arith.constant 0 : index
    %c0_6 = arith.constant 0 : index
    %5 = vector.load %arg4[%c0_5, %c0_6] : memref<24x192xf32, #tpu.memory_space<vmem>>, vector<24x192xf32>
    %6 = arith.maximumf %4, %5 : vector<24x192xf32>
    %c0_7 = arith.constant 0 : index
    %c0_8 = arith.constant 0 : index
    %7 = vector.load %arg5[%c0_7, %c0_8] : memref<24x192xf32, #tpu.memory_space<vmem>>, vector<24x192xf32>
    %8 = arith.maximumf %6, %7 : vector<24x192xf32>
    %c0_9 = arith.constant 0 : index
    %c0_10 = arith.constant 0 : index
    %9 = vector.load %arg6[%c0_9, %c0_10] : memref<24x192xf32, #tpu.memory_space<vmem>>, vector<24x192xf32>
    %10 = arith.maximumf %8, %9 : vector<24x192xf32>
    %c0_11 = arith.constant 0 : index
    %c0_12 = arith.constant 0 : index
    %11 = vector.load %arg7[%c0_11, %c0_12] : memref<24x192xf32, #tpu.memory_space<vmem>>, vector<24x192xf32>
    %12 = arith.maximumf %10, %11 : vector<24x192xf32>
    %c0_13 = arith.constant 0 : index
    %c0_14 = arith.constant 0 : index
    %13 = vector.load %arg8[%c0_13, %c0_14] : memref<24x192xf32, #tpu.memory_space<vmem>>, vector<24x192xf32>
    %14 = arith.maximumf %12, %13 : vector<24x192xf32>
    %c0_15 = arith.constant 0 : index
    %c0_16 = arith.constant 0 : index
    %15 = vector.load %arg9[%c0_15, %c0_16] : memref<24x192xf32, #tpu.memory_space<vmem>>, vector<24x192xf32>
    %16 = arith.maximumf %14, %15 : vector<24x192xf32>
    %c0_17 = arith.constant 0 : index
    %c0_18 = arith.constant 0 : index
    %17 = vector.load %arg10[%c0_17, %c0_18] : memref<24x192xf32, #tpu.memory_space<vmem>>, vector<24x192xf32>
    tpu.vector_store %arg10[%c0_17, %c0_18], %16 {strides = array<i32>} : memref<24x192xf32, #tpu.memory_space<vmem>>, vector<24x192xf32>,
    return
  }
  func.func @transform_0(%arg0: i32) -> (i32, i32) {
    %c0_i32 = arith.constant 0 : i32
    %c0_i32_0 = arith.constant 0 : i32
    %c0_i32_1 = arith.constant 0 : i32
    return %c0_i32, %c0_i32_0 : i32, i32
  }
  func.func @transform_1(%arg0: i32) -> (i32, i32) {
    %c0_i32 = arith.constant 0 : i32
    %c0_i32_0 = arith.constant 0 : i32
    %c0_i32_1 = arith.constant 0 : i32
    return %c0_i32, %c0_i32_0 : i32, i32
  }
  func.func @transform_2(%arg0: i32) -> (i32, i32) {
    %c0_i32 = arith.constant 0 : i32
    %c0_i32_0 = arith.constant 0 : i32
    %c0_i32_1 = arith.constant 0 : i32
    return %c0_i32, %c0_i32_0 : i32, i32
  }
  func.func @transform_3(%arg0: i32) -> (i32, i32) {
    %c0_i32 = arith.constant 0 : i32
    %c0_i32_0 = arith.constant 0 : i32
    %c0_i32_1 = arith.constant 0 : i32
    return %c0_i32, %c0_i32_0 : i32, i32
  }
  func.func @transform_4(%arg0: i32) -> (i32, i32) {
    %c0_i32 = arith.constant 0 : i32
    %c0_i32_0 = arith.constant 0 : i32
    %c0_i32_1 = arith.constant 0 : i32
    return %c0_i32, %c0_i32_0 : i32, i32
  }
  func.func @transform_5(%arg0: i32) -> (i32, i32) {
    %c0_i32 = arith.constant 0 : i32
    %c0_i32_0 = arith.constant 0 : i32
    %c0_i32_1 = arith.constant 0 : i32
    return %c0_i32, %c0_i32_0 : i32, i32
  }
  func.func @transform_6(%arg0: i32) -> (i32, i32) {
    %c0_i32 = arith.constant 0 : i32
    %c0_i32_0 = arith.constant 0 : i32
    %c0_i32_1 = arith.constant 0 : i32
    return %c0_i32, %c0_i32_0 : i32, i32
  }
  func.func @transform_7(%arg0: i32) -> (i32, i32) {
    %c0_i32 = arith.constant 0 : i32
    %c0_i32_0 = arith.constant 0 : i32
    %c0_i32_1 = arith.constant 0 : i32
    return %c0_i32, %c0_i32_0 : i32, i32
  }
  func.func @transform_8(%arg0: i32) -> (i32, i32) {
    %c0_i32 = arith.constant 0 : i32
    %c0_i32_0 = arith.constant 0 : i32
    %c0_i32_1 = arith.constant 0 : i32
    return %c0_i32, %c0_i32_0 : i32, i32
  }
  func.func @transform_9(%arg0: i32) -> (i32, i32) {
    %c0_i32 = arith.constant 0 : i32
    %c0_i32_0 = arith.constant 0 : i32
    %c0_i32_1 = arith.constant 0 : i32
    return %c0_i32, %c0_i32_0 : i32, i32
  }
}

module attributes {stable_mosaic.version = 11 : i64} {
  func.func @_mm_bias_act_kernel(%arg0: i32, %arg1: memref<288x144xbf16, #tpu.memory_space<vmem>>, %arg2: memref<144x128xbf16, #tpu.memory_space<vmem>>, %arg3: memref<1x128xf32, #tpu.memory_space<vmem>>, %arg4: memref<288x128xf32, #tpu.memory_space<vmem>>) attributes {dimension_semantics = [#tpu.dimension_semantics<parallel>], iteration_bounds = array<i64: 1>, scalar_prefetch = 0 : i64, scratch_operands = 0 : i64, tpu.core_type = #tpu.core_type<tc>, window_params = [{transform_indices = @transform_0, window_bounds = array<i64: 288, 144>}, {pipeline_mode = #tpu.pipeline_mode<synchronous>, transform_indices = @transform_1, window_bounds = array<i64: 144, 128>}, {pipeline_mode = #tpu.pipeline_mode<synchronous>, transform_indices = @transform_2, window_bounds = array<i64: 1, 128>}, {transform_indices = @transform_3, window_bounds = array<i64: 288, 128>}]} {
    %c0 = arith.constant 0 : index
    %c0_0 = arith.constant 0 : index
    %0 = vector.load %arg1[%c0, %c0_0] : memref<288x144xbf16, #tpu.memory_space<vmem>>, vector<288x144xbf16>
    %c0_1 = arith.constant 0 : index
    %c0_2 = arith.constant 0 : index
    %1 = vector.load %arg2[%c0_1, %c0_2] : memref<144x128xbf16, #tpu.memory_space<vmem>>, vector<144x128xbf16>
    %cst = arith.constant dense<0.000000e+00> : vector<288x128xf32>
    %2 = tpu.matmul %0, %1, %cst {dimension_numbers = #tpu.dot_dimension_numbers<[1], [0], [0], [1], [0, 0, 1, 1], [], []>} : vector<288x144xbf16>, vector<144x128xbf16>, vector<288x128xf32> -> vector<288x128xf32>
    %c0_3 = arith.constant 0 : index
    %c0_4 = arith.constant 0 : index
    %3 = vector.load %arg3[%c0_3, %c0_4] : memref<1x128xf32, #tpu.memory_space<vmem>>, vector<1x128xf32>
    %4 = vector.broadcast %3 : vector<1x128xf32> to vector<288x128xf32>
    %5 = arith.addf %2, %4 : vector<288x128xf32>
    %cst_5 = arith.constant 0.000000e+00 : f32
    %6 = vector.broadcast %cst_5 : f32 to vector<288x128xf32>
    %7 = arith.maximumf %5, %6 : vector<288x128xf32>
    %c0_6 = arith.constant 0 : index
    %c0_7 = arith.constant 0 : index
    %8 = vector.load %arg4[%c0_6, %c0_7] : memref<288x128xf32, #tpu.memory_space<vmem>>, vector<288x128xf32>
    tpu.vector_store %arg4[%c0_6, %c0_7], %7 {strides = array<i32>} : memref<288x128xf32, #tpu.memory_space<vmem>>, vector<288x128xf32>,
    return
  }
  func.func @transform_0(%arg0: i32) -> (i32, i32) {
    %c0_i32 = arith.constant 0 : i32
    %c0_i32_0 = arith.constant 0 : i32
    return %arg0, %c0_i32 : i32, i32
  }
  func.func @transform_1(%arg0: i32) -> (i32, i32) {
    %c0_i32 = arith.constant 0 : i32
    %c0_i32_0 = arith.constant 0 : i32
    %c0_i32_1 = arith.constant 0 : i32
    return %c0_i32, %c0_i32_0 : i32, i32
  }
  func.func @transform_2(%arg0: i32) -> (i32, i32) {
    %c0_i32 = arith.constant 0 : i32
    %c0_i32_0 = arith.constant 0 : i32
    %c0_i32_1 = arith.constant 0 : i32
    return %c0_i32, %c0_i32_0 : i32, i32
  }
  func.func @transform_3(%arg0: i32) -> (i32, i32) {
    %c0_i32 = arith.constant 0 : i32
    %c0_i32_0 = arith.constant 0 : i32
    return %arg0, %c0_i32 : i32, i32
  }
}

module attributes {stable_mosaic.version = 11 : i64} {
  func.func @_mm_bias_act_kernel(%arg0: i32, %arg1: memref<72x144xbf16, #tpu.memory_space<vmem>>, %arg2: memref<144x128xbf16, #tpu.memory_space<vmem>>, %arg3: memref<1x128xf32, #tpu.memory_space<vmem>>, %arg4: memref<72x128xf32, #tpu.memory_space<vmem>>) attributes {dimension_semantics = [#tpu.dimension_semantics<parallel>], iteration_bounds = array<i64: 1>, scalar_prefetch = 0 : i64, scratch_operands = 0 : i64, tpu.core_type = #tpu.core_type<tc>, window_params = [{transform_indices = @transform_0, window_bounds = array<i64: 72, 144>}, {pipeline_mode = #tpu.pipeline_mode<synchronous>, transform_indices = @transform_1, window_bounds = array<i64: 144, 128>}, {pipeline_mode = #tpu.pipeline_mode<synchronous>, transform_indices = @transform_2, window_bounds = array<i64: 1, 128>}, {transform_indices = @transform_3, window_bounds = array<i64: 72, 128>}]} {
    %c0 = arith.constant 0 : index
    %c0_0 = arith.constant 0 : index
    %0 = vector.load %arg1[%c0, %c0_0] : memref<72x144xbf16, #tpu.memory_space<vmem>>, vector<72x144xbf16>
    %c0_1 = arith.constant 0 : index
    %c0_2 = arith.constant 0 : index
    %1 = vector.load %arg2[%c0_1, %c0_2] : memref<144x128xbf16, #tpu.memory_space<vmem>>, vector<144x128xbf16>
    %cst = arith.constant dense<0.000000e+00> : vector<72x128xf32>
    %2 = tpu.matmul %0, %1, %cst {dimension_numbers = #tpu.dot_dimension_numbers<[1], [0], [0], [1], [0, 0, 1, 1], [], []>} : vector<72x144xbf16>, vector<144x128xbf16>, vector<72x128xf32> -> vector<72x128xf32>
    %c0_3 = arith.constant 0 : index
    %c0_4 = arith.constant 0 : index
    %3 = vector.load %arg3[%c0_3, %c0_4] : memref<1x128xf32, #tpu.memory_space<vmem>>, vector<1x128xf32>
    %4 = vector.broadcast %3 : vector<1x128xf32> to vector<72x128xf32>
    %5 = arith.addf %2, %4 : vector<72x128xf32>
    %cst_5 = arith.constant 0.000000e+00 : f32
    %6 = vector.broadcast %cst_5 : f32 to vector<72x128xf32>
    %7 = arith.maximumf %5, %6 : vector<72x128xf32>
    %c0_6 = arith.constant 0 : index
    %c0_7 = arith.constant 0 : index
    %8 = vector.load %arg4[%c0_6, %c0_7] : memref<72x128xf32, #tpu.memory_space<vmem>>, vector<72x128xf32>
    tpu.vector_store %arg4[%c0_6, %c0_7], %7 {strides = array<i32>} : memref<72x128xf32, #tpu.memory_space<vmem>>, vector<72x128xf32>,
    return
  }
  func.func @transform_0(%arg0: i32) -> (i32, i32) {
    %c0_i32 = arith.constant 0 : i32
    %c0_i32_0 = arith.constant 0 : i32
    return %arg0, %c0_i32 : i32, i32
  }
  func.func @transform_1(%arg0: i32) -> (i32, i32) {
    %c0_i32 = arith.constant 0 : i32
    %c0_i32_0 = arith.constant 0 : i32
    %c0_i32_1 = arith.constant 0 : i32
    return %c0_i32, %c0_i32_0 : i32, i32
  }
  func.func @transform_2(%arg0: i32) -> (i32, i32) {
    %c0_i32 = arith.constant 0 : i32
    %c0_i32_0 = arith.constant 0 : i32
    %c0_i32_1 = arith.constant 0 : i32
    return %c0_i32, %c0_i32_0 : i32, i32
  }
  func.func @transform_3(%arg0: i32) -> (i32, i32) {
    %c0_i32 = arith.constant 0 : i32
    %c0_i32_0 = arith.constant 0 : i32
    return %arg0, %c0_i32 : i32, i32
  }
}

module attributes {stable_mosaic.version = 11 : i64} {
  func.func @_mm_bias_act_kernel(%arg0: i32, %arg1: memref<72x288xbf16, #tpu.memory_space<vmem>>, %arg2: memref<288x128xbf16, #tpu.memory_space<vmem>>, %arg3: memref<1x128xf32, #tpu.memory_space<vmem>>, %arg4: memref<72x128xf32, #tpu.memory_space<vmem>>) attributes {dimension_semantics = [#tpu.dimension_semantics<parallel>], iteration_bounds = array<i64: 1>, scalar_prefetch = 0 : i64, scratch_operands = 0 : i64, tpu.core_type = #tpu.core_type<tc>, window_params = [{transform_indices = @transform_0, window_bounds = array<i64: 72, 288>}, {pipeline_mode = #tpu.pipeline_mode<synchronous>, transform_indices = @transform_1, window_bounds = array<i64: 288, 128>}, {pipeline_mode = #tpu.pipeline_mode<synchronous>, transform_indices = @transform_2, window_bounds = array<i64: 1, 128>}, {transform_indices = @transform_3, window_bounds = array<i64: 72, 128>}]} {
    %c0 = arith.constant 0 : index
    %c0_0 = arith.constant 0 : index
    %0 = vector.load %arg1[%c0, %c0_0] : memref<72x288xbf16, #tpu.memory_space<vmem>>, vector<72x288xbf16>
    %c0_1 = arith.constant 0 : index
    %c0_2 = arith.constant 0 : index
    %1 = vector.load %arg2[%c0_1, %c0_2] : memref<288x128xbf16, #tpu.memory_space<vmem>>, vector<288x128xbf16>
    %cst = arith.constant dense<0.000000e+00> : vector<72x128xf32>
    %2 = tpu.matmul %0, %1, %cst {dimension_numbers = #tpu.dot_dimension_numbers<[1], [0], [0], [1], [0, 0, 1, 1], [], []>} : vector<72x288xbf16>, vector<288x128xbf16>, vector<72x128xf32> -> vector<72x128xf32>
    %c0_3 = arith.constant 0 : index
    %c0_4 = arith.constant 0 : index
    %3 = vector.load %arg3[%c0_3, %c0_4] : memref<1x128xf32, #tpu.memory_space<vmem>>, vector<1x128xf32>
    %4 = vector.broadcast %3 : vector<1x128xf32> to vector<72x128xf32>
    %5 = arith.addf %2, %4 : vector<72x128xf32>
    %cst_5 = arith.constant 0.000000e+00 : f32
    %6 = vector.broadcast %cst_5 : f32 to vector<72x128xf32>
    %7 = arith.maximumf %5, %6 : vector<72x128xf32>
    %c0_6 = arith.constant 0 : index
    %c0_7 = arith.constant 0 : index
    %8 = vector.load %arg4[%c0_6, %c0_7] : memref<72x128xf32, #tpu.memory_space<vmem>>, vector<72x128xf32>
    tpu.vector_store %arg4[%c0_6, %c0_7], %7 {strides = array<i32>} : memref<72x128xf32, #tpu.memory_space<vmem>>, vector<72x128xf32>,
    return
  }
  func.func @transform_0(%arg0: i32) -> (i32, i32) {
    %c0_i32 = arith.constant 0 : i32
    %c0_i32_0 = arith.constant 0 : i32
    return %arg0, %c0_i32 : i32, i32
  }
  func.func @transform_1(%arg0: i32) -> (i32, i32) {
    %c0_i32 = arith.constant 0 : i32
    %c0_i32_0 = arith.constant 0 : i32
    %c0_i32_1 = arith.constant 0 : i32
    return %c0_i32, %c0_i32_0 : i32, i32
  }
  func.func @transform_2(%arg0: i32) -> (i32, i32) {
    %c0_i32 = arith.constant 0 : i32
    %c0_i32_0 = arith.constant 0 : i32
    %c0_i32_1 = arith.constant 0 : i32
    return %c0_i32, %c0_i32_0 : i32, i32
  }
  func.func @transform_3(%arg0: i32) -> (i32, i32) {
    %c0_i32 = arith.constant 0 : i32
    %c0_i32_0 = arith.constant 0 : i32
    return %arg0, %c0_i32 : i32, i32
  }
}

module attributes {stable_mosaic.version = 11 : i64} {
  func.func @_mm_bias_act_kernel(%arg0: i32, %arg1: memref<72x432xbf16, #tpu.memory_space<vmem>>, %arg2: memref<432x128xbf16, #tpu.memory_space<vmem>>, %arg3: memref<1x128xf32, #tpu.memory_space<vmem>>, %arg4: memref<72x128xf32, #tpu.memory_space<vmem>>) attributes {dimension_semantics = [#tpu.dimension_semantics<parallel>], iteration_bounds = array<i64: 1>, scalar_prefetch = 0 : i64, scratch_operands = 0 : i64, tpu.core_type = #tpu.core_type<tc>, window_params = [{transform_indices = @transform_0, window_bounds = array<i64: 72, 432>}, {pipeline_mode = #tpu.pipeline_mode<synchronous>, transform_indices = @transform_1, window_bounds = array<i64: 432, 128>}, {pipeline_mode = #tpu.pipeline_mode<synchronous>, transform_indices = @transform_2, window_bounds = array<i64: 1, 128>}, {transform_indices = @transform_3, window_bounds = array<i64: 72, 128>}]} {
    %c0 = arith.constant 0 : index
    %c0_0 = arith.constant 0 : index
    %0 = vector.load %arg1[%c0, %c0_0] : memref<72x432xbf16, #tpu.memory_space<vmem>>, vector<72x432xbf16>
    %c0_1 = arith.constant 0 : index
    %c0_2 = arith.constant 0 : index
    %1 = vector.load %arg2[%c0_1, %c0_2] : memref<432x128xbf16, #tpu.memory_space<vmem>>, vector<432x128xbf16>
    %cst = arith.constant dense<0.000000e+00> : vector<72x128xf32>
    %2 = tpu.matmul %0, %1, %cst {dimension_numbers = #tpu.dot_dimension_numbers<[1], [0], [0], [1], [0, 0, 1, 1], [], []>} : vector<72x432xbf16>, vector<432x128xbf16>, vector<72x128xf32> -> vector<72x128xf32>
    %c0_3 = arith.constant 0 : index
    %c0_4 = arith.constant 0 : index
    %3 = vector.load %arg3[%c0_3, %c0_4] : memref<1x128xf32, #tpu.memory_space<vmem>>, vector<1x128xf32>
    %4 = vector.broadcast %3 : vector<1x128xf32> to vector<72x128xf32>
    %5 = arith.addf %2, %4 : vector<72x128xf32>
    %cst_5 = arith.constant 0.000000e+00 : f32
    %6 = vector.broadcast %cst_5 : f32 to vector<72x128xf32>
    %7 = arith.maximumf %5, %6 : vector<72x128xf32>
    %c0_6 = arith.constant 0 : index
    %c0_7 = arith.constant 0 : index
    %8 = vector.load %arg4[%c0_6, %c0_7] : memref<72x128xf32, #tpu.memory_space<vmem>>, vector<72x128xf32>
    tpu.vector_store %arg4[%c0_6, %c0_7], %7 {strides = array<i32>} : memref<72x128xf32, #tpu.memory_space<vmem>>, vector<72x128xf32>,
    return
  }
  func.func @transform_0(%arg0: i32) -> (i32, i32) {
    %c0_i32 = arith.constant 0 : i32
    %c0_i32_0 = arith.constant 0 : i32
    return %arg0, %c0_i32 : i32, i32
  }
  func.func @transform_1(%arg0: i32) -> (i32, i32) {
    %c0_i32 = arith.constant 0 : i32
    %c0_i32_0 = arith.constant 0 : i32
    %c0_i32_1 = arith.constant 0 : i32
    return %c0_i32, %c0_i32_0 : i32, i32
  }
  func.func @transform_2(%arg0: i32) -> (i32, i32) {
    %c0_i32 = arith.constant 0 : i32
    %c0_i32_0 = arith.constant 0 : i32
    %c0_i32_1 = arith.constant 0 : i32
    return %c0_i32, %c0_i32_0 : i32, i32
  }
  func.func @transform_3(%arg0: i32) -> (i32, i32) {
    %c0_i32 = arith.constant 0 : i32
    %c0_i32_0 = arith.constant 0 : i32
    return %arg0, %c0_i32 : i32, i32
  }
}

module attributes {stable_mosaic.version = 11 : i64} {
  func.func @_mm_bias_act_kernel(%arg0: i32, %arg1: memref<56x36xbf16, #tpu.memory_space<vmem>>, %arg2: memref<36x128xbf16, #tpu.memory_space<vmem>>, %arg3: memref<1x128xf32, #tpu.memory_space<vmem>>, %arg4: memref<56x128xf32, #tpu.memory_space<vmem>>) attributes {dimension_semantics = [#tpu.dimension_semantics<parallel>], iteration_bounds = array<i64: 1>, scalar_prefetch = 0 : i64, scratch_operands = 0 : i64, tpu.core_type = #tpu.core_type<tc>, window_params = [{transform_indices = @transform_0, window_bounds = array<i64: 56, 36>}, {pipeline_mode = #tpu.pipeline_mode<synchronous>, transform_indices = @transform_1, window_bounds = array<i64: 36, 128>}, {pipeline_mode = #tpu.pipeline_mode<synchronous>, transform_indices = @transform_2, window_bounds = array<i64: 1, 128>}, {transform_indices = @transform_3, window_bounds = array<i64: 56, 128>}]} {
    %c0 = arith.constant 0 : index
    %c0_0 = arith.constant 0 : index
    %0 = vector.load %arg1[%c0, %c0_0] : memref<56x36xbf16, #tpu.memory_space<vmem>>, vector<56x36xbf16>
    %c0_1 = arith.constant 0 : index
    %c0_2 = arith.constant 0 : index
    %1 = vector.load %arg2[%c0_1, %c0_2] : memref<36x128xbf16, #tpu.memory_space<vmem>>, vector<36x128xbf16>
    %cst = arith.constant dense<0.000000e+00> : vector<56x128xf32>
    %2 = tpu.matmul %0, %1, %cst {dimension_numbers = #tpu.dot_dimension_numbers<[1], [0], [0], [1], [0, 0, 1, 1], [], []>} : vector<56x36xbf16>, vector<36x128xbf16>, vector<56x128xf32> -> vector<56x128xf32>
    %c0_3 = arith.constant 0 : index
    %c0_4 = arith.constant 0 : index
    %3 = vector.load %arg3[%c0_3, %c0_4] : memref<1x128xf32, #tpu.memory_space<vmem>>, vector<1x128xf32>
    %4 = vector.broadcast %3 : vector<1x128xf32> to vector<56x128xf32>
    %5 = arith.addf %2, %4 : vector<56x128xf32>
    %c0_5 = arith.constant 0 : index
    %c0_6 = arith.constant 0 : index
    %6 = vector.load %arg4[%c0_5, %c0_6] : memref<56x128xf32, #tpu.memory_space<vmem>>, vector<56x128xf32>
    tpu.vector_store %arg4[%c0_5, %c0_6], %5 {strides = array<i32>} : memref<56x128xf32, #tpu.memory_space<vmem>>, vector<56x128xf32>,
    return
  }
  func.func @transform_0(%arg0: i32) -> (i32, i32) {
    %c0_i32 = arith.constant 0 : i32
    %c0_i32_0 = arith.constant 0 : i32
    return %arg0, %c0_i32 : i32, i32
  }
  func.func @transform_1(%arg0: i32) -> (i32, i32) {
    %c0_i32 = arith.constant 0 : i32
    %c0_i32_0 = arith.constant 0 : i32
    %c0_i32_1 = arith.constant 0 : i32
    return %c0_i32, %c0_i32_0 : i32, i32
  }
  func.func @transform_2(%arg0: i32) -> (i32, i32) {
    %c0_i32 = arith.constant 0 : i32
    %c0_i32_0 = arith.constant 0 : i32
    %c0_i32_1 = arith.constant 0 : i32
    return %c0_i32, %c0_i32_0 : i32, i32
  }
  func.func @transform_3(%arg0: i32) -> (i32, i32) {
    %c0_i32 = arith.constant 0 : i32
    %c0_i32_0 = arith.constant 0 : i32
    return %arg0, %c0_i32 : i32, i32
  }
}

module attributes {stable_mosaic.version = 11 : i64} {
  func.func @_mm_bias_act_kernel(%arg0: i32, %arg1: memref<104x64xbf16, #tpu.memory_space<vmem>>, %arg2: memref<64x128xbf16, #tpu.memory_space<vmem>>, %arg3: memref<1x128xf32, #tpu.memory_space<vmem>>, %arg4: memref<104x128xf32, #tpu.memory_space<vmem>>) attributes {dimension_semantics = [#tpu.dimension_semantics<parallel>], iteration_bounds = array<i64: 1>, scalar_prefetch = 0 : i64, scratch_operands = 0 : i64, tpu.core_type = #tpu.core_type<tc>, window_params = [{transform_indices = @transform_0, window_bounds = array<i64: 104, 64>}, {pipeline_mode = #tpu.pipeline_mode<synchronous>, transform_indices = @transform_1, window_bounds = array<i64: 64, 128>}, {pipeline_mode = #tpu.pipeline_mode<synchronous>, transform_indices = @transform_2, window_bounds = array<i64: 1, 128>}, {transform_indices = @transform_3, window_bounds = array<i64: 104, 128>}]} {
    %c0 = arith.constant 0 : index
    %c0_0 = arith.constant 0 : index
    %0 = vector.load %arg1[%c0, %c0_0] : memref<104x64xbf16, #tpu.memory_space<vmem>>, vector<104x64xbf16>
    %c0_1 = arith.constant 0 : index
    %c0_2 = arith.constant 0 : index
    %1 = vector.load %arg2[%c0_1, %c0_2] : memref<64x128xbf16, #tpu.memory_space<vmem>>, vector<64x128xbf16>
    %cst = arith.constant dense<0.000000e+00> : vector<104x128xf32>
    %2 = tpu.matmul %0, %1, %cst {dimension_numbers = #tpu.dot_dimension_numbers<[1], [0], [0], [1], [0, 0, 1, 1], [], []>} : vector<104x64xbf16>, vector<64x128xbf16>, vector<104x128xf32> -> vector<104x128xf32>
    %c0_3 = arith.constant 0 : index
    %c0_4 = arith.constant 0 : index
    %3 = vector.load %arg3[%c0_3, %c0_4] : memref<1x128xf32, #tpu.memory_space<vmem>>, vector<1x128xf32>
    %4 = vector.broadcast %3 : vector<1x128xf32> to vector<104x128xf32>
    %5 = arith.addf %2, %4 : vector<104x128xf32>
    %cst_5 = arith.constant 0.000000e+00 : f32
    %6 = vector.broadcast %cst_5 : f32 to vector<104x128xf32>
    %7 = arith.maximumf %5, %6 : vector<104x128xf32>
    %c0_6 = arith.constant 0 : index
    %c0_7 = arith.constant 0 : index
    %8 = vector.load %arg4[%c0_6, %c0_7] : memref<104x128xf32, #tpu.memory_space<vmem>>, vector<104x128xf32>
    tpu.vector_store %arg4[%c0_6, %c0_7], %7 {strides = array<i32>} : memref<104x128xf32, #tpu.memory_space<vmem>>, vector<104x128xf32>,
    return
  }
  func.func @transform_0(%arg0: i32) -> (i32, i32) {
    %c0_i32 = arith.constant 0 : i32
    %c0_i32_0 = arith.constant 0 : i32
    return %arg0, %c0_i32 : i32, i32
  }
  func.func @transform_1(%arg0: i32) -> (i32, i32) {
    %c0_i32 = arith.constant 0 : i32
    %c0_i32_0 = arith.constant 0 : i32
    %c0_i32_1 = arith.constant 0 : i32
    return %c0_i32, %c0_i32_0 : i32, i32
  }
  func.func @transform_2(%arg0: i32) -> (i32, i32) {
    %c0_i32 = arith.constant 0 : i32
    %c0_i32_0 = arith.constant 0 : i32
    %c0_i32_1 = arith.constant 0 : i32
    return %c0_i32, %c0_i32_0 : i32, i32
  }
  func.func @transform_3(%arg0: i32) -> (i32, i32) {
    %c0_i32 = arith.constant 0 : i32
    %c0_i32_0 = arith.constant 0 : i32
    return %arg0, %c0_i32 : i32, i32
  }
}

module attributes {stable_mosaic.version = 11 : i64} {
  func.func @_mm_bias_act_kernel(%arg0: i32, %arg1: memref<40x50xbf16, #tpu.memory_space<vmem>>, %arg2: memref<50x128xbf16, #tpu.memory_space<vmem>>, %arg3: memref<1x128xf32, #tpu.memory_space<vmem>>, %arg4: memref<40x128xf32, #tpu.memory_space<vmem>>) attributes {dimension_semantics = [#tpu.dimension_semantics<parallel>], iteration_bounds = array<i64: 1>, scalar_prefetch = 0 : i64, scratch_operands = 0 : i64, tpu.core_type = #tpu.core_type<tc>, window_params = [{transform_indices = @transform_0, window_bounds = array<i64: 40, 50>}, {pipeline_mode = #tpu.pipeline_mode<synchronous>, transform_indices = @transform_1, window_bounds = array<i64: 50, 128>}, {pipeline_mode = #tpu.pipeline_mode<synchronous>, transform_indices = @transform_2, window_bounds = array<i64: 1, 128>}, {transform_indices = @transform_3, window_bounds = array<i64: 40, 128>}]} {
    %c0 = arith.constant 0 : index
    %c0_0 = arith.constant 0 : index
    %0 = vector.load %arg1[%c0, %c0_0] : memref<40x50xbf16, #tpu.memory_space<vmem>>, vector<40x50xbf16>
    %c0_1 = arith.constant 0 : index
    %c0_2 = arith.constant 0 : index
    %1 = vector.load %arg2[%c0_1, %c0_2] : memref<50x128xbf16, #tpu.memory_space<vmem>>, vector<50x128xbf16>
    %cst = arith.constant dense<0.000000e+00> : vector<40x128xf32>
    %2 = tpu.matmul %0, %1, %cst {dimension_numbers = #tpu.dot_dimension_numbers<[1], [0], [0], [1], [0, 0, 1, 1], [], []>} : vector<40x50xbf16>, vector<50x128xbf16>, vector<40x128xf32> -> vector<40x128xf32>
    %c0_3 = arith.constant 0 : index
    %c0_4 = arith.constant 0 : index
    %3 = vector.load %arg3[%c0_3, %c0_4] : memref<1x128xf32, #tpu.memory_space<vmem>>, vector<1x128xf32>
    %4 = vector.broadcast %3 : vector<1x128xf32> to vector<40x128xf32>
    %5 = arith.addf %2, %4 : vector<40x128xf32>
    %c0_5 = arith.constant 0 : index
    %c0_6 = arith.constant 0 : index
    %6 = vector.load %arg4[%c0_5, %c0_6] : memref<40x128xf32, #tpu.memory_space<vmem>>, vector<40x128xf32>
    tpu.vector_store %arg4[%c0_5, %c0_6], %5 {strides = array<i32>} : memref<40x128xf32, #tpu.memory_space<vmem>>, vector<40x128xf32>,
    return
  }
  func.func @transform_0(%arg0: i32) -> (i32, i32) {
    %c0_i32 = arith.constant 0 : i32
    %c0_i32_0 = arith.constant 0 : i32
    return %arg0, %c0_i32 : i32, i32
  }
  func.func @transform_1(%arg0: i32) -> (i32, i32) {
    %c0_i32 = arith.constant 0 : i32
    %c0_i32_0 = arith.constant 0 : i32
    %c0_i32_1 = arith.constant 0 : i32
    return %c0_i32, %c0_i32_0 : i32, i32
  }
  func.func @transform_2(%arg0: i32) -> (i32, i32) {
    %c0_i32 = arith.constant 0 : i32
    %c0_i32_0 = arith.constant 0 : i32
    %c0_i32_1 = arith.constant 0 : i32
    return %c0_i32, %c0_i32_0 : i32, i32
  }
  func.func @transform_3(%arg0: i32) -> (i32, i32) {
    %c0_i32 = arith.constant 0 : i32
    %c0_i32_0 = arith.constant 0 : i32
    return %arg0, %c0_i32 : i32, i32
  }
}

module attributes {stable_mosaic.version = 11 : i64} {
  func.func @_mm_bias_act_kernel(%arg0: i32, %arg1: memref<72x1152xbf16, #tpu.memory_space<vmem>>, %arg2: memref<1152x128xbf16, #tpu.memory_space<vmem>>, %arg3: memref<1x128xf32, #tpu.memory_space<vmem>>, %arg4: memref<72x128xf32, #tpu.memory_space<vmem>>) attributes {dimension_semantics = [#tpu.dimension_semantics<parallel>], iteration_bounds = array<i64: 1>, scalar_prefetch = 0 : i64, scratch_operands = 0 : i64, tpu.core_type = #tpu.core_type<tc>, window_params = [{transform_indices = @transform_0, window_bounds = array<i64: 72, 1152>}, {pipeline_mode = #tpu.pipeline_mode<synchronous>, transform_indices = @transform_1, window_bounds = array<i64: 1152, 128>}, {pipeline_mode = #tpu.pipeline_mode<synchronous>, transform_indices = @transform_2, window_bounds = array<i64: 1, 128>}, {transform_indices = @transform_3, window_bounds = array<i64: 72, 128>}]} {
    %c0 = arith.constant 0 : index
    %c0_0 = arith.constant 0 : index
    %0 = vector.load %arg1[%c0, %c0_0] : memref<72x1152xbf16, #tpu.memory_space<vmem>>, vector<72x1152xbf16>
    %c0_1 = arith.constant 0 : index
    %c0_2 = arith.constant 0 : index
    %1 = vector.load %arg2[%c0_1, %c0_2] : memref<1152x128xbf16, #tpu.memory_space<vmem>>, vector<1152x128xbf16>
    %cst = arith.constant dense<0.000000e+00> : vector<72x128xf32>
    %2 = tpu.matmul %0, %1, %cst {dimension_numbers = #tpu.dot_dimension_numbers<[1], [0], [0], [1], [0, 0, 1, 1], [], []>} : vector<72x1152xbf16>, vector<1152x128xbf16>, vector<72x128xf32> -> vector<72x128xf32>
    %c0_3 = arith.constant 0 : index
    %c0_4 = arith.constant 0 : index
    %3 = vector.load %arg3[%c0_3, %c0_4] : memref<1x128xf32, #tpu.memory_space<vmem>>, vector<1x128xf32>
    %4 = vector.broadcast %3 : vector<1x128xf32> to vector<72x128xf32>
    %5 = arith.addf %2, %4 : vector<72x128xf32>
    %cst_5 = arith.constant 0.000000e+00 : f32
    %6 = vector.broadcast %cst_5 : f32 to vector<72x128xf32>
    %7 = arith.maximumf %5, %6 : vector<72x128xf32>
    %c0_6 = arith.constant 0 : index
    %c0_7 = arith.constant 0 : index
    %8 = vector.load %arg4[%c0_6, %c0_7] : memref<72x128xf32, #tpu.memory_space<vmem>>, vector<72x128xf32>
    tpu.vector_store %arg4[%c0_6, %c0_7], %7 {strides = array<i32>} : memref<72x128xf32, #tpu.memory_space<vmem>>, vector<72x128xf32>,
    return
  }
  func.func @transform_0(%arg0: i32) -> (i32, i32) {
    %c0_i32 = arith.constant 0 : i32
    %c0_i32_0 = arith.constant 0 : i32
    return %arg0, %c0_i32 : i32, i32
  }
  func.func @transform_1(%arg0: i32) -> (i32, i32) {
    %c0_i32 = arith.constant 0 : i32
    %c0_i32_0 = arith.constant 0 : i32
    %c0_i32_1 = arith.constant 0 : i32
    return %c0_i32, %c0_i32_0 : i32, i32
  }
  func.func @transform_2(%arg0: i32) -> (i32, i32) {
    %c0_i32 = arith.constant 0 : i32
    %c0_i32_0 = arith.constant 0 : i32
    %c0_i32_1 = arith.constant 0 : i32
    return %c0_i32, %c0_i32_0 : i32, i32
  }
  func.func @transform_3(%arg0: i32) -> (i32, i32) {
    %c0_i32 = arith.constant 0 : i32
    %c0_i32_0 = arith.constant 0 : i32
    return %arg0, %c0_i32 : i32, i32
  }
}

module attributes {stable_mosaic.version = 11 : i64} {
  func.func @_mm_bias_act_kernel(%arg0: i32, %arg1: memref<72x16xbf16, #tpu.memory_space<vmem>>, %arg2: memref<16x128xbf16, #tpu.memory_space<vmem>>, %arg3: memref<1x128xf32, #tpu.memory_space<vmem>>, %arg4: memref<72x128xf32, #tpu.memory_space<vmem>>) attributes {dimension_semantics = [#tpu.dimension_semantics<parallel>], iteration_bounds = array<i64: 1>, scalar_prefetch = 0 : i64, scratch_operands = 0 : i64, tpu.core_type = #tpu.core_type<tc>, window_params = [{transform_indices = @transform_0, window_bounds = array<i64: 72, 16>}, {pipeline_mode = #tpu.pipeline_mode<synchronous>, transform_indices = @transform_1, window_bounds = array<i64: 16, 128>}, {pipeline_mode = #tpu.pipeline_mode<synchronous>, transform_indices = @transform_2, window_bounds = array<i64: 1, 128>}, {transform_indices = @transform_3, window_bounds = array<i64: 72, 128>}]} {
    %c0 = arith.constant 0 : index
    %c0_0 = arith.constant 0 : index
    %0 = vector.load %arg1[%c0, %c0_0] : memref<72x16xbf16, #tpu.memory_space<vmem>>, vector<72x16xbf16>
    %c0_1 = arith.constant 0 : index
    %c0_2 = arith.constant 0 : index
    %1 = vector.load %arg2[%c0_1, %c0_2] : memref<16x128xbf16, #tpu.memory_space<vmem>>, vector<16x128xbf16>
    %cst = arith.constant dense<0.000000e+00> : vector<72x128xf32>
    %2 = tpu.matmul %0, %1, %cst {dimension_numbers = #tpu.dot_dimension_numbers<[1], [0], [0], [1], [0, 0, 1, 1], [], []>} : vector<72x16xbf16>, vector<16x128xbf16>, vector<72x128xf32> -> vector<72x128xf32>
    %c0_3 = arith.constant 0 : index
    %c0_4 = arith.constant 0 : index
    %3 = vector.load %arg3[%c0_3, %c0_4] : memref<1x128xf32, #tpu.memory_space<vmem>>, vector<1x128xf32>
    %4 = vector.broadcast %3 : vector<1x128xf32> to vector<72x128xf32>
    %5 = arith.addf %2, %4 : vector<72x128xf32>
    %c0_5 = arith.constant 0 : index
    %c0_6 = arith.constant 0 : index
    %6 = vector.load %arg4[%c0_5, %c0_6] : memref<72x128xf32, #tpu.memory_space<vmem>>, vector<72x128xf32>
    tpu.vector_store %arg4[%c0_5, %c0_6], %5 {strides = array<i32>} : memref<72x128xf32, #tpu.memory_space<vmem>>, vector<72x128xf32>,
    return
  }
  func.func @transform_0(%arg0: i32) -> (i32, i32) {
    %c0_i32 = arith.constant 0 : i32
    %c0_i32_0 = arith.constant 0 : i32
    return %arg0, %c0_i32 : i32, i32
  }
  func.func @transform_1(%arg0: i32) -> (i32, i32) {
    %c0_i32 = arith.constant 0 : i32
    %c0_i32_0 = arith.constant 0 : i32
    %c0_i32_1 = arith.constant 0 : i32
    return %c0_i32, %c0_i32_0 : i32, i32
  }
  func.func @transform_2(%arg0: i32) -> (i32, i32) {
    %c0_i32 = arith.constant 0 : i32
    %c0_i32_0 = arith.constant 0 : i32
    %c0_i32_1 = arith.constant 0 : i32
    return %c0_i32, %c0_i32_0 : i32, i32
  }
  func.func @transform_3(%arg0: i32) -> (i32, i32) {
    %c0_i32 = arith.constant 0 : i32
    %c0_i32_0 = arith.constant 0 : i32
    return %arg0, %c0_i32 : i32, i32
  }
}

module attributes {stable_mosaic.version = 11 : i64} {
  func.func @_mm_bias_act_kernel(%arg0: i32, %arg1: memref<48x6xbf16, #tpu.memory_space<vmem>>, %arg2: memref<6x256xbf16, #tpu.memory_space<vmem>>, %arg3: memref<1x256xf32, #tpu.memory_space<vmem>>, %arg4: memref<48x256xf32, #tpu.memory_space<vmem>>) attributes {dimension_semantics = [#tpu.dimension_semantics<parallel>], iteration_bounds = array<i64: 1>, scalar_prefetch = 0 : i64, scratch_operands = 0 : i64, tpu.core_type = #tpu.core_type<tc>, window_params = [{transform_indices = @transform_0, window_bounds = array<i64: 48, 6>}, {pipeline_mode = #tpu.pipeline_mode<synchronous>, transform_indices = @transform_1, window_bounds = array<i64: 6, 256>}, {pipeline_mode = #tpu.pipeline_mode<synchronous>, transform_indices = @transform_2, window_bounds = array<i64: 1, 256>}, {transform_indices = @transform_3, window_bounds = array<i64: 48, 256>}]} {
    %c0 = arith.constant 0 : index
    %c0_0 = arith.constant 0 : index
    %0 = vector.load %arg1[%c0, %c0_0] : memref<48x6xbf16, #tpu.memory_space<vmem>>, vector<48x6xbf16>
    %c0_1 = arith.constant 0 : index
    %c0_2 = arith.constant 0 : index
    %1 = vector.load %arg2[%c0_1, %c0_2] : memref<6x256xbf16, #tpu.memory_space<vmem>>, vector<6x256xbf16>
    %cst = arith.constant dense<0.000000e+00> : vector<48x256xf32>
    %2 = tpu.matmul %0, %1, %cst {dimension_numbers = #tpu.dot_dimension_numbers<[1], [0], [0], [1], [0, 0, 1, 1], [], []>} : vector<48x6xbf16>, vector<6x256xbf16>, vector<48x256xf32> -> vector<48x256xf32>
    %c0_3 = arith.constant 0 : index
    %c0_4 = arith.constant 0 : index
    %3 = vector.load %arg3[%c0_3, %c0_4] : memref<1x256xf32, #tpu.memory_space<vmem>>, vector<1x256xf32>
    %4 = vector.broadcast %3 : vector<1x256xf32> to vector<48x256xf32>
    %5 = arith.addf %2, %4 : vector<48x256xf32>
    %c0_5 = arith.constant 0 : index
    %c0_6 = arith.constant 0 : index
    %6 = vector.load %arg4[%c0_5, %c0_6] : memref<48x256xf32, #tpu.memory_space<vmem>>, vector<48x256xf32>
    tpu.vector_store %arg4[%c0_5, %c0_6], %5 {strides = array<i32>} : memref<48x256xf32, #tpu.memory_space<vmem>>, vector<48x256xf32>,
    return
  }
  func.func @transform_0(%arg0: i32) -> (i32, i32) {
    %c0_i32 = arith.constant 0 : i32
    %c0_i32_0 = arith.constant 0 : i32
    return %arg0, %c0_i32 : i32, i32
  }
  func.func @transform_1(%arg0: i32) -> (i32, i32) {
    %c0_i32 = arith.constant 0 : i32
    %c0_i32_0 = arith.constant 0 : i32
    %c0_i32_1 = arith.constant 0 : i32
    return %c0_i32, %c0_i32_0 : i32, i32
  }
  func.func @transform_2(%arg0: i32) -> (i32, i32) {
    %c0_i32 = arith.constant 0 : i32
    %c0_i32_0 = arith.constant 0 : i32
    %c0_i32_1 = arith.constant 0 : i32
    return %c0_i32, %c0_i32_0 : i32, i32
  }
  func.func @transform_3(%arg0: i32) -> (i32, i32) {
    %c0_i32 = arith.constant 0 : i32
    %c0_i32_0 = arith.constant 0 : i32
    return %arg0, %c0_i32 : i32, i32
  }
}

module attributes {stable_mosaic.version = 11 : i64} {
  func.func @_mm_bias_act_kernel(%arg0: i32, %arg1: memref<48x6xbf16, #tpu.memory_space<vmem>>, %arg2: memref<6x2048xbf16, #tpu.memory_space<vmem>>, %arg3: memref<1x2048xf32, #tpu.memory_space<vmem>>, %arg4: memref<48x2048xf32, #tpu.memory_space<vmem>>) attributes {dimension_semantics = [#tpu.dimension_semantics<parallel>], iteration_bounds = array<i64: 1>, scalar_prefetch = 0 : i64, scratch_operands = 0 : i64, tpu.core_type = #tpu.core_type<tc>, window_params = [{transform_indices = @transform_0, window_bounds = array<i64: 48, 6>}, {pipeline_mode = #tpu.pipeline_mode<synchronous>, transform_indices = @transform_1, window_bounds = array<i64: 6, 2048>}, {pipeline_mode = #tpu.pipeline_mode<synchronous>, transform_indices = @transform_2, window_bounds = array<i64: 1, 2048>}, {transform_indices = @transform_3, window_bounds = array<i64: 48, 2048>}]} {
    %c0 = arith.constant 0 : index
    %c0_0 = arith.constant 0 : index
    %0 = vector.load %arg1[%c0, %c0_0] : memref<48x6xbf16, #tpu.memory_space<vmem>>, vector<48x6xbf16>
    %c0_1 = arith.constant 0 : index
    %c0_2 = arith.constant 0 : index
    %1 = vector.load %arg2[%c0_1, %c0_2] : memref<6x2048xbf16, #tpu.memory_space<vmem>>, vector<6x2048xbf16>
    %cst = arith.constant dense<0.000000e+00> : vector<48x2048xf32>
    %2 = tpu.matmul %0, %1, %cst {dimension_numbers = #tpu.dot_dimension_numbers<[1], [0], [0], [1], [0, 0, 1, 1], [], []>} : vector<48x6xbf16>, vector<6x2048xbf16>, vector<48x2048xf32> -> vector<48x2048xf32>
    %c0_3 = arith.constant 0 : index
    %c0_4 = arith.constant 0 : index
    %3 = vector.load %arg3[%c0_3, %c0_4] : memref<1x2048xf32, #tpu.memory_space<vmem>>, vector<1x2048xf32>
    %4 = vector.broadcast %3 : vector<1x2048xf32> to vector<48x2048xf32>
    %5 = arith.addf %2, %4 : vector<48x2048xf32>
    %c0_5 = arith.constant 0 : index
    %c0_6 = arith.constant 0 : index
    %6 = vector.load %arg4[%c0_5, %c0_6] : memref<48x2048xf32, #tpu.memory_space<vmem>>, vector<48x2048xf32>
    tpu.vector_store %arg4[%c0_5, %c0_6], %5 {strides = array<i32>} : memref<48x2048xf32, #tpu.memory_space<vmem>>, vector<48x2048xf32>,
    return
  }
  func.func @transform_0(%arg0: i32) -> (i32, i32) {
    %c0_i32 = arith.constant 0 : i32
    %c0_i32_0 = arith.constant 0 : i32
    return %arg0, %c0_i32 : i32, i32
  }
  func.func @transform_1(%arg0: i32) -> (i32, i32) {
    %c0_i32 = arith.constant 0 : i32
    %c0_i32_0 = arith.constant 0 : i32
    %c0_i32_1 = arith.constant 0 : i32
    return %c0_i32, %c0_i32_0 : i32, i32
  }
  func.func @transform_2(%arg0: i32) -> (i32, i32) {
    %c0_i32 = arith.constant 0 : i32
    %c0_i32_0 = arith.constant 0 : i32
    %c0_i32_1 = arith.constant 0 : i32
    return %c0_i32, %c0_i32_0 : i32, i32
  }
  func.func @transform_3(%arg0: i32) -> (i32, i32) {
    %c0_i32 = arith.constant 0 : i32
    %c0_i32_0 = arith.constant 0 : i32
    return %arg0, %c0_i32 : i32, i32
  }
}

</mosaic_0001>

<bundles_post_ra>
// kernel: pspnet2_forward.14
= control target key start
LH: loop header
LB: loop body
LE: loop exit
PB: predicated region body
PF: predicated region fallthrough
CT: control target
= control target key end

     0   :  { %vm135_vm0 = vcmask 523264   ;;  %s378_s0 = inlined_call_operand.vmem [shape: f32[24,192], index: 0, kind: input, shape index: {}]   ;;  %s379_s1 = inlined_call_operand.vmem [shape: f32[24,192], index: 1, kind: input, shape index: {}]   ;;  %s380_s2 = inlined_call_operand.vmem [shape: f32[24,192], index: 2, kind: input, shape index: {}]   ;;  %s381_s3 = inlined_call_operand.vmem [shape: f32[24,192], index: 3, kind: input, shape index: {}]   ;;  %s382_s4 = inlined_call_operand.vmem [shape: f32[24,192], index: 4, kind: input, shape index: {}]   ;;  %s383_s5 = inlined_call_operand.vmem [shape: f32[24,192], index: 5, kind: input, shape index: {}]   ;;  %s384_s6 = inlined_call_operand.vmem [shape: f32[24,192], index: 6, kind: input, shape index: {}]   ;;  %s385_s7 = inlined_call_operand.vmem [shape: f32[24,192], index: 7, kind: input, shape index: {}]   ;;  %s386_s8 = inlined_call_operand.vmem [shape: f32[24,192], index: 8, kind: input, shape index: {}]   ;;  %s387_s9 = inlined_call_operand.vmem [shape: f32[24,192], index: 9, kind: output, shape index: {}]  }
   0x1   :  { %v32_v0 = vld [vmem:[%s378_s0] sm:$0xff]  ;;  %v33_v6 = vld [vmem:[%s378_s0 + $0x8] sm:$0xff]  ;;  %v34_v15 = vld [vmem:[%s378_s0 + $0x10] sm:$0xff] }
   0x2   :  { %v38_v1 = vld [vmem:[%s379_s1] sm:$0xff]  ;;  %v39_v7 = vld [vmem:[%s379_s1 + $0x8] sm:$0xff]  ;;  %v40_v16 = vld [vmem:[%s379_s1 + $0x10] sm:$0xff] }
   0x3   :  { %v50_v2 = vld [vmem:[%s380_s2] sm:$0xff]  ;;  %v44_v3 = vmax.f32 %v32_v0, %v38_v1  ;;  %v51_v8 = vld [vmem:[%s380_s2 + $0x8] sm:$0xff]  ;;  %v45_v10 = vmax.f32 %v33_v6, %v39_v7  ;;  %v52_v17 = vld [vmem:[%s380_s2 + $0x10] sm:$0xff]  ;;  %v46_v20 = vmax.f32 %v34_v15, %v40_v16 }
   0x4   :  { %v62_v4 = vld [vmem:[%s381_s3] sm:$0xff]  ;;  %v63_v13 = vld [vmem:[%s381_s3 + $0x8] sm:$0xff]  ;;  %v64_v24 = vld [vmem:[%s381_s3 + $0x10] sm:$0xff] }
   0x5   :  { %v56_v5 = vmax.f32 %v44_v3, %v50_v2  ;;  %v74_v9 = vld [vmem:[%s382_s4] sm:$0xff]  ;;  %v57_v14 = vmax.f32 %v45_v10, %v51_v8  ;;  %v75_v19 = vld [vmem:[%s382_s4 + $0x8] sm:$0xff]  ;;  %v58_v26 = vmax.f32 %v46_v20, %v52_v17  ;;  %v35_v27 = vld [vmem:[%s378_s0 + $0x18] sm:$0xff] }
   0x6   :  { %v86_v12 = vld [vmem:[%s383_s5] sm:$0xff]  ;;  %v87_v23 = vld [vmem:[%s383_s5 + $0x8] sm:$0xff]  ;;  %v41_v28 = vld [vmem:[%s379_s1 + $0x18] sm:$0xff] }
   0x7   :  { %v68_v11 = vmax.f32 %v56_v5, %v62_v4  ;;  %v98_v21 = vld [vmem:[%s384_s6] sm:$0xff]  ;;  %v69_v22 = vmax.f32 %v57_v14, %v63_v13  ;;  %v53_v29 = vld [vmem:[%s380_s2 + $0x18] sm:$0xff]  ;;  %v76_v33 = vld [vmem:[%s382_s4 + $0x10] sm:$0xff]  ;;  %v47_v34 = vmax.f32 %v35_v27, %v41_v28  ;;  %v70_v37 = vmax.f32 %v58_v26, %v64_v24 }
   0x8   :  { %v110_v30 = vld [vmem:[%s385_s7] sm:$0xff]  ;;  %v99_v36 = vld [vmem:[%s384_s6 + $0x8] sm:$0xff]  ;;  %v88_v38 = vld [vmem:[%s383_s5 + $0x10] sm:$0xff] }
   0x9   :  { %v80_v18 = vmax.f32 %v68_v11, %v74_v9  ;;  %v122_v31 = vld [vmem:[%s386_s8] sm:$0xff]  ;;  %v81_v32 = vmax.f32 %v69_v22, %v75_v19  ;;  %v65_v39 = vld [vmem:[%s381_s3 + $0x18] sm:$0xff]  ;;  %v59_v41 = vmax.f32 %v47_v34, %v53_v29  ;;  %v111_v46 = vld [vmem:[%s385_s7 + $0x8] sm:$0xff]  ;;  %v82_v48 = vmax.f32 %v70_v37, %v76_v33 }
   0xa   :  { %v36_v42 = vld [vmem:[%s378_s0 + $0x20] sm:$0xff]  ;;  %v123_v47 = vld [vmem:[%s386_s8 + $0x8] sm:$0xff]  ;;  %v77_v49 = vld [vmem:[%s382_s4 + $0x18] sm:$0xff] }
   0xb   :  { %v92_v25 = vmax.f32 %v80_v18, %v86_v12  ;;  %v93_v40 = vmax.f32 %v81_v32, %v87_v23  ;;  %v42_v43 = vld [vmem:[%s379_s1 + $0x20] sm:$0xff]  ;;  %v100_v52 = vld [vmem:[%s384_s6 + $0x10] sm:$0xff]  ;;  %v71_v53 = vmax.f32 %v59_v41, %v65_v39  ;;  %v89_v54 = vld [vmem:[%s383_s5 + $0x18] sm:$0xff]  ;;  %v94_v57 = vmax.f32 %v82_v48, %v88_v38 }
   0xc   :  { %v54_v44 = vld [vmem:[%s380_s2 + $0x20] sm:$0xff]  ;;  %v48_v50 = vmax.f32 %v36_v42, %v42_v43  ;;  %v37_v59 = vld [vmem:[%s378_s0 + $0x28] sm:$0xff]  ;;  %v112_v63 = vld [vmem:[%s385_s7 + $0x10] sm:$0xff] }
   0xd   :  { %v104_v35 = vmax.f32 %v92_v25, %v98_v21  ;;  %v105_v51 = vmax.f32 %v93_v40, %v99_v36  ;;  %v66_v55 = vld [vmem:[%s381_s3 + $0x20] sm:$0xff]  ;;  %v43_v60 = vld [vmem:[%s379_s1 + $0x28] sm:$0xff]  ;;  %v83_v0 = vmax.f32 %v71_v53, %v77_v49  ;;  %v106_v3 = vmax.f32 %v94_v57, %v100_v52  ;;  %v101_v4 = vld [vmem:[%s384_s6 + $0x18] sm:$0xff] }
   0xe   :  { %v60_v58 = vmax.f32 %v48_v50, %v54_v44  ;;  %v55_v61 = vld [vmem:[%s380_s2 + $0x28] sm:$0xff]  ;;  %v78_v1 = vld [vmem:[%s382_s4 + $0x20] sm:$0xff]  ;;  %v49_v2 = vmax.f32 %v37_v59, %v43_v60  ;;  %v124_v8 = vld [vmem:[%s386_s8 + $0x10] sm:$0xff] }
   0xf   :  { %v116_v45 = vmax.f32 %v104_v35, %v110_v30  ;;  %v117_v62 = vmax.f32 %v105_v51, %v111_v46  ;;  %v67_v6 = vld [vmem:[%s381_s3 + $0x28] sm:$0xff]  ;;  %v95_v9 = vmax.f32 %v83_v0, %v89_v54  ;;  %v90_v10 = vld [vmem:[%s383_s5 + $0x20] sm:$0xff]  ;;  %v118_v12 = vmax.f32 %v106_v3, %v112_v63  ;;  %v113_v13 = vld [vmem:[%s385_s7 + $0x18] sm:$0xff] }
  0x10   :  { %v72_v5 = vmax.f32 %v60_v58, %v66_v55  ;;  %v61_v11 = vmax.f32 %v49_v2, %v55_v61  ;;  %v79_v15 = vld [vmem:[%s382_s4 + $0x28] sm:$0xff]  ;;  %v102_v17 = vld [vmem:[%s384_s6 + $0x20] sm:$0xff]  ;;  %v125_v20 = vld [vmem:[%s386_s8 + $0x18] sm:$0xff] }
  0x11   :  { %v128_v56 = vmax.f32 %v116_v45, %v122_v31  ;;  %v129_v7 = vmax.f32 %v117_v62, %v123_v47  ;;  %v107_v16 = vmax.f32 %v95_v9, %v101_v4  ;;  %v130_v19 = vmax.f32 %v118_v12, %v124_v8  ;;  %v91_v22 = vld [vmem:[%s383_s5 + $0x28] sm:$0xff]  ;;  %v114_v24 = vld [vmem:[%s385_s7 + $0x20] sm:$0xff] }
  0x12   :  { %v84_v14 = vmax.f32 %v72_v5, %v78_v1  ;;  %v73_v18 = vmax.f32 %v61_v11, %v67_v6  ;;  %v103_v27 = vld [vmem:[%s384_s6 + $0x28] sm:$0xff]  ;;  %v126_v29 = vld [vmem:[%s386_s8 + $0x20] sm:$0xff] }
  0x13   :  { %134 = vst [vmem:[%s387_s9] sm:$0xff] %v128_v56  ;;  %v119_v23 = vmax.f32 %v107_v16, %v113_v13  ;;  %v115_v32 = vld [vmem:[%s385_s7 + $0x28] sm:$0xff] }
  0x14   :  { %136 = vst.msk [vmem:[%s387_s9 + $0x8] sm:$0xff] %vm135_vm0, %v129_v7  ;;  %v96_v21 = vmax.f32 %v84_v14, %v90_v10  ;;  %v85_v25 = vmax.f32 %v73_v18, %v79_v15  ;;  %v127_v35 = vld [vmem:[%s386_s8 + $0x28] sm:$0xff] }
  0x15   :  { %137 = vst [vmem:[%s387_s9 + $0x10] sm:$0xff] %v130_v19  ;;  %v131_v28 = vmax.f32 %v119_v23, %v125_v20 }
  0x16   :  { %v108_v26 = vmax.f32 %v96_v21, %v102_v17  ;;  %v97_v30 = vmax.f32 %v85_v25, %v91_v22 }
  0x17   :  { %138 = vst.msk [vmem:[%s387_s9 + $0x18] sm:$0xff] %vm135_vm0, %v131_v28 }
  0x18   :  { %v120_v31 = vmax.f32 %v108_v26, %v114_v24  ;;  %v109_v33 = vmax.f32 %v97_v30, %v103_v27 }
  0x1a   :  { %v132_v34 = vmax.f32 %v120_v31, %v126_v29  ;;  %v121_v36 = vmax.f32 %v109_v33, %v115_v32 }
  0x1c   :  { %139 = vst [vmem:[%s387_s9 + $0x20] sm:$0xff] %v132_v34  ;;  %v133_v37 = vmax.f32 %v121_v36, %v127_v35 }
  0x1e   :  { %140 = vst.msk [vmem:[%s387_s9 + $0x28] sm:$0xff] %vm135_vm0, %v133_v37 }

// kernel: pspnet2_forward.13
= control target key start
LH: loop header
LB: loop body
LE: loop exit
PB: predicated region body
PF: predicated region fallthrough
CT: control target
= control target key end

     0   :  { %s1381_s12 = smov 0   ;;  %s1681_s0 = inlined_call_operand.vmem [shape: bf16[1152,147], index: 0, kind: input, shape index: {}]   ;;  %s1682_s1 = inlined_call_operand.vmem [shape: bf16[147,128], index: 1, kind: input, shape index: {}]   ;;  %s1683_s2 = inlined_call_operand.vmem [shape: f32[1,128], index: 2, kind: input, shape index: {}]   ;;  %s1684_s3 = inlined_call_operand.vmem [shape: f32[1152,128], index: 3, kind: output, shape index: {}]  }
   0x1 LB: > { %s1012_s13 = sadd.s32 4294967295, %s1358_s12   ;;  %p1016_p0 = scmp.ge.s32.totalorder %s1358_s12, 1  ;;  %s1358_s12 = sphi %s1381_s12, %s13_s12  }
   0x2   : > { %p139_p1 = scmp.lt.s32.totalorder %s1358_s12, 4 }
   0x4   : > { %p140_p2 = pnand %p1016_p0, %p139_p1 }
   0x5   : > { %s164_s18 = smul.u32 (!%p140_p2), 48, %s1012_s13 }
   0x6   : > { %143 = sbr.rel (%p140_p2) target bundleno = 366 (0x16e), region = 32 }
   0x7   : > { %p165_p3 = scmp.lt.s32.totalorder (!%p140_p2), %s164_s18, 143 }
   0xb   : > { %v1330_v0 = vld [vmem:[%s1682_s1 + $0x38] sm:$0xff]  ;;  %v244_v1 = vld [vmem:[%s1682_s1 + $0x48] sm:$0x3]  ;;  %vm595_vm0 = vcmask 1040384   ;;  %vm596_vm1 = vcmask 1041408   ;;  %v1329_v3 = vld [vmem:[%s1682_s1 + $0x30] sm:$0xff] }
   0xc   : > { %v502_v2 = vunpack.c.l.b16 %v244_v1  ;;  %602 = vmatpush.bf16.msra.mxu0 %v1330_v0  ;;  %1332 = vmatpush.bf16.msra.mxu2 %v1330_v0  ;;  %v1360_v4 = vmov 65535   ;;  %s1686_s18 = smov (!%p165_p3, %s164_s18), 143  ;;  %v1328_v9 = vld [vmem:[%s1682_s1 + $0x28] sm:$0xff]  ;;  %v1331_v10 = vld [vmem:[%s1682_s1 + $0x40] sm:$0xff]  ;;  %vm522_vm2 = vcmask 154624   ;;  %v1326_v18 = vld [vmem:[%s1682_s1 + $0x18] sm:$0xff] }
   0xd   : > { %v597_v5 = vsel %vm595_vm0, 4294967295, %v1360_v4  ;;  %s1274_s25 = sshll.u32 %s1686_s18, 3  ;;  %v1327_v14 = vld [vmem:[%s1682_s1 + $0x20] sm:$0xff]  ;;  %v1325_v19 = vld [vmem:[%s1682_s1 + $0x10] sm:$0xff]  ;;  %v1324_v20 = vld [vmem:[%s1682_s1 + $0x8] sm:$0xff] }
   0xe   : > { %v512_v6 = vpack.c.b16 %v502_v2, %v502_v2  ;;  %v598_v7 = vsel %vm596_vm1, %v597_v5, 0  ;;  %s1412_s28 = scalar_lea.vmem %s1681_s0, %s1274_s25  ;;  %v1323_v26 = vld [vmem:[%s1682_s1] sm:$0xff]  ;;  %s1540_s17 = scalar_lea.vmem %s1684_s3, %s1274_s25 }
   0xf   : > { %v1275_v11 = vld [vmem:[%s1412_s28 + $0x4] sm:$0xf]  ;;  %v1024_v12 = vld [vmem:[%s1412_s28 + $0x8] sm:$0xf0]  ;;  %v1301_v15 = vld [vmem:[%s1412_s28 + $0xd4] sm:$0xf] }
  0x10   : > { %v600_v8 = vand.u32 %v598_v7, %v512_v6  ;;  %603 = vmatpush.bf16.msra.mxu0 %v1329_v3  ;;  %1333 = vmatpush.bf16.msra.mxu2 %v1329_v3  ;;  %v1027_v13 = vor.u32 %v1275_v11, %v1024_v12  ;;  %v1128_v16 = vld [vmem:[%s1412_s28 + $0xd8] sm:$0xf0]  ;;  %v1277_v21 = vld [vmem:[%s1412_s28 + $0x14] sm:$0xf]  ;;  %v1303_v23 = vld [vmem:[%s1412_s28 + $0xe4] sm:$0xf] }
  0x11   : > { %v1131_v17 = vor.u32 %v1301_v15, %v1128_v16  ;;  %v1032_v22 = vld [vmem:[%s1412_s28 + $0x18] sm:$0xf0]  ;;  %v1136_v24 = vld [vmem:[%s1412_s28 + $0xe8] sm:$0xf0]  ;;  %v1022_v27 = vld [vmem:[%s1412_s28] sm:$0xf] }
  0x12   : > { %737 = vmatpush.bf16.msra.mxu1 %v600_v8  ;;  %1340 = vmatpush.bf16.msra.mxu3 %v600_v8  ;;  %v1035_v25 = vor.u32 %v1277_v21, %v1032_v22  ;;  %v1276_v28 = vld [vmem:[%s1412_s28 + $0x4] sm:$0xf0]  ;;  %v1118_v29 = vld [vmem:[%s1412_s28 + $0xc0] sm:$0xf]  ;;  %v1139_v31 = vor.u32 %v1303_v23, %v1136_v24  ;;  %v1279_v34 = vld [vmem:[%s1412_s28 + $0x24] sm:$0xf] }
  0x13   : > { %v1300_v30 = vld [vmem:[%s1412_s28 + $0xc4] sm:$0xf0]  ;;  %v1023_v32 = vor.u32 %v1276_v28, %v1022_v27  ;;  %v1040_v35 = vld [vmem:[%s1412_s28 + $0x28] sm:$0xf0]  ;;  %v1305_v36 = vld [vmem:[%s1412_s28 + $0xf4] sm:$0xf] }
  0x14   : > { %604 = vmatpush.bf16.msra.mxu0 %v1328_v9  ;;  %1334 = vmatpush.bf16.msra.mxu2 %v1328_v9  ;;  %v1119_v33 = vor.u32 %v1300_v30, %v1118_v29  ;;  %v1144_v37 = vld [vmem:[%s1412_s28 + $0xf8] sm:$0xf0]  ;;  %v1043_v38 = vor.u32 %v1279_v34, %v1040_v35  ;;  %v1030_v39 = vld [vmem:[%s1412_s28 + $0x10] sm:$0xf]  ;;  %v1278_v40 = vld [vmem:[%s1412_s28 + $0x14] sm:$0xf0] }
  0x15   : > { %v1126_v41 = vld [vmem:[%s1412_s28 + $0xd0] sm:$0xf]  ;;  %v1302_v42 = vld [vmem:[%s1412_s28 + $0xd4] sm:$0xf0]  ;;  %v1147_v43 = vor.u32 %v1305_v36, %v1144_v37  ;;  %v1031_v44 = vor.u32 %v1278_v40, %v1030_v39  ;;  %v1281_v46 = vld [vmem:[%s1412_s28 + $0x34] sm:$0xf] }
  0x16   : > { %738 = vmatpush.bf16.msra.mxu1 %v1331_v10  ;;  %1341 = vmatpush.bf16.msra.mxu3 %v1331_v10  ;;  %v1127_v45 = vor.u32 %v1302_v42, %v1126_v41  ;;  %v1048_v47 = vld [vmem:[%s1412_s28 + $0x38] sm:$0xf0]  ;;  %v1307_v48 = vld [vmem:[%s1412_s28 + $0x104] sm:$0xf]  ;;  %v1152_v49 = vld [vmem:[%s1412_s28 + $0x108] sm:$0xf0] }
  0x17   : > { %v1051_v50 = vor.u32 %v1281_v46, %v1048_v47  ;;  %v1038_v51 = vld [vmem:[%s1412_s28 + $0x20] sm:$0xf]  ;;  %v1280_v52 = vld [vmem:[%s1412_s28 + $0x24] sm:$0xf0]  ;;  %v1155_v55 = vor.u32 %v1307_v48, %v1152_v49  ;;  %v1283_v58 = vld [vmem:[%s1412_s28 + $0x44] sm:$0xf] }
  0x18   : > { %605 = vmatpush.bf16.msra.mxu0 %v1327_v14  ;;  %1335 = vmatpush.bf16.msra.mxu2 %v1327_v14  ;;  %v1134_v53 = vld [vmem:[%s1412_s28 + $0xe0] sm:$0xf]  ;;  %v1304_v54 = vld [vmem:[%s1412_s28 + $0xe4] sm:$0xf0]  ;;  %v1039_v56 = vor.u32 %v1280_v52, %v1038_v51  ;;  %v1056_v59 = vld [vmem:[%s1412_s28 + $0x48] sm:$0xf0] }
  0x19   : > { %1248 = vmatmul.msk.bf16.vlgmr.msra.gmra.mxu1 %vm522_vm2, %v1027_v13  ;;  %1261 = vmatmul.msk.bf16.vlgmr.msra.gmra.mxu3 %vm522_vm2, %v1131_v17  ;;  %v1135_v57 = vor.u32 %v1304_v54, %v1134_v53  ;;  %v1309_v60 = vld [vmem:[%s1412_s28 + $0x114] sm:$0xf]  ;;  %v1160_v61 = vld [vmem:[%s1412_s28 + $0x118] sm:$0xf0]  ;;  %v1059_v62 = vor.u32 %v1283_v58, %v1056_v59  ;;  %v1046_v63 = vld [vmem:[%s1412_s28 + $0x30] sm:$0xf] }
  0x1a   : > { %v1282_v0 = vld [vmem:[%s1412_s28 + $0x34] sm:$0xf0]  ;;  %v1142_v1 = vld [vmem:[%s1412_s28 + $0xf0] sm:$0xf]  ;;  %v1163_v3 = vor.u32 %v1309_v60, %v1160_v61  ;;  %v1285_v6 = vld [vmem:[%s1412_s28 + $0x54] sm:$0xf] }
  0x1b   : > { %v1306_v2 = vld [vmem:[%s1412_s28 + $0xf4] sm:$0xf0]  ;;  %v1047_v4 = vor.u32 %v1282_v0, %v1046_v63  ;;  %v1064_v7 = vld [vmem:[%s1412_s28 + $0x58] sm:$0xf0]  ;;  %v1311_v8 = vld [vmem:[%s1412_s28 + $0x124] sm:$0xf] }
  0x1c   : > { %606 = vmatpush.bf16.msra.mxu0 %v1326_v18  ;;  %1336 = vmatpush.bf16.msra.mxu2 %v1326_v18  ;;  %v1143_v5 = vor.u32 %v1306_v2, %v1142_v1  ;;  %v1168_v9 = vld [vmem:[%s1412_s28 + $0x128] sm:$0xf0]  ;;  %v1067_v10 = vor.u32 %v1285_v6, %v1064_v7  ;;  %v1054_v11 = vld [vmem:[%s1412_s28 + $0x40] sm:$0xf]  ;;  %v1284_v12 = vld [vmem:[%s1412_s28 + $0x44] sm:$0xf0] }
  0x1d   : > { %v1150_v13 = vld [vmem:[%s1412_s28 + $0x100] sm:$0xf]  ;;  %v1308_v14 = vld [vmem:[%s1412_s28 + $0x104] sm:$0xf0]  ;;  %v1171_v15 = vor.u32 %v1311_v8, %v1168_v9  ;;  %v1055_v16 = vor.u32 %v1284_v12, %v1054_v11  ;;  %v1287_v18 = vld [vmem:[%s1412_s28 + $0x64] sm:$0xf] }
  0x1e   : > { %v1151_v17 = vor.u32 %v1308_v14, %v1150_v13  ;;  %v1176_v21 = vld [vmem:[%s1412_s28 + $0x138] sm:$0xf0]  ;;  %v1062_v23 = vld [vmem:[%s1412_s28 + $0x50] sm:$0xf]  ;;  %v1286_v24 = vld [vmem:[%s1412_s28 + $0x54] sm:$0xf0] }
  0x1f   : > { %v1063_v28 = vor.u32 %v1286_v24, %v1062_v23  ;;  %v1289_v30 = vld [vmem:[%s1412_s28 + $0x74] sm:$0xf]  ;;  %v1070_v35 = vld [vmem:[%s1412_s28 + $0x60] sm:$0xf]  ;;  %v1288_v36 = vld [vmem:[%s1412_s28 + $0x64] sm:$0xf0] }
  0x20   : > { %607 = vmatpush.bf16.msra.mxu0 %v1325_v19  ;;  %1337 = vmatpush.bf16.msra.mxu2 %v1325_v19  ;;  %v1072_v19 = vld [vmem:[%s1412_s28 + $0x68] sm:$0xf0]  ;;  %v1166_v37 = vld [vmem:[%s1412_s28 + $0x120] sm:$0xf]  ;;  %v1071_v40 = vor.u32 %v1288_v36, %v1070_v35  ;;  %v1291_v42 = vld [vmem:[%s1412_s28 + $0x84] sm:$0xf] }
  0x21   : > { %v1075_v22 = vor.u32 %v1287_v18, %v1072_v19  ;;  %v1078_v47 = vld [vmem:[%s1412_s28 + $0x70] sm:$0xf]  ;;  %v1290_v48 = vld [vmem:[%s1412_s28 + $0x74] sm:$0xf0]  ;;  %v1096_v58 = vld [vmem:[%s1412_s28 + $0x98] sm:$0xf0] }
  0x22   : > { %v1314_v51 = vld [vmem:[%s1412_s28 + $0x134] sm:$0xf0]  ;;  %v1079_v53 = vor.u32 %v1290_v48, %v1078_v47  ;;  %v1319_v59 = vld [vmem:[%s1412_s28 + $0x164] sm:$0xf]  ;;  %v1200_v60 = vld [vmem:[%s1412_s28 + $0x168] sm:$0xf0] }
  0x23   : > { %v1292_v63 = vld [vmem:[%s1412_s28 + $0x84] sm:$0xf0]  ;;  %v1528_v2 = vld [vmem:[%s1683_s2] ss:$0 sm:$0xff]  ;;  %v1104_v18 = vld [vmem:[%s1412_s28 + $0xa8] sm:$0xf0] }
  0x24   : > { %608 = vmatpush.bf16.msra.mxu0 %v1324_v20  ;;  %1338 = vmatpush.bf16.msra.mxu2 %v1324_v20  ;;  %v1313_v20 = vld [vmem:[%s1412_s28 + $0x134] sm:$0xf]  ;;  %v1094_v23 = vld [vmem:[%s1412_s28 + $0x90] sm:$0xf]  ;;  %v1294_v24 = vld [vmem:[%s1412_s28 + $0x94] sm:$0xf0] }
  0x25   : > { %v1179_v27 = vor.u32 %v1313_v20, %v1176_v21  ;;  %v1321_v20 = vld [vmem:[%s1412_s28 + $0x174] sm:$0xf]  ;;  %v1208_v21 = vld [vmem:[%s1412_s28 + $0x178] sm:$0xf0] }
  0x28   : > { %609 = vmatpush.bf16.msra.mxu0 %v1323_v26  ;;  %1339 = vmatpush.bf16.msra.mxu2 %v1323_v26  ;;  %v1310_v26 = vld [vmem:[%s1412_s28 + $0x114] sm:$0xf0] }
  0x29   : > { %1249 = vmatmul.msk.bf16.gmra.mxu1 %vm522_vm2, %v1035_v25  ;;  %1262 = vmatmul.msk.bf16.gmra.mxu3 %vm522_vm2, %v1139_v31  ;;  %v1158_v25 = vld [vmem:[%s1412_s28 + $0x110] sm:$0xf]  ;;  %v1080_v31 = vld [vmem:[%s1412_s28 + $0x78] sm:$0xf0] }
  0x2a   : > { %v1159_v29 = vor.u32 %v1310_v26, %v1158_v25  ;;  %v1083_v34 = vor.u32 %v1289_v30, %v1080_v31  ;;  %v1211_v30 = vor.u32 %v1321_v20, %v1208_v21 }
  0x2b   : > { %610 = vmatmul.bf16.vlgmr.msra.gmra.mxu0 %v1023_v32  ;;  %670 = vmatmul.bf16.vlgmr.msra.gmra.mxu2 %v1119_v33  ;;  %v1315_v32 = vld [vmem:[%s1412_s28 + $0x144] sm:$0xf]  ;;  %v1184_v33 = vld [vmem:[%s1412_s28 + $0x148] sm:$0xf0] }
  0x2c   : > { %v1187_v39 = vor.u32 %v1315_v32, %v1184_v33  ;;  %v1095_v32 = vor.u32 %v1294_v24, %v1094_v23  ;;  %v1322_v23 = vld [vmem:[%s1412_s28 + $0x174] sm:$0xf0] }
  0x39   : > { %1250 = vmatmul.msk.bf16.gmra.mxu1 %vm522_vm2, %v1043_v38  ;;  %1263 = vmatmul.msk.bf16.gmra.mxu3 %vm522_vm2, %v1147_v43  ;;  %v1312_v38 = vld [vmem:[%s1412_s28 + $0x124] sm:$0xf0]  ;;  %v1088_v43 = vld [vmem:[%s1412_s28 + $0x88] sm:$0xf0] }
  0x3a   : > { %v1167_v41 = vor.u32 %v1312_v38, %v1166_v37  ;;  %v1091_v46 = vor.u32 %v1291_v42, %v1088_v43 }
  0x3b   : > { %615 = vmatmul.bf16.gmra.mxu0 %v1031_v44  ;;  %675 = vmatmul.bf16.gmra.mxu2 %v1127_v45  ;;  %v1317_v44 = vld [vmem:[%s1412_s28 + $0x154] sm:$0xf]  ;;  %v1192_v45 = vld [vmem:[%s1412_s28 + $0x158] sm:$0xf0] }
  0x3c   : > { %v1195_v52 = vor.u32 %v1317_v44, %v1192_v45  ;;  %v1297_v44 = vld [vmem:[%s1412_s28 + $0xb4] sm:$0xf]  ;;  %v1112_v45 = vld [vmem:[%s1412_s28 + $0xb8] sm:$0xf0] }
  0x49   : > { %1251 = vmatmul.msk.bf16.gmra.mxu1 %vm522_vm2, %v1051_v50  ;;  %1264 = vmatmul.msk.bf16.gmra.mxu3 %vm522_vm2, %v1155_v55  ;;  %v1174_v50 = vld [vmem:[%s1412_s28 + $0x130] sm:$0xf] }
  0x4a   : > { %v1175_v54 = vor.u32 %v1314_v51, %v1174_v50  ;;  %v1102_v50 = vld [vmem:[%s1412_s28 + $0xa0] sm:$0xf]  ;;  %v1296_v51 = vld [vmem:[%s1412_s28 + $0xa4] sm:$0xf0] }
  0x4b   : > { %620 = vmatmul.bf16.gmra.mxu0 %v1039_v56  ;;  %680 = vmatmul.bf16.gmra.mxu2 %v1135_v57  ;;  %v1293_v57 = vld [vmem:[%s1412_s28 + $0x94] sm:$0xf] }
  0x4c   : > { %v1099_v61 = vor.u32 %v1293_v57, %v1096_v58  ;;  %v1103_v58 = vor.u32 %v1296_v51, %v1102_v50 }
  0x59   : > { %1252 = vmatmul.msk.bf16.gmra.mxu1 %vm522_vm2, %v1059_v62  ;;  %1265 = vmatmul.msk.bf16.gmra.mxu3 %vm522_vm2, %v1163_v3  ;;  %v1086_v62 = vld [vmem:[%s1412_s28 + $0x80] sm:$0xf] }
  0x5a   : > { %v1182_v3 = vld [vmem:[%s1412_s28 + $0x140] sm:$0xf]  ;;  %v1087_v6 = vor.u32 %v1292_v63, %v1086_v62 }
  0x5b   : > { %625 = vmatmul.bf16.gmra.mxu0 %v1047_v4  ;;  %685 = vmatmul.bf16.gmra.mxu2 %v1143_v5  ;;  %v1316_v4 = vld [vmem:[%s1412_s28 + $0x144] sm:$0xf0]  ;;  %v1203_v5 = vor.u32 %v1319_v59, %v1200_v60 }
  0x5c   : > { %v1183_v8 = vor.u32 %v1316_v4, %v1182_v3 }
  0x69   : > { %1253 = vmatmul.msk.bf16.gmra.mxu1 %vm522_vm2, %v1067_v10  ;;  %1266 = vmatmul.msk.bf16.gmra.mxu3 %vm522_vm2, %v1171_v15 }
  0x6b   : > { %630 = vmatmul.bf16.gmra.mxu0 %v1055_v16  ;;  %690 = vmatmul.bf16.gmra.mxu2 %v1151_v17  ;;  %v1295_v17 = vld [vmem:[%s1412_s28 + $0xa4] sm:$0xf] }
  0x79   : > { %1254 = vmatmul.msk.bf16.gmra.mxu1 %vm522_vm2, %v1075_v22  ;;  %1267 = vmatmul.msk.bf16.gmra.mxu3 %vm522_vm2, %v1179_v27  ;;  %v1107_v22 = vor.u32 %v1295_v17, %v1104_v18  ;;  %v1190_v27 = vld [vmem:[%s1412_s28 + $0x150] sm:$0xf] }
  0x7a   : > { %v1110_v18 = vld [vmem:[%s1412_s28 + $0xb0] sm:$0xf] }
  0x7b   : > { %635 = vmatmul.bf16.gmra.mxu0 %v1063_v28  ;;  %695 = vmatmul.bf16.gmra.mxu2 %v1159_v29  ;;  %v1318_v28 = vld [vmem:[%s1412_s28 + $0x154] sm:$0xf0] }
  0x89   : > { %1255 = vmatmul.msk.bf16.gmra.mxu1 %vm522_vm2, %v1083_v34  ;;  %1268 = vmatmul.msk.bf16.gmra.mxu3 %vm522_vm2, %v1187_v39  ;;  %v1191_v34 = vor.u32 %v1318_v28, %v1190_v27 }
  0x8b   : > { %640 = vmatmul.bf16.gmra.mxu0 %v1071_v40  ;;  %700 = vmatmul.bf16.gmra.mxu2 %v1167_v41 }
  0x96   : > { %v740_v49 = vpop.f32.mrf.mxu1 }
  0x99   : > { %1256 = vmatmul.msk.bf16.gmra.mxu1 %vm522_vm2, %v1091_v46  ;;  %1269 = vmatmul.msk.bf16.gmra.mxu3 %vm522_vm2, %v1195_v52 }
  0x9b   : > { %645 = vmatmul.bf16.gmra.mxu0 %v1079_v53  ;;  %705 = vmatmul.bf16.gmra.mxu2 %v1175_v54  ;;  %v1198_v54 = vld [vmem:[%s1412_s28 + $0x160] sm:$0xf] }
  0x9c   : > { %v1515_v55 = vpop.f32.mrf.mxu3 }
  0x9e   : > { %v742_v56 = vpop.f32.mrf.mxu1 }
  0xa4   : > { %v1523_v0 = vpop.f32.mrf.mxu3 }
  0xa6   : > { %v745_v1 = vpop.f32.mrf.mxu1 }
  0xa8   : > { %v611_v7 = vpop.f32.mrf.mxu0 }
  0xa9   : > { %1257 = vmatmul.msk.bf16.gmra.mxu1 %vm522_vm2, %v1099_v61  ;;  %v612_v9 = vadd.f32 %v1528_v2, %v611_v7  ;;  %1270 = vmatmul.msk.bf16.gmra.mxu3 %vm522_vm2, %v1203_v5 }
  0xab   : > { %v741_v10 = vadd.f32 %v740_v49, %v612_v9  ;;  %650 = vmatmul.bf16.gmra.mxu0 %v1087_v6  ;;  %710 = vmatmul.bf16.gmra.mxu2 %v1183_v8  ;;  %v1115_v49 = vor.u32 %v1297_v44, %v1112_v45  ;;  %v1299_v9 = vld [vmem:[%s1412_s28 + $0xc4] sm:$0xf] }
  0xac   : > { %v1542_v11 = vpop.f32.mrf.mxu3 }
  0xad   : > { %v860_v12 = vmax.f32 %v741_v10, 0.0  ;;  %v1120_v10 = vld [vmem:[%s1412_s28 + $0xc8] sm:$0xf0] }
  0xae   : > { %v747_v13 = vpop.f32.mrf.mxu1  ;;  %v1545_v14 = vpop.f32.mrf.mxu2  ;;  %v1123_v17 = vor.u32 %v1299_v9, %v1120_v10 }
  0xaf   : > { %908 = vst [vmem:[%s1540_s17] sm:$0xff] %v860_v12 }
  0xb0   : > { %v613_v15 = vpop.f32.mrf.mxu0 }
  0xb1   : > { %v614_v16 = vadd.f32 %v1528_v2, %v613_v15 }
  0xb3   : > { %v743_v19 = vadd.f32 %v742_v56, %v614_v16  ;;  %v1320_v56 = vld [vmem:[%s1412_s28 + $0x164] sm:$0xf0] }
  0xb4   : > { %v1556_v29 = vpop.f32.mrf.mxu3  ;;  %v1199_v60 = vor.u32 %v1320_v56, %v1198_v54 }
  0xb5   : > { %v861_v25 = vmax.f32 %v743_v19, 0.0  ;;  %v1298_v19 = vld [vmem:[%s1412_s28 + $0xb4] sm:$0xf0] }
  0xb6   : > { %v750_v26 = vpop.f32.mrf.mxu1  ;;  %v1559_v31 = vpop.f32.mrf.mxu2 }
  0xb7   : > { %909 = vst [vmem:[%s1540_s17 + $0x8] sm:$0xff] %v861_v25  ;;  %v1111_v25 = vor.u32 %v1298_v19, %v1110_v18 }
  0xb8   : > { %v616_v33 = vpop.f32.mrf.mxu0 }
  0xb9   : > { %1258 = vmatmul.msk.bf16.gmra.mxu1 %vm522_vm2, %v1107_v22  ;;  %v617_v35 = vadd.f32 %v1528_v2, %v616_v33  ;;  %1271 = vmatmul.msk.bf16.gmra.mxu3 %vm522_vm2, %v1211_v30  ;;  %v1206_v22 = vld [vmem:[%s1412_s28 + $0x170] sm:$0xf] }
  0xba   : > { %v1207_v27 = vor.u32 %v1322_v23, %v1206_v22 }
  0xbb   : > { %v746_v36 = vadd.f32 %v745_v1, %v617_v35  ;;  %655 = vmatmul.bf16.gmra.mxu0 %v1095_v32  ;;  %715 = vmatmul.bf16.gmra.mxu2 %v1191_v34 }
  0xbc   : > { %v1565_v40 = vpop.f32.mrf.mxu3 }
  0xbd   : > { %v862_v37 = vmax.f32 %v746_v36, 0.0 }
  0xbe   : > { %v752_v38 = vpop.f32.mrf.mxu1  ;;  %v676_v39 = vpop.f32.mrf.mxu2 }
  0xbf   : > { %910 = vst [vmem:[%s1540_s17 + $0x10] sm:$0xff] %v862_v37  ;;  %v677_v41 = vadd.f32 %v1528_v2, %v676_v39 }
  0xc0   : > { %v618_v42 = vpop.f32.mrf.mxu0 }
  0xc1   : > { %v619_v43 = vadd.f32 %v1528_v2, %v618_v42  ;;  %v806_v46 = vadd.f32 %v1515_v55, %v677_v41 }
  0xc3   : > { %v748_v47 = vadd.f32 %v747_v13, %v619_v43  ;;  %v886_v48 = vmax.f32 %v806_v46, 0.0 }
  0xc4   : > { %v817_v62 = vpop.f32.mrf.mxu3 }
  0xc5   : > { %v863_v52 = vmax.f32 %v748_v47, 0.0  ;;  %934 = vst [vmem:[%s1540_s17 + $0xd0] sm:$0xff] %v886_v48 }
  0xc6   : > { %v755_v53 = vpop.f32.mrf.mxu1  ;;  %v678_v57 = vpop.f32.mrf.mxu2 }
  0xc7   : > { %911 = vst [vmem:[%s1540_s17 + $0x18] sm:$0xff] %v863_v52  ;;  %v679_v59 = vadd.f32 %v1528_v2, %v678_v57 }
  0xc8   : > { %v621_v55 = vpop.f32.mrf.mxu0 }
  0xc9   : > { %1259 = vmatmul.msk.bf16.gmra.mxu1 %vm522_vm2, %v1115_v49  ;;  %v622_v61 = vadd.f32 %v1528_v2, %v621_v55  ;;  %v808_v63 = vadd.f32 %v1523_v0, %v679_v59 }
  0xcb   : > { %v751_v1 = vadd.f32 %v750_v26, %v622_v61  ;;  %660 = vmatmul.bf16.gmra.mxu0 %v1103_v58  ;;  %v887_v3 = vmax.f32 %v808_v63, 0.0  ;;  %720 = vmatmul.bf16.gmra.mxu2 %v1199_v60 }
  0xcc   : > { %v820_v15 = vpop.f32.mrf.mxu3 }
  0xcd   : > { %v864_v4 = vmax.f32 %v751_v1, 0.0  ;;  %935 = vst [vmem:[%s1540_s17 + $0xd8] sm:$0xff] %v887_v3 }
  0xce   : > { %v757_v5 = vpop.f32.mrf.mxu1  ;;  %v681_v6 = vpop.f32.mrf.mxu2 }
  0xcf   : > { %912 = vst [vmem:[%s1540_s17 + $0x20] sm:$0xff] %v864_v4  ;;  %v682_v7 = vadd.f32 %v1528_v2, %v681_v6 }
  0xd0   : > { %v623_v8 = vpop.f32.mrf.mxu0 }
  0xd1   : > { %v624_v0 = vadd.f32 %v1528_v2, %v623_v8  ;;  %v811_v12 = vadd.f32 %v1542_v11, %v682_v7 }
  0xd3   : > { %v753_v13 = vadd.f32 %v752_v38, %v624_v0  ;;  %v888_v16 = vmax.f32 %v811_v12, 0.0 }
  0xd4   : > { %v822_v36 = vpop.f32.mrf.mxu3 }
  0xd5   : > { %v865_v20 = vmax.f32 %v753_v13, 0.0  ;;  %936 = vst [vmem:[%s1540_s17 + $0xe0] sm:$0xff] %v888_v16 }
  0xd6   : > { %v760_v21 = vpop.f32.mrf.mxu1  ;;  %v683_v24 = vpop.f32.mrf.mxu2 }
  0xd7   : > { %913 = vst [vmem:[%s1540_s17 + $0x28] sm:$0xff] %v865_v20  ;;  %v684_v26 = vadd.f32 %v1528_v2, %v683_v24 }
  0xd8   : > { %v626_v11 = vpop.f32.mrf.mxu0 }
  0xd9   : > { %1260 = vmatmul.msk.bf16.gmra.mxu1 %vm522_vm2, %v1123_v17  ;;  %v627_v28 = vadd.f32 %v1528_v2, %v626_v11  ;;  %v813_v30 = vadd.f32 %v1556_v29, %v684_v26 }
  0xdb   : > { %v756_v32 = vadd.f32 %v755_v53, %v627_v28  ;;  %665 = vmatmul.bf16.gmra.mxu0 %v1111_v25  ;;  %v889_v33 = vmax.f32 %v813_v30, 0.0  ;;  %725 = vmatmul.bf16.gmra.mxu2 %v1207_v27 }
  0xdc   : > { %v825_v47 = vpop.f32.mrf.mxu3 }
  0xdd   : > { %v866_v34 = vmax.f32 %v756_v32, 0.0  ;;  %937 = vst [vmem:[%s1540_s17 + $0xe8] sm:$0xff] %v889_v33 }
  0xde   : > { %v762_v35 = vpop.f32.mrf.mxu1  ;;  %v686_v37 = vpop.f32.mrf.mxu2 }
  0xdf   : > { %914 = vst [vmem:[%s1540_s17 + $0x30] sm:$0xff] %v866_v34  ;;  %v687_v38 = vadd.f32 %v1528_v2, %v686_v37 }
  0xe0   : > { %v628_v39 = vpop.f32.mrf.mxu0 }
  0xe1   : > { %v629_v41 = vadd.f32 %v1528_v2, %v628_v39  ;;  %v816_v42 = vadd.f32 %v1565_v40, %v687_v38 }
  0xe3   : > { %v758_v29 = vadd.f32 %v757_v5, %v629_v41  ;;  %v890_v43 = vmax.f32 %v816_v42, 0.0 }
  0xe4   : > { %v827_v55 = vpop.f32.mrf.mxu3 }
  0xe5   : > { %v867_v44 = vmax.f32 %v758_v29, 0.0  ;;  %938 = vst [vmem:[%s1540_s17 + $0xf0] sm:$0xff] %v890_v43 }
  0xe6   : > { %v765_v45 = vpop.f32.mrf.mxu1  ;;  %v688_v46 = vpop.f32.mrf.mxu2 }
  0xe7   : > { %915 = vst [vmem:[%s1540_s17 + $0x38] sm:$0xff] %v867_v44  ;;  %v689_v48 = vadd.f32 %v1528_v2, %v688_v46 }
  0xe8   : > { %v631_v49 = vpop.f32.mrf.mxu0 }
  0xe9   : > { %v632_v50 = vadd.f32 %v1528_v2, %v631_v49  ;;  %v818_v51 = vadd.f32 %v817_v62, %v689_v48 }
  0xeb   : > { %v761_v52 = vadd.f32 %v760_v21, %v632_v50  ;;  %v891_v53 = vmax.f32 %v818_v51, 0.0 }
  0xec   : > { %v830_v0 = vpop.f32.mrf.mxu3 }
  0xed   : > { %v868_v40 = vmax.f32 %v761_v52, 0.0  ;;  %939 = vst [vmem:[%s1540_s17 + $0xf8] sm:$0xff] %v891_v53 }
  0xee   : > { %v767_v54 = vpop.f32.mrf.mxu1  ;;  %v691_v56 = vpop.f32.mrf.mxu2 }
  0xef   : > { %916 = vst [vmem:[%s1540_s17 + $0x40] sm:$0xff] %v868_v40  ;;  %v692_v57 = vadd.f32 %v1528_v2, %v691_v56 }
  0xf0   : > { %v633_v58 = vpop.f32.mrf.mxu0 }
  0xf1   : > { %v634_v59 = vadd.f32 %v1528_v2, %v633_v58  ;;  %v821_v60 = vadd.f32 %v820_v15, %v692_v57 }
  0xf3   : > { %v763_v61 = vadd.f32 %v762_v35, %v634_v59  ;;  %v892_v63 = vmax.f32 %v821_v60, 0.0 }
  0xf4   : > { %v832_v23 = vpop.f32.mrf.mxu3 }
  0xf5   : > { %v869_v62 = vmax.f32 %v763_v61, 0.0  ;;  %940 = vst [vmem:[%s1540_s17 + $0x100] sm:$0xff] %v892_v63 }
  0xf6   : > { %v770_v1 = vpop.f32.mrf.mxu1  ;;  %v693_v3 = vpop.f32.mrf.mxu2 }
  0xf7   : > { %917 = vst [vmem:[%s1540_s17 + $0x48] sm:$0xff] %v869_v62  ;;  %v694_v4 = vadd.f32 %v1528_v2, %v693_v3 }
  0xf8   : > { %v636_v5 = vpop.f32.mrf.mxu0 }
  0xf9   : > { %v637_v6 = vadd.f32 %v1528_v2, %v636_v5  ;;  %v823_v7 = vadd.f32 %v822_v36, %v694_v4 }
  0xfb   : > { %v766_v8 = vadd.f32 %v765_v45, %v637_v6  ;;  %v893_v9 = vmax.f32 %v823_v7, 0.0 }
  0xfc   : > { %v835_v35 = vpop.f32.mrf.mxu3 }
  0xfd   : > { %v870_v10 = vmax.f32 %v766_v8, 0.0  ;;  %941 = vst [vmem:[%s1540_s17 + $0x108] sm:$0xff] %v893_v9 }
  0xfe   : > { %v772_v12 = vpop.f32.mrf.mxu1  ;;  %v696_v13 = vpop.f32.mrf.mxu2 }
  0xff   : > { %918 = vst [vmem:[%s1540_s17 + $0x50] sm:$0xff] %v870_v10  ;;  %v697_v15 = vadd.f32 %v1528_v2, %v696_v13 }
 0x100   : > { %v638_v16 = vpop.f32.mrf.mxu0 }
 0x101   : > { %v639_v17 = vadd.f32 %v1528_v2, %v638_v16  ;;  %v826_v18 = vadd.f32 %v825_v47, %v697_v15 }
 0x103   : > { %v768_v19 = vadd.f32 %v767_v54, %v639_v17  ;;  %v894_v20 = vmax.f32 %v826_v18, 0.0 }
 0x104   : > { %v837_v48 = vpop.f32.mrf.mxu3 }
 0x105   : > { %v871_v21 = vmax.f32 %v768_v19, 0.0  ;;  %942 = vst [vmem:[%s1540_s17 + $0x110] sm:$0xff] %v894_v20 }
 0x106   : > { %v775_v22 = vpop.f32.mrf.mxu1  ;;  %v698_v24 = vpop.f32.mrf.mxu2 }
 0x107   : > { %919 = vst [vmem:[%s1540_s17 + $0x58] sm:$0xff] %v871_v21  ;;  %v699_v25 = vadd.f32 %v1528_v2, %v698_v24 }
 0x108   : > { %v641_v26 = vpop.f32.mrf.mxu0 }
 0x109   : > { %v642_v11 = vadd.f32 %v1528_v2, %v641_v26  ;;  %v828_v27 = vadd.f32 %v827_v55, %v699_v25 }
 0x10b   : > { %v771_v28 = vadd.f32 %v770_v1, %v642_v11  ;;  %v895_v30 = vmax.f32 %v828_v27, 0.0 }
 0x10c   : > { %v840_v55 = vpop.f32.mrf.mxu3 }
 0x10d   : > { %v872_v32 = vmax.f32 %v771_v28, 0.0  ;;  %943 = vst [vmem:[%s1540_s17 + $0x118] sm:$0xff] %v895_v30 }
 0x10e   : > { %v777_v33 = vpop.f32.mrf.mxu1  ;;  %v701_v34 = vpop.f32.mrf.mxu2 }
 0x10f   : > { %920 = vst [vmem:[%s1540_s17 + $0x60] sm:$0xff] %v872_v32  ;;  %v702_v36 = vadd.f32 %v1528_v2, %v701_v34 }
 0x110   : > { %v643_v37 = vpop.f32.mrf.mxu0 }
 0x111   : > { %v644_v38 = vadd.f32 %v1528_v2, %v643_v37  ;;  %v831_v39 = vadd.f32 %v830_v0, %v702_v36 }
 0x113   : > { %v773_v41 = vadd.f32 %v772_v12, %v644_v38  ;;  %v896_v42 = vmax.f32 %v831_v39, 0.0 }
 0x114   : > { %v842_v9 = vpop.f32.mrf.mxu3 }
 0x115   : > { %v873_v29 = vmax.f32 %v773_v41, 0.0  ;;  %944 = vst [vmem:[%s1540_s17 + $0x120] sm:$0xff] %v896_v42 }
 0x116   : > { %v780_v43 = vpop.f32.mrf.mxu1  ;;  %v703_v44 = vpop.f32.mrf.mxu2 }
 0x117   : > { %921 = vst [vmem:[%s1540_s17 + $0x68] sm:$0xff] %v873_v29  ;;  %v704_v45 = vadd.f32 %v1528_v2, %v703_v44 }
 0x118   : > { %v646_v46 = vpop.f32.mrf.mxu0 }
 0x119   : > { %v647_v47 = vadd.f32 %v1528_v2, %v646_v46  ;;  %v833_v49 = vadd.f32 %v832_v23, %v704_v45 }
 0x11b   : > { %v776_v50 = vadd.f32 %v775_v22, %v647_v47  ;;  %v897_v51 = vmax.f32 %v833_v49, 0.0 }
 0x11c   : > { %v845_v22 = vpop.f32.mrf.mxu3 }
 0x11d   : > { %v874_v52 = vmax.f32 %v776_v50, 0.0  ;;  %945 = vst [vmem:[%s1540_s17 + $0x128] sm:$0xff] %v897_v51 }
 0x11e   : > { %v782_v53 = vpop.f32.mrf.mxu1  ;;  %v706_v40 = vpop.f32.mrf.mxu2 }
 0x11f   : > { %922 = vst [vmem:[%s1540_s17 + $0x70] sm:$0xff] %v874_v52  ;;  %v707_v54 = vadd.f32 %v1528_v2, %v706_v40 }
 0x120   : > { %v648_v56 = vpop.f32.mrf.mxu0 }
 0x121   : > { %v649_v57 = vadd.f32 %v1528_v2, %v648_v56  ;;  %v836_v58 = vadd.f32 %v835_v35, %v707_v54 }
 0x123   : > { %v778_v59 = vadd.f32 %v777_v33, %v649_v57  ;;  %v898_v60 = vmax.f32 %v836_v58, 0.0  ;;  %v672_v58 = vadd.f32 %v1528_v2, %v1545_v14 }
 0x124   : > { %v847_v36 = vpop.f32.mrf.mxu3 }
 0x125   : > { %v875_v61 = vmax.f32 %v778_v59, 0.0  ;;  %946 = vst [vmem:[%s1540_s17 + $0x130] sm:$0xff] %v898_v60 }
 0x126   : > { %v785_v63 = vpop.f32.mrf.mxu1  ;;  %v708_v62 = vpop.f32.mrf.mxu2 }
 0x127   : > { %923 = vst [vmem:[%s1540_s17 + $0x78] sm:$0xff] %v875_v61  ;;  %v709_v1 = vadd.f32 %v1528_v2, %v708_v62 }
 0x128   : > { %v651_v3 = vpop.f32.mrf.mxu0 }
 0x129   : > { %v652_v4 = vadd.f32 %v1528_v2, %v651_v3  ;;  %v838_v5 = vadd.f32 %v837_v48, %v709_v1 }
 0x12b   : > { %v781_v6 = vadd.f32 %v780_v43, %v652_v4  ;;  %v899_v7 = vmax.f32 %v838_v5, 0.0 }
 0x12c   : > { %v850_v48 = vpop.f32.mrf.mxu3 }
 0x12d   : > { %v876_v8 = vmax.f32 %v781_v6, 0.0  ;;  %947 = vst [vmem:[%s1540_s17 + $0x138] sm:$0xff] %v899_v7  ;;  %v674_v7 = vadd.f32 %v1528_v2, %v1559_v31 }
 0x12e   : > { %v787_v0 = vpop.f32.mrf.mxu1  ;;  %v711_v10 = vpop.f32.mrf.mxu2 }
 0x12f   : > { %924 = vst [vmem:[%s1540_s17 + $0x80] sm:$0xff] %v876_v8  ;;  %v712_v12 = vadd.f32 %v1528_v2, %v711_v10 }
 0x130   : > { %v653_v13 = vpop.f32.mrf.mxu0 }
 0x131   : > { %v654_v15 = vadd.f32 %v1528_v2, %v653_v13  ;;  %v841_v16 = vadd.f32 %v840_v55, %v712_v12 }
 0x133   : > { %v783_v17 = vadd.f32 %v782_v53, %v654_v15  ;;  %v900_v18 = vmax.f32 %v841_v16, 0.0 }
 0x134   : > { %v852_v60 = vpop.f32.mrf.mxu3 }
 0x135   : > { %v877_v19 = vmax.f32 %v783_v17, 0.0  ;;  %948 = vst [vmem:[%s1540_s17 + $0x140] sm:$0xff] %v900_v18 }
 0x136   : > { %v790_v20 = vpop.f32.mrf.mxu1  ;;  %v713_v21 = vpop.f32.mrf.mxu2 }
 0x137   : > { %925 = vst [vmem:[%s1540_s17 + $0x88] sm:$0xff] %v877_v19  ;;  %v714_v23 = vadd.f32 %v1528_v2, %v713_v21 }
 0x138   : > { %v656_v24 = vpop.f32.mrf.mxu0 }
 0x139   : > { %v657_v25 = vadd.f32 %v1528_v2, %v656_v24  ;;  %v843_v26 = vadd.f32 %v842_v9, %v714_v23 }
 0x13b   : > { %v786_v11 = vadd.f32 %v785_v63, %v657_v25  ;;  %v901_v27 = vmax.f32 %v843_v26, 0.0 }
 0x13c   : > { %v855_v12 = vpop.f32.mrf.mxu3 }
 0x13d   : > { %v878_v28 = vmax.f32 %v786_v11, 0.0  ;;  %949 = vst [vmem:[%s1540_s17 + $0x148] sm:$0xff] %v901_v27 }
 0x13e   : > { %v792_v30 = vpop.f32.mrf.mxu1  ;;  %v716_v32 = vpop.f32.mrf.mxu2 }
 0x13f   : > { %926 = vst [vmem:[%s1540_s17 + $0x90] sm:$0xff] %v878_v28  ;;  %v717_v33 = vadd.f32 %v1528_v2, %v716_v32 }
 0x140   : > { %v658_v34 = vpop.f32.mrf.mxu0 }
 0x141   : > { %v659_v35 = vadd.f32 %v1528_v2, %v658_v34  ;;  %v846_v37 = vadd.f32 %v845_v22, %v717_v33 }
 0x143   : > { %v788_v38 = vadd.f32 %v787_v0, %v659_v35  ;;  %v902_v39 = vmax.f32 %v846_v37, 0.0 }
 0x144   : > { %v857_v24 = vpop.f32.mrf.mxu3 }
 0x145   : > { %v879_v41 = vmax.f32 %v788_v38, 0.0  ;;  %950 = vst [vmem:[%s1540_s17 + $0x150] sm:$0xff] %v902_v39 }
 0x146   : > { %v795_v42 = vpop.f32.mrf.mxu1  ;;  %v718_v29 = vpop.f32.mrf.mxu2 }
 0x147   : > { %927 = vst [vmem:[%s1540_s17 + $0x98] sm:$0xff] %v879_v41  ;;  %v719_v43 = vadd.f32 %v1528_v2, %v718_v29 }
 0x148   : > { %v661_v44 = vpop.f32.mrf.mxu0 }
 0x149   : > { %v662_v45 = vadd.f32 %v1528_v2, %v661_v44  ;;  %v848_v46 = vadd.f32 %v847_v36, %v719_v43 }
 0x14b   : > { %v791_v47 = vadd.f32 %v790_v20, %v662_v45  ;;  %v903_v49 = vmax.f32 %v848_v46, 0.0 }
 0x14d   : > { %v880_v50 = vmax.f32 %v791_v47, 0.0  ;;  %951 = vst [vmem:[%s1540_s17 + $0x158] sm:$0xff] %v903_v49 }
 0x14e   : > { %v797_v51 = vpop.f32.mrf.mxu1  ;;  %v721_v52 = vpop.f32.mrf.mxu2 }
 0x14f   : > { %928 = vst [vmem:[%s1540_s17 + $0xa0] sm:$0xff] %v880_v50  ;;  %v722_v53 = vadd.f32 %v1528_v2, %v721_v52 }
 0x150   : > { %v663_v40 = vpop.f32.mrf.mxu0 }
 0x151   : > { %v664_v54 = vadd.f32 %v1528_v2, %v663_v40  ;;  %v851_v56 = vadd.f32 %v850_v48, %v722_v53 }
 0x153   : > { %v793_v57 = vadd.f32 %v792_v30, %v664_v54  ;;  %v904_v59 = vmax.f32 %v851_v56, 0.0 }
 0x155   : > { %v881_v55 = vmax.f32 %v793_v57, 0.0  ;;  %952 = vst [vmem:[%s1540_s17 + $0x160] sm:$0xff] %v904_v59 }
 0x156   : > { %v800_v61 = vpop.f32.mrf.mxu1  ;;  %v723_v62 = vpop.f32.mrf.mxu2 }
 0x157   : > { %v801_v63 = vadd.f32 %v800_v61, %v672_v58  ;;  %929 = vst [vmem:[%s1540_s17 + $0xa8] sm:$0xff] %v881_v55  ;;  %v724_v3 = vadd.f32 %v1528_v2, %v723_v62 }
 0x158   : > { %v666_v4 = vpop.f32.mrf.mxu0 }
 0x159   : > { %v884_v1 = vmax.f32 %v801_v63, 0.0  ;;  %v667_v5 = vadd.f32 %v1528_v2, %v666_v4  ;;  %v853_v6 = vadd.f32 %v852_v60, %v724_v3 }
 0x15b   : > { %932 = vst [vmem:[%s1540_s17 + $0xc0] sm:$0xff] %v884_v1  ;;  %v796_v14 = vadd.f32 %v795_v42, %v667_v5  ;;  %v905_v8 = vmax.f32 %v853_v6, 0.0 }
 0x15d   : > { %v882_v0 = vmax.f32 %v796_v14, 0.0  ;;  %953 = vst [vmem:[%s1540_s17 + $0x168] sm:$0xff] %v905_v8 }
 0x15e   : > { %v802_v9 = vpop.f32.mrf.mxu1  ;;  %v726_v13 = vpop.f32.mrf.mxu2 }
 0x15f   : > { %v803_v10 = vadd.f32 %v802_v9, %v674_v7  ;;  %930 = vst [vmem:[%s1540_s17 + $0xb0] sm:$0xff] %v882_v0  ;;  %v727_v16 = vadd.f32 %v1528_v2, %v726_v13 }
 0x160   : > { %v668_v17 = vpop.f32.mrf.mxu0 }
 0x161   : > { %v885_v15 = vmax.f32 %v803_v10, 0.0  ;;  %v669_v18 = vadd.f32 %v1528_v2, %v668_v17  ;;  %v856_v19 = vadd.f32 %v855_v12, %v727_v16 }
 0x163   : > { %933 = vst [vmem:[%s1540_s17 + $0xc8] sm:$0xff] %v885_v15  ;;  %v798_v31 = vadd.f32 %v797_v51, %v669_v18  ;;  %v906_v20 = vmax.f32 %v856_v19, 0.0 }
 0x165   : > { %v883_v21 = vmax.f32 %v798_v31, 0.0  ;;  %954 = vst [vmem:[%s1540_s17 + $0x170] sm:$0xff] %v906_v20 }
 0x166   : > { %v728_v22 = vpop.f32.mrf.mxu2 }
 0x167   : > { %931 = vst [vmem:[%s1540_s17 + $0xb8] sm:$0xff] %v883_v21  ;;  %v729_v23 = vadd.f32 %v1528_v2, %v728_v22 }
 0x169   : > { %v858_v25 = vadd.f32 %v857_v24, %v729_v23 }
 0x16b   : > { %v907_v26 = vmax.f32 %v858_v25, 0.0 }
 0x16d   : > { %955 = vst [vmem:[%s1540_s17 + $0x178] sm:$0xff] %v907_v26 }
 0x16e PF: > { %s13_s12 = sadd.s32 1, %s1358_s12  }
 0x16f   : > { %p10_p4 = scmp.ge.s32.totalorder %s13_s12, 5  }
 0x171   :  { %12 = sbr.rel (!%p10_p4) target bundleno = 1 (0x1), region = 62 }

// kernel: pspnet2_forward.15
= control target key start
LH: loop header
LB: loop body
LE: loop exit
PB: predicated region body
PF: predicated region fallthrough
CT: control target
= control target key end

     0   :  { %vm289_vm0 = vcmask 130048   ;;  %s1307_s1 = inlined_call_operand.vmem [shape: bf16[144,128], index: 1, kind: input, shape index: {}]   ;;  %s1308_s0 = inlined_call_operand.vmem [shape: bf16[288,144], index: 0, kind: input, shape index: {}]   ;;  %s1309_s2 = inlined_call_operand.vmem [shape: f32[1,128], index: 2, kind: input, shape index: {}]   ;;  %s1310_s3 = inlined_call_operand.vmem [shape: f32[288,128], index: 3, kind: output, shape index: {}]  }
   0x1   :  { %v859_v0 = vld [vmem:[%s1307_s1 + $0x38] sm:$0xff]  ;;  %v860_v1 = vld [vmem:[%s1307_s1 + $0x40] sm:$0xff]  ;;  %v622_v3 = vld [vmem:[%s1308_s0 + $0x8] sm:$0xf0] }
   0x2   :  { %v816_v2 = vld [vmem:[%s1308_s0 + $0x4] sm:$0xf]  ;;  %344 = vmatpush.bf16.msra.mxu0 %v859_v0  ;;  %861 = vmatpush.bf16.msra.mxu2 %v859_v0  ;;  %v858_v5 = vld [vmem:[%s1307_s1 + $0x30] sm:$0xff]  ;;  %v857_v6 = vld [vmem:[%s1307_s1 + $0x28] sm:$0xff] }
   0x3   :  { %v625_v4 = vor.u32 %v816_v2, %v622_v3  ;;  %450 = vmatpush.bf16.msra.mxu1 %v860_v1  ;;  %869 = vmatpush.bf16.msra.mxu3 %v860_v1  ;;  %v836_v7 = vld [vmem:[%s1308_s0 + $0xa4] sm:$0xf]  ;;  %v702_v8 = vld [vmem:[%s1308_s0 + $0xa8] sm:$0xf0]  ;;  %v855_v11 = vld [vmem:[%s1307_s1 + $0x18] sm:$0xff] }
   0x4   :  { %v705_v9 = vor.u32 %v836_v7, %v702_v8  ;;  %v856_v10 = vld [vmem:[%s1307_s1 + $0x20] sm:$0xff]  ;;  %v818_v12 = vld [vmem:[%s1308_s0 + $0x14] sm:$0xf]  ;;  %v630_v13 = vld [vmem:[%s1308_s0 + $0x18] sm:$0xf0] }
   0x5   :  { %v633_v14 = vor.u32 %v818_v12, %v630_v13  ;;  %v854_v15 = vld [vmem:[%s1307_s1 + $0x10] sm:$0xff]  ;;  %v853_v16 = vld [vmem:[%s1307_s1 + $0x8] sm:$0xff]  ;;  %v710_v18 = vld [vmem:[%s1308_s0 + $0xb8] sm:$0xf0] }
   0x6   :  { %798 = vmatmul.msk.bf16.vlgmr.msra.gmra.mxu1 %vm289_vm0, %v625_v4  ;;  %345 = vmatpush.bf16.msra.mxu0 %v858_v5  ;;  %v838_v17 = vld [vmem:[%s1308_s0 + $0xb4] sm:$0xf]  ;;  %v852_v20 = vld [vmem:[%s1307_s1] sm:$0xff]  ;;  %v817_v22 = vld [vmem:[%s1308_s0 + $0x4] sm:$0xf0] }
   0x7   :  { %862 = vmatpush.bf16.msra.mxu2 %v858_v5  ;;  %808 = vmatmul.msk.bf16.vlgmr.msra.gmra.mxu3 %vm289_vm0, %v705_v9  ;;  %v713_v19 = vor.u32 %v838_v17, %v710_v18  ;;  %v620_v21 = vld [vmem:[%s1308_s0] sm:$0xf]  ;;  %v692_v23 = vld [vmem:[%s1308_s0 + $0x90] sm:$0xf]  ;;  %v835_v24 = vld [vmem:[%s1308_s0 + $0x94] sm:$0xf0] }
   0x8   :  { %v621_v25 = vor.u32 %v817_v22, %v620_v21  ;;  %v693_v26 = vor.u32 %v835_v24, %v692_v23  ;;  %v820_v27 = vld [vmem:[%s1308_s0 + $0x24] sm:$0xf]  ;;  %v638_v28 = vld [vmem:[%s1308_s0 + $0x28] sm:$0xf0]  ;;  %v628_v33 = vld [vmem:[%s1308_s0 + $0x10] sm:$0xf] }
   0x9   :  { %v641_v29 = vor.u32 %v820_v27, %v638_v28  ;;  %v840_v30 = vld [vmem:[%s1308_s0 + $0xc4] sm:$0xf]  ;;  %v718_v31 = vld [vmem:[%s1308_s0 + $0xc8] sm:$0xf0]  ;;  %v819_v34 = vld [vmem:[%s1308_s0 + $0x14] sm:$0xf0] }
   0xa   :  { %346 = vmatpush.bf16.msra.mxu0 %v857_v6  ;;  %v721_v32 = vor.u32 %v840_v30, %v718_v31  ;;  %v700_v35 = vld [vmem:[%s1308_s0 + $0xa0] sm:$0xf]  ;;  %v837_v36 = vld [vmem:[%s1308_s0 + $0xa4] sm:$0xf0]  ;;  %v629_v37 = vor.u32 %v819_v34, %v628_v33  ;;  %v822_v39 = vld [vmem:[%s1308_s0 + $0x34] sm:$0xf] }
   0xb   :  { %863 = vmatpush.bf16.msra.mxu2 %v857_v6  ;;  %v701_v38 = vor.u32 %v837_v36, %v700_v35  ;;  %v646_v40 = vld [vmem:[%s1308_s0 + $0x38] sm:$0xf0]  ;;  %v842_v42 = vld [vmem:[%s1308_s0 + $0xd4] sm:$0xf]  ;;  %v636_v45 = vld [vmem:[%s1308_s0 + $0x20] sm:$0xf] }
   0xc   :  { %v649_v41 = vor.u32 %v822_v39, %v646_v40  ;;  %v726_v43 = vld [vmem:[%s1308_s0 + $0xd8] sm:$0xf0]  ;;  %v821_v46 = vld [vmem:[%s1308_s0 + $0x24] sm:$0xf0]  ;;  %v708_v47 = vld [vmem:[%s1308_s0 + $0xb0] sm:$0xf] }
   0xd   :  { %v729_v44 = vor.u32 %v842_v42, %v726_v43  ;;  %v839_v48 = vld [vmem:[%s1308_s0 + $0xb4] sm:$0xf0]  ;;  %v637_v49 = vor.u32 %v821_v46, %v636_v45  ;;  %v824_v51 = vld [vmem:[%s1308_s0 + $0x44] sm:$0xf]  ;;  %v654_v52 = vld [vmem:[%s1308_s0 + $0x48] sm:$0xf0] }
   0xe   :  { %347 = vmatpush.bf16.msra.mxu0 %v856_v10  ;;  %v709_v50 = vor.u32 %v839_v48, %v708_v47  ;;  %v657_v53 = vor.u32 %v824_v51, %v654_v52  ;;  %v844_v54 = vld [vmem:[%s1308_s0 + $0xe4] sm:$0xf]  ;;  %v734_v55 = vld [vmem:[%s1308_s0 + $0xe8] sm:$0xf0]  ;;  %v644_v57 = vld [vmem:[%s1308_s0 + $0x30] sm:$0xf] }
   0xf   :  { %864 = vmatpush.bf16.msra.mxu2 %v856_v10  ;;  %v737_v56 = vor.u32 %v844_v54, %v734_v55  ;;  %v823_v58 = vld [vmem:[%s1308_s0 + $0x34] sm:$0xf0]  ;;  %v716_v59 = vld [vmem:[%s1308_s0 + $0xc0] sm:$0xf]  ;;  %v841_v60 = vld [vmem:[%s1308_s0 + $0xc4] sm:$0xf0] }
  0x10   :  { %v645_v61 = vor.u32 %v823_v58, %v644_v57  ;;  %v717_v62 = vor.u32 %v841_v60, %v716_v59  ;;  %v826_v63 = vld [vmem:[%s1308_s0 + $0x54] sm:$0xf]  ;;  %v662_v0 = vld [vmem:[%s1308_s0 + $0x58] sm:$0xf0]  ;;  %v652_v5 = vld [vmem:[%s1308_s0 + $0x40] sm:$0xf] }
  0x11   :  { %v665_v1 = vor.u32 %v826_v63, %v662_v0  ;;  %v846_v2 = vld [vmem:[%s1308_s0 + $0xf4] sm:$0xf]  ;;  %v742_v3 = vld [vmem:[%s1308_s0 + $0xf8] sm:$0xf0]  ;;  %v825_v6 = vld [vmem:[%s1308_s0 + $0x44] sm:$0xf0] }
  0x12   :  { %348 = vmatpush.bf16.msra.mxu0 %v855_v11  ;;  %v745_v4 = vor.u32 %v846_v2, %v742_v3  ;;  %v724_v7 = vld [vmem:[%s1308_s0 + $0xd0] sm:$0xf]  ;;  %v843_v8 = vld [vmem:[%s1308_s0 + $0xd4] sm:$0xf0]  ;;  %v653_v9 = vor.u32 %v825_v6, %v652_v5  ;;  %v670_v12 = vld [vmem:[%s1308_s0 + $0x68] sm:$0xf0] }
  0x13   :  { %865 = vmatpush.bf16.msra.mxu2 %v855_v11  ;;  %v725_v10 = vor.u32 %v843_v8, %v724_v7  ;;  %v828_v11 = vld [vmem:[%s1308_s0 + $0x64] sm:$0xf]  ;;  %v827_v17 = vld [vmem:[%s1308_s0 + $0x54] sm:$0xf0]  ;;  %v830_v23 = vld [vmem:[%s1308_s0 + $0x74] sm:$0xf] }
  0x14   :  { %v673_v13 = vor.u32 %v828_v11, %v670_v12  ;;  %v678_v24 = vld [vmem:[%s1308_s0 + $0x78] sm:$0xf0]  ;;  %v668_v28 = vld [vmem:[%s1308_s0 + $0x60] sm:$0xf]  ;;  %v740_v31 = vld [vmem:[%s1308_s0 + $0xf0] sm:$0xf] }
  0x15   :  { %v758_v27 = vld [vmem:[%s1308_s0 + $0x118] sm:$0xf0]  ;;  %v832_v35 = vld [vmem:[%s1308_s0 + $0x84] sm:$0xf]  ;;  %v686_v36 = vld [vmem:[%s1308_s0 + $0x88] sm:$0xf0] }
  0x16   :  { %799 = vmatmul.msk.bf16.gmra.mxu1 %vm289_vm0, %v633_v14  ;;  %349 = vmatpush.bf16.msra.mxu0 %v854_v15  ;;  %v848_v14 = vld [vmem:[%s1308_s0 + $0x104] sm:$0xf]  ;;  %v676_v39 = vld [vmem:[%s1308_s0 + $0x70] sm:$0xf]  ;;  %v831_v40 = vld [vmem:[%s1308_s0 + $0x74] sm:$0xf0] }
  0x17   :  { %866 = vmatpush.bf16.msra.mxu2 %v854_v15  ;;  %809 = vmatmul.msk.bf16.gmra.mxu3 %vm289_vm0, %v713_v19  ;;  %v750_v15 = vld [vmem:[%s1308_s0 + $0x108] sm:$0xf0]  ;;  %v732_v19 = vld [vmem:[%s1308_s0 + $0xe0] sm:$0xf]  ;;  %v849_v43 = vld [vmem:[%s1308_s0 + $0x104] sm:$0xf0] }
  0x18   :  { %v753_v18 = vor.u32 %v848_v14, %v750_v15  ;;  %v748_v42 = vld [vmem:[%s1308_s0 + $0x100] sm:$0xf]  ;;  %v834_v46 = vld [vmem:[%s1308_s0 + $0x94] sm:$0xf]  ;;  %v694_v47 = vld [vmem:[%s1308_s0 + $0x98] sm:$0xf0] }
  0x19   :  { %v749_v45 = vor.u32 %v849_v43, %v748_v42  ;;  %v697_v48 = vor.u32 %v834_v46, %v694_v47  ;;  %v684_v51 = vld [vmem:[%s1308_s0 + $0x80] sm:$0xf]  ;;  %v833_v52 = vld [vmem:[%s1308_s0 + $0x84] sm:$0xf0]  ;;  %v756_v55 = vld [vmem:[%s1308_s0 + $0x110] sm:$0xf] }
  0x1a   :  { %350 = vmatpush.bf16.msra.mxu0 %v853_v16  ;;  %v1149_v54 = vld [vmem:[%s1309_s2] ss:$0 sm:$0xff]  ;;  %v685_v57 = vor.u32 %v833_v52, %v684_v51 }
  0x1b   :  { %867 = vmatpush.bf16.msra.mxu2 %v853_v16  ;;  %v660_v16 = vld [vmem:[%s1308_s0 + $0x50] sm:$0xf] }
  0x1c   :  { %v661_v21 = vor.u32 %v827_v17, %v660_v16 }
  0x1e   :  { %351 = vmatpush.bf16.msra.mxu0 %v852_v20 }
  0x1f   :  { %868 = vmatpush.bf16.msra.mxu2 %v852_v20  ;;  %v845_v20 = vld [vmem:[%s1308_s0 + $0xe4] sm:$0xf0] }
  0x20   :  { %v733_v22 = vor.u32 %v845_v20, %v732_v19 }
  0x21   :  { %352 = vmatmul.bf16.vlgmr.msra.gmra.mxu0 %v621_v25  ;;  %v681_v25 = vor.u32 %v830_v23, %v678_v24 }
  0x22   :  { %397 = vmatmul.bf16.vlgmr.msra.gmra.mxu2 %v693_v26  ;;  %v850_v26 = vld [vmem:[%s1308_s0 + $0x114] sm:$0xf] }
  0x23   :  { %v761_v30 = vor.u32 %v850_v26, %v758_v27 }
  0x26   :  { %800 = vmatmul.msk.bf16.gmra.mxu1 %vm289_vm0, %v641_v29  ;;  %v829_v29 = vld [vmem:[%s1308_s0 + $0x64] sm:$0xf0] }
  0x27   :  { %810 = vmatmul.msk.bf16.gmra.mxu3 %vm289_vm0, %v721_v32  ;;  %v847_v32 = vld [vmem:[%s1308_s0 + $0xf4] sm:$0xf0]  ;;  %v669_v33 = vor.u32 %v829_v29, %v668_v28 }
  0x28   :  { %v741_v34 = vor.u32 %v847_v32, %v740_v31 }
  0x31   :  { %357 = vmatmul.bf16.gmra.mxu0 %v629_v37  ;;  %v689_v37 = vor.u32 %v832_v35, %v686_v36 }
  0x32   :  { %402 = vmatmul.bf16.gmra.mxu2 %v701_v38 }
  0x36   :  { %801 = vmatmul.msk.bf16.gmra.mxu1 %vm289_vm0, %v649_v41 }
  0x37   :  { %811 = vmatmul.msk.bf16.gmra.mxu3 %vm289_vm0, %v729_v44  ;;  %v677_v44 = vor.u32 %v831_v40, %v676_v39 }
  0x41   :  { %362 = vmatmul.bf16.gmra.mxu0 %v637_v49 }
  0x42   :  { %407 = vmatmul.bf16.gmra.mxu2 %v709_v50 }
  0x46   :  { %802 = vmatmul.msk.bf16.gmra.mxu1 %vm289_vm0, %v657_v53 }
  0x47   :  { %812 = vmatmul.msk.bf16.gmra.mxu3 %vm289_vm0, %v737_v56  ;;  %v851_v56 = vld [vmem:[%s1308_s0 + $0x114] sm:$0xf0] }
  0x48   :  { %v757_v59 = vor.u32 %v851_v56, %v756_v55 }
  0x51   :  { %367 = vmatmul.bf16.gmra.mxu0 %v645_v61 }
  0x52   :  { %412 = vmatmul.bf16.gmra.mxu2 %v717_v62 }
  0x56   :  { %803 = vmatmul.msk.bf16.gmra.mxu1 %vm289_vm0, %v665_v1 }
  0x57   :  { %813 = vmatmul.msk.bf16.gmra.mxu3 %vm289_vm0, %v745_v4 }
  0x61   :  { %372 = vmatmul.bf16.gmra.mxu0 %v653_v9 }
  0x62   :  { %417 = vmatmul.bf16.gmra.mxu2 %v725_v10 }
  0x66   :  { %804 = vmatmul.msk.bf16.gmra.mxu1 %vm289_vm0, %v673_v13 }
  0x67   :  { %814 = vmatmul.msk.bf16.gmra.mxu3 %vm289_vm0, %v753_v18 }
  0x71   :  { %377 = vmatmul.bf16.gmra.mxu0 %v661_v21 }
  0x72   :  { %422 = vmatmul.bf16.gmra.mxu2 %v733_v22 }
  0x76   :  { %805 = vmatmul.msk.bf16.gmra.mxu1 %vm289_vm0, %v681_v25 }
  0x77   :  { %815 = vmatmul.msk.bf16.gmra.mxu3 %vm289_vm0, %v761_v30 }
  0x81   :  { %382 = vmatmul.bf16.gmra.mxu0 %v669_v33 }
  0x82   :  { %427 = vmatmul.bf16.gmra.mxu2 %v741_v34 }
  0x83   :  { %v452_v38 = vpop.f32.mrf.mxu1 }
  0x86   :  { %806 = vmatmul.msk.bf16.gmra.mxu1 %vm289_vm0, %v689_v37 }
  0x8a   :  { %v502_v50 = vpop.f32.mrf.mxu3 }
  0x8b   :  { %v454_v41 = vpop.f32.mrf.mxu1 }
  0x91   :  { %387 = vmatmul.bf16.gmra.mxu0 %v677_v44 }
  0x92   :  { %432 = vmatmul.bf16.gmra.mxu2 %v749_v45  ;;  %v504_v0 = vpop.f32.mrf.mxu3 }
  0x93   :  { %v457_v49 = vpop.f32.mrf.mxu1 }
  0x96   :  { %807 = vmatmul.msk.bf16.gmra.mxu1 %vm289_vm0, %v697_v48 }
  0x9a   :  { %v507_v8 = vpop.f32.mrf.mxu3 }
  0x9b   :  { %v459_v53 = vpop.f32.mrf.mxu1 }
  0x9e   :  { %v353_v58 = vpop.f32.mrf.mxu0 }
  0x9f   :  { %v354_v60 = vadd.f32 %v1149_v54, %v353_v58 }
  0xa1   :  { %v453_v61 = vadd.f32 %v452_v38, %v354_v60  ;;  %392 = vmatmul.bf16.gmra.mxu0 %v685_v57 }
  0xa2   :  { %437 = vmatmul.bf16.gmra.mxu2 %v757_v59  ;;  %v509_v18 = vpop.f32.mrf.mxu3 }
  0xa3   :  { %v542_v62 = vmax.f32 %v453_v61, 0.0  ;;  %v462_v63 = vpop.f32.mrf.mxu1 }
  0xa5   :  { %578 = vst [vmem:[%s1310_s3] sm:$0xff] %v542_v62  ;;  %v1161_v1 = vpop.f32.mrf.mxu2 }
  0xa6   :  { %v355_v2 = vpop.f32.mrf.mxu0 }
  0xa7   :  { %v356_v3 = vadd.f32 %v1149_v54, %v355_v2 }
  0xa9   :  { %v455_v4 = vadd.f32 %v454_v41, %v356_v3 }
  0xaa   :  { %v512_v30 = vpop.f32.mrf.mxu3 }
  0xab   :  { %v543_v5 = vmax.f32 %v455_v4, 0.0  ;;  %v464_v6 = vpop.f32.mrf.mxu1 }
  0xad   :  { %579 = vst [vmem:[%s1310_s3 + $0x8] sm:$0xff] %v543_v5  ;;  %v1167_v7 = vpop.f32.mrf.mxu2 }
  0xae   :  { %v358_v9 = vpop.f32.mrf.mxu0 }
  0xaf   :  { %v359_v10 = vadd.f32 %v1149_v54, %v358_v9 }
  0xb1   :  { %v458_v11 = vadd.f32 %v457_v49, %v359_v10 }
  0xb2   :  { %v514_v43 = vpop.f32.mrf.mxu3 }
  0xb3   :  { %v544_v12 = vmax.f32 %v458_v11, 0.0  ;;  %v467_v13 = vpop.f32.mrf.mxu1 }
  0xb5   :  { %580 = vst [vmem:[%s1310_s3 + $0x10] sm:$0xff] %v544_v12  ;;  %v403_v14 = vpop.f32.mrf.mxu2 }
  0xb6   :  { %v404_v15 = vadd.f32 %v1149_v54, %v403_v14  ;;  %v360_v16 = vpop.f32.mrf.mxu0 }
  0xb7   :  { %v361_v17 = vadd.f32 %v1149_v54, %v360_v16 }
  0xb8   :  { %v503_v19 = vadd.f32 %v502_v50, %v404_v15 }
  0xb9   :  { %v460_v20 = vadd.f32 %v459_v53, %v361_v17 }
  0xba   :  { %v562_v21 = vmax.f32 %v503_v19, 0.0  ;;  %v517_v55 = vpop.f32.mrf.mxu3 }
  0xbb   :  { %v545_v22 = vmax.f32 %v460_v20, 0.0  ;;  %v469_v23 = vpop.f32.mrf.mxu1 }
  0xbc   :  { %598 = vst [vmem:[%s1310_s3 + $0xa0] sm:$0xff] %v562_v21 }
  0xbd   :  { %581 = vst [vmem:[%s1310_s3 + $0x18] sm:$0xff] %v545_v22  ;;  %v405_v24 = vpop.f32.mrf.mxu2 }
  0xbe   :  { %v406_v25 = vadd.f32 %v1149_v54, %v405_v24  ;;  %v363_v26 = vpop.f32.mrf.mxu0 }
  0xbf   :  { %v364_v27 = vadd.f32 %v1149_v54, %v363_v26 }
  0xc0   :  { %v505_v28 = vadd.f32 %v504_v0, %v406_v25 }
  0xc1   :  { %v463_v29 = vadd.f32 %v462_v63, %v364_v27 }
  0xc2   :  { %v563_v31 = vmax.f32 %v505_v28, 0.0  ;;  %v519_v5 = vpop.f32.mrf.mxu3 }
  0xc3   :  { %v546_v32 = vmax.f32 %v463_v29, 0.0  ;;  %v472_v33 = vpop.f32.mrf.mxu1 }
  0xc4   :  { %599 = vst [vmem:[%s1310_s3 + $0xa8] sm:$0xff] %v563_v31 }
  0xc5   :  { %582 = vst [vmem:[%s1310_s3 + $0x20] sm:$0xff] %v546_v32  ;;  %v408_v34 = vpop.f32.mrf.mxu2 }
  0xc6   :  { %v409_v35 = vadd.f32 %v1149_v54, %v408_v34  ;;  %v365_v36 = vpop.f32.mrf.mxu0 }
  0xc7   :  { %v366_v37 = vadd.f32 %v1149_v54, %v365_v36 }
  0xc8   :  { %v508_v38 = vadd.f32 %v507_v8, %v409_v35 }
  0xc9   :  { %v465_v39 = vadd.f32 %v464_v6, %v366_v37 }
  0xca   :  { %v564_v40 = vmax.f32 %v508_v38, 0.0 }
  0xcb   :  { %v547_v41 = vmax.f32 %v465_v39, 0.0  ;;  %v474_v42 = vpop.f32.mrf.mxu1 }
  0xcc   :  { %600 = vst [vmem:[%s1310_s3 + $0xb0] sm:$0xff] %v564_v40 }
  0xcd   :  { %583 = vst [vmem:[%s1310_s3 + $0x28] sm:$0xff] %v547_v41  ;;  %v410_v44 = vpop.f32.mrf.mxu2 }
  0xce   :  { %v411_v45 = vadd.f32 %v1149_v54, %v410_v44  ;;  %v368_v46 = vpop.f32.mrf.mxu0 }
  0xcf   :  { %v369_v47 = vadd.f32 %v1149_v54, %v368_v46 }
  0xd0   :  { %v510_v48 = vadd.f32 %v509_v18, %v411_v45  ;;  %v522_v18 = vpop.f32.mrf.mxu3 }
  0xd1   :  { %v468_v49 = vadd.f32 %v467_v13, %v369_v47 }
  0xd2   :  { %v565_v50 = vmax.f32 %v510_v48, 0.0 }
  0xd3   :  { %v548_v51 = vmax.f32 %v468_v49, 0.0  ;;  %v477_v52 = vpop.f32.mrf.mxu1 }
  0xd4   :  { %601 = vst [vmem:[%s1310_s3 + $0xb8] sm:$0xff] %v565_v50 }
  0xd5   :  { %584 = vst [vmem:[%s1310_s3 + $0x30] sm:$0xff] %v548_v51  ;;  %v413_v53 = vpop.f32.mrf.mxu2 }
  0xd6   :  { %v414_v56 = vadd.f32 %v1149_v54, %v413_v53  ;;  %v370_v57 = vpop.f32.mrf.mxu0 }
  0xd7   :  { %v371_v58 = vadd.f32 %v1149_v54, %v370_v57 }
  0xd8   :  { %v513_v59 = vadd.f32 %v512_v30, %v414_v56  ;;  %v524_v31 = vpop.f32.mrf.mxu3 }
  0xd9   :  { %v470_v60 = vadd.f32 %v469_v23, %v371_v58 }
  0xda   :  { %v566_v61 = vmax.f32 %v513_v59, 0.0 }
  0xdb   :  { %v549_v62 = vmax.f32 %v470_v60, 0.0  ;;  %v479_v63 = vpop.f32.mrf.mxu1 }
  0xdc   :  { %602 = vst [vmem:[%s1310_s3 + $0xc0] sm:$0xff] %v566_v61 }
  0xdd   :  { %585 = vst [vmem:[%s1310_s3 + $0x38] sm:$0xff] %v549_v62  ;;  %v415_v0 = vpop.f32.mrf.mxu2 }
  0xde   :  { %v416_v2 = vadd.f32 %v1149_v54, %v415_v0  ;;  %v373_v3 = vpop.f32.mrf.mxu0 }
  0xdf   :  { %v374_v4 = vadd.f32 %v1149_v54, %v373_v3 }
  0xe0   :  { %v515_v6 = vadd.f32 %v514_v43, %v416_v2 }
  0xe1   :  { %v473_v8 = vadd.f32 %v472_v33, %v374_v4 }
  0xe2   :  { %v567_v9 = vmax.f32 %v515_v6, 0.0  ;;  %v399_v6 = vadd.f32 %v1149_v54, %v1161_v1 }
  0xe3   :  { %v550_v10 = vmax.f32 %v473_v8, 0.0  ;;  %v482_v11 = vpop.f32.mrf.mxu1 }
  0xe4   :  { %603 = vst [vmem:[%s1310_s3 + $0xc8] sm:$0xff] %v567_v9 }
  0xe5   :  { %586 = vst [vmem:[%s1310_s3 + $0x40] sm:$0xff] %v550_v10  ;;  %v418_v12 = vpop.f32.mrf.mxu2 }
  0xe6   :  { %v419_v13 = vadd.f32 %v1149_v54, %v418_v12  ;;  %v375_v14 = vpop.f32.mrf.mxu0 }
  0xe7   :  { %v376_v15 = vadd.f32 %v1149_v54, %v375_v14 }
  0xe8   :  { %v518_v16 = vadd.f32 %v517_v55, %v419_v13 }
  0xe9   :  { %v475_v17 = vadd.f32 %v474_v42, %v376_v15  ;;  %v527_v42 = vpop.f32.mrf.mxu3 }
  0xea   :  { %v568_v19 = vmax.f32 %v518_v16, 0.0 }
  0xeb   :  { %v551_v20 = vmax.f32 %v475_v17, 0.0  ;;  %v484_v21 = vpop.f32.mrf.mxu1 }
  0xec   :  { %604 = vst [vmem:[%s1310_s3 + $0xd0] sm:$0xff] %v568_v19 }
  0xed   :  { %587 = vst [vmem:[%s1310_s3 + $0x48] sm:$0xff] %v551_v20  ;;  %v420_v22 = vpop.f32.mrf.mxu2 }
  0xee   :  { %v421_v23 = vadd.f32 %v1149_v54, %v420_v22  ;;  %v378_v24 = vpop.f32.mrf.mxu0 }
  0xef   :  { %v379_v25 = vadd.f32 %v1149_v54, %v378_v24 }
  0xf0   :  { %v520_v26 = vadd.f32 %v519_v5, %v421_v23 }
  0xf1   :  { %v478_v27 = vadd.f32 %v477_v52, %v379_v25  ;;  %v529_v56 = vpop.f32.mrf.mxu3 }
  0xf2   :  { %v569_v28 = vmax.f32 %v520_v26, 0.0 }
  0xf3   :  { %v552_v29 = vmax.f32 %v478_v27, 0.0  ;;  %v487_v30 = vpop.f32.mrf.mxu1 }
  0xf4   :  { %605 = vst [vmem:[%s1310_s3 + $0xd8] sm:$0xff] %v569_v28 }
  0xf5   :  { %588 = vst [vmem:[%s1310_s3 + $0x50] sm:$0xff] %v552_v29  ;;  %v423_v32 = vpop.f32.mrf.mxu2 }
  0xf6   :  { %v424_v33 = vadd.f32 %v1149_v54, %v423_v32  ;;  %v380_v34 = vpop.f32.mrf.mxu0 }
  0xf7   :  { %v381_v35 = vadd.f32 %v1149_v54, %v380_v34 }
  0xf8   :  { %v523_v36 = vadd.f32 %v522_v18, %v424_v33  ;;  %v401_v18 = vadd.f32 %v1149_v54, %v1167_v7 }
  0xf9   :  { %v480_v37 = vadd.f32 %v479_v63, %v381_v35  ;;  %v532_v5 = vpop.f32.mrf.mxu3 }
  0xfa   :  { %v570_v38 = vmax.f32 %v523_v36, 0.0 }
  0xfb   :  { %v553_v39 = vmax.f32 %v480_v37, 0.0  ;;  %v489_v40 = vpop.f32.mrf.mxu1 }
  0xfc   :  { %606 = vst [vmem:[%s1310_s3 + $0xe0] sm:$0xff] %v570_v38 }
  0xfd   :  { %589 = vst [vmem:[%s1310_s3 + $0x58] sm:$0xff] %v553_v39  ;;  %v425_v41 = vpop.f32.mrf.mxu2 }
  0xfe   :  { %v426_v43 = vadd.f32 %v1149_v54, %v425_v41  ;;  %v383_v44 = vpop.f32.mrf.mxu0 }
  0xff   :  { %v384_v45 = vadd.f32 %v1149_v54, %v383_v44 }
 0x100   :  { %v525_v46 = vadd.f32 %v524_v31, %v426_v43 }
 0x101   :  { %v483_v47 = vadd.f32 %v482_v11, %v384_v45 }
 0x102   :  { %v571_v48 = vmax.f32 %v525_v46, 0.0 }
 0x103   :  { %v554_v49 = vmax.f32 %v483_v47, 0.0  ;;  %v492_v50 = vpop.f32.mrf.mxu1 }
 0x104   :  { %607 = vst [vmem:[%s1310_s3 + $0xe8] sm:$0xff] %v571_v48 }
 0x105   :  { %590 = vst [vmem:[%s1310_s3 + $0x60] sm:$0xff] %v554_v49  ;;  %v428_v51 = vpop.f32.mrf.mxu2 }
 0x106   :  { %v429_v52 = vadd.f32 %v1149_v54, %v428_v51  ;;  %v385_v53 = vpop.f32.mrf.mxu0 }
 0x107   :  { %v386_v55 = vadd.f32 %v1149_v54, %v385_v53 }
 0x108   :  { %v528_v57 = vadd.f32 %v527_v42, %v429_v52 }
 0x109   :  { %v485_v58 = vadd.f32 %v484_v21, %v386_v55  ;;  %v534_v21 = vpop.f32.mrf.mxu3 }
 0x10a   :  { %v572_v59 = vmax.f32 %v528_v57, 0.0 }
 0x10b   :  { %v555_v60 = vmax.f32 %v485_v58, 0.0  ;;  %v494_v61 = vpop.f32.mrf.mxu1 }
 0x10c   :  { %608 = vst [vmem:[%s1310_s3 + $0xf0] sm:$0xff] %v572_v59 }
 0x10d   :  { %591 = vst [vmem:[%s1310_s3 + $0x68] sm:$0xff] %v555_v60  ;;  %v430_v62 = vpop.f32.mrf.mxu2 }
 0x10e   :  { %v431_v63 = vadd.f32 %v1149_v54, %v430_v62  ;;  %v388_v0 = vpop.f32.mrf.mxu0 }
 0x10f   :  { %v389_v2 = vadd.f32 %v1149_v54, %v388_v0 }
 0x110   :  { %v530_v3 = vadd.f32 %v529_v56, %v431_v63 }
 0x111   :  { %v488_v4 = vadd.f32 %v487_v30, %v389_v2  ;;  %v537_v32 = vpop.f32.mrf.mxu3 }
 0x112   :  { %v573_v8 = vmax.f32 %v530_v3, 0.0 }
 0x113   :  { %v556_v9 = vmax.f32 %v488_v4, 0.0  ;;  %v497_v10 = vpop.f32.mrf.mxu1 }
 0x114   :  { %609 = vst [vmem:[%s1310_s3 + $0xf8] sm:$0xff] %v573_v8  ;;  %v498_v11 = vadd.f32 %v497_v10, %v399_v6 }
 0x115   :  { %592 = vst [vmem:[%s1310_s3 + $0x70] sm:$0xff] %v556_v9  ;;  %v433_v12 = vpop.f32.mrf.mxu2 }
 0x116   :  { %v560_v13 = vmax.f32 %v498_v11, 0.0  ;;  %v434_v14 = vadd.f32 %v1149_v54, %v433_v12  ;;  %v390_v15 = vpop.f32.mrf.mxu0 }
 0x117   :  { %v391_v16 = vadd.f32 %v1149_v54, %v390_v15 }
 0x118   :  { %596 = vst [vmem:[%s1310_s3 + $0x90] sm:$0xff] %v560_v13  ;;  %v533_v1 = vadd.f32 %v532_v5, %v434_v14 }
 0x119   :  { %v490_v17 = vadd.f32 %v489_v40, %v391_v16  ;;  %v539_v43 = vpop.f32.mrf.mxu3 }
 0x11a   :  { %v574_v19 = vmax.f32 %v533_v1, 0.0 }
 0x11b   :  { %v557_v20 = vmax.f32 %v490_v17, 0.0  ;;  %v499_v22 = vpop.f32.mrf.mxu1 }
 0x11c   :  { %610 = vst [vmem:[%s1310_s3 + $0x100] sm:$0xff] %v574_v19  ;;  %v500_v23 = vadd.f32 %v499_v22, %v401_v18 }
 0x11d   :  { %593 = vst [vmem:[%s1310_s3 + $0x78] sm:$0xff] %v557_v20  ;;  %v435_v24 = vpop.f32.mrf.mxu2 }
 0x11e   :  { %v561_v25 = vmax.f32 %v500_v23, 0.0  ;;  %v436_v26 = vadd.f32 %v1149_v54, %v435_v24  ;;  %v393_v27 = vpop.f32.mrf.mxu0 }
 0x11f   :  { %v394_v7 = vadd.f32 %v1149_v54, %v393_v27 }
 0x120   :  { %597 = vst [vmem:[%s1310_s3 + $0x98] sm:$0xff] %v561_v25  ;;  %v535_v28 = vadd.f32 %v534_v21, %v436_v26 }
 0x121   :  { %v493_v29 = vadd.f32 %v492_v50, %v394_v7 }
 0x122   :  { %v575_v30 = vmax.f32 %v535_v28, 0.0 }
 0x123   :  { %v558_v31 = vmax.f32 %v493_v29, 0.0 }
 0x124   :  { %611 = vst [vmem:[%s1310_s3 + $0x108] sm:$0xff] %v575_v30 }
 0x125   :  { %594 = vst [vmem:[%s1310_s3 + $0x80] sm:$0xff] %v558_v31  ;;  %v438_v33 = vpop.f32.mrf.mxu2 }
 0x126   :  { %v439_v34 = vadd.f32 %v1149_v54, %v438_v33  ;;  %v395_v35 = vpop.f32.mrf.mxu0 }
 0x127   :  { %v396_v36 = vadd.f32 %v1149_v54, %v395_v35 }
 0x128   :  { %v538_v37 = vadd.f32 %v537_v32, %v439_v34 }
 0x129   :  { %v495_v38 = vadd.f32 %v494_v61, %v396_v36 }
 0x12a   :  { %v576_v39 = vmax.f32 %v538_v37, 0.0 }
 0x12b   :  { %v559_v40 = vmax.f32 %v495_v38, 0.0 }
 0x12c   :  { %612 = vst [vmem:[%s1310_s3 + $0x110] sm:$0xff] %v576_v39 }
 0x12d   :  { %595 = vst [vmem:[%s1310_s3 + $0x88] sm:$0xff] %v559_v40  ;;  %v440_v41 = vpop.f32.mrf.mxu2 }
 0x12e   :  { %v441_v42 = vadd.f32 %v1149_v54, %v440_v41 }
 0x130   :  { %v540_v44 = vadd.f32 %v539_v43, %v441_v42 }
 0x132   :  { %v577_v45 = vmax.f32 %v540_v44, 0.0 }
 0x134   :  { %613 = vst [vmem:[%s1310_s3 + $0x118] sm:$0xff] %v577_v45 }

// kernel: pspnet2_forward.16
= control target key start
LH: loop header
LB: loop body
LE: loop exit
PB: predicated region body
PF: predicated region fallthrough
CT: control target
= control target key end

     0   :  { %vm142_vm0 = vcmask 130048   ;;  %s479_s1 = inlined_call_operand.vmem [shape: bf16[144,128], index: 1, kind: input, shape index: {}]   ;;  %s480_s0 = inlined_call_operand.vmem [shape: bf16[72,144], index: 0, kind: input, shape index: {}]   ;;  %s481_s2 = inlined_call_operand.vmem [shape: f32[1,128], index: 2, kind: input, shape index: {}]   ;;  %s482_s3 = inlined_call_operand.vmem [shape: f32[72,128], index: 3, kind: output, shape index: {}]  }
   0x1   :  { %v334_v0 = vld [vmem:[%s479_s1 + $0x38] sm:$0xff]  ;;  %v335_v1 = vld [vmem:[%s479_s1 + $0x40] sm:$0xff]  ;;  %v321_v2 = vld [vmem:[%s480_s0 + $0x14] sm:$0xf] }
   0x2   :  { %v258_v3 = vld [vmem:[%s480_s0 + $0x18] sm:$0xf0]  ;;  %158 = vmatpush.bf16.msra.mxu0 %v334_v0  ;;  %336 = vmatpush.bf16.msra.mxu2 %v334_v0  ;;  %v333_v4 = vld [vmem:[%s479_s1 + $0x30] sm:$0xff]  ;;  %v332_v6 = vld [vmem:[%s479_s1 + $0x28] sm:$0xff] }
   0x3   :  { %344 = vmatpush.bf16.msra.mxu3 %v335_v1  ;;  %v261_v5 = vor.u32 %v321_v2, %v258_v3  ;;  %198 = vmatpush.bf16.msra.mxu1 %v335_v1  ;;  %v319_v7 = vld [vmem:[%s480_s0 + $0x4] sm:$0xf]  ;;  %v250_v8 = vld [vmem:[%s480_s0 + $0x8] sm:$0xf0]  ;;  %v330_v11 = vld [vmem:[%s479_s1 + $0x18] sm:$0xff] }
   0x4   :  { %v253_v9 = vor.u32 %v319_v7, %v250_v8  ;;  %v331_v10 = vld [vmem:[%s479_s1 + $0x20] sm:$0xff]  ;;  %v266_v13 = vld [vmem:[%s480_s0 + $0x28] sm:$0xf0]  ;;  %v329_v14 = vld [vmem:[%s479_s1 + $0x10] sm:$0xff] }
   0x5   :  { %v323_v12 = vld [vmem:[%s480_s0 + $0x24] sm:$0xf]  ;;  %v328_v16 = vld [vmem:[%s479_s1 + $0x8] sm:$0xff]  ;;  %v248_v18 = vld [vmem:[%s480_s0] sm:$0xf] }
   0x6   :  { %159 = vmatpush.bf16.msra.mxu0 %v333_v4  ;;  %337 = vmatpush.bf16.msra.mxu2 %v333_v4  ;;  %v269_v15 = vor.u32 %v323_v12, %v266_v13  ;;  %v327_v17 = vld [vmem:[%s479_s1] sm:$0xff]  ;;  %v320_v19 = vld [vmem:[%s480_s0 + $0x4] sm:$0xf0]  ;;  %v325_v24 = vld [vmem:[%s480_s0 + $0x34] sm:$0xf] }
   0x7   :  { %315 = vmatmul.msk.bf16.vlgmr.msra.gmra.mxu3 %vm142_vm0, %v261_v5  ;;  %314 = vmatmul.msk.bf16.vlgmr.msra.gmra.mxu1 %vm142_vm0, %v253_v9  ;;  %v264_v20 = vld [vmem:[%s480_s0 + $0x20] sm:$0xf]  ;;  %v324_v21 = vld [vmem:[%s480_s0 + $0x24] sm:$0xf0]  ;;  %v249_v22 = vor.u32 %v320_v19, %v248_v18  ;;  %v274_v25 = vld [vmem:[%s480_s0 + $0x38] sm:$0xf0] }
   0x8   :  { %v265_v23 = vor.u32 %v324_v21, %v264_v20  ;;  %v277_v26 = vor.u32 %v325_v24, %v274_v25  ;;  %v256_v27 = vld [vmem:[%s480_s0 + $0x10] sm:$0xf]  ;;  %v322_v28 = vld [vmem:[%s480_s0 + $0x14] sm:$0xf0]  ;;  %v23_v31 = vld [vmem:[%s480_s0 + $0x40] sm:$0xff] }
   0x9   :  { %v272_v29 = vld [vmem:[%s480_s0 + $0x30] sm:$0xf]  ;;  %v326_v30 = vld [vmem:[%s480_s0 + $0x34] sm:$0xf0]  ;;  %v257_v32 = vor.u32 %v322_v28, %v256_v27  ;;  %v72_v34 = vunpack.c.h.b16 %v23_v31  ;;  %v71_v36 = vunpack.c.l.b16 %v23_v31  ;;  %v345_v42 = vld [vmem:[%s481_s2] ss:$0 sm:$0xff] }
   0xa   :  { %160 = vmatpush.bf16.msra.mxu0 %v332_v6  ;;  %338 = vmatpush.bf16.msra.mxu2 %v332_v6  ;;  %v273_v33 = vor.u32 %v326_v30, %v272_v29 }
   0xb   :  { %v82_v35 = vpack.c.b16 %v72_v34, %v72_v34  ;;  %v81_v37 = vpack.c.b16 %v71_v36, %v71_v36 }
   0xe   :  { %161 = vmatpush.bf16.msra.mxu0 %v331_v10  ;;  %339 = vmatpush.bf16.msra.mxu2 %v331_v10 }
  0x12   :  { %162 = vmatpush.bf16.msra.mxu0 %v330_v11  ;;  %340 = vmatpush.bf16.msra.mxu2 %v330_v11 }
  0x16   :  { %163 = vmatpush.bf16.msra.mxu0 %v329_v14  ;;  %341 = vmatpush.bf16.msra.mxu2 %v329_v14 }
  0x17   :  { %316 = vmatmul.msk.bf16.gmra.mxu3 %vm142_vm0, %v269_v15 }
  0x1a   :  { %164 = vmatpush.bf16.msra.mxu0 %v328_v16  ;;  %342 = vmatpush.bf16.msra.mxu2 %v328_v16 }
  0x1e   :  { %165 = vmatpush.bf16.msra.mxu0 %v327_v17  ;;  %343 = vmatpush.bf16.msra.mxu2 %v327_v17 }
  0x21   :  { %166 = vmatmul.bf16.vlgmr.msra.gmra.mxu0 %v249_v22  ;;  %176 = vmatmul.bf16.vlgmr.msra.gmra.mxu2 %v265_v23 }
  0x27   :  { %317 = vmatmul.msk.bf16.gmra.mxu3 %vm142_vm0, %v277_v26 }
  0x31   :  { %171 = vmatmul.bf16.gmra.mxu0 %v257_v32  ;;  %181 = vmatmul.bf16.gmra.mxu2 %v273_v33 }
  0x37   :  { %318 = vmatmul.msk.bf16.gmra.mxu3 %vm142_vm0, %v82_v35 }
  0x41   :  { %186 = vmatmul.bf16.gmra.mxu2 %v81_v37 }
  0x84   :  { %v200_v41 = vpop.f32.mrf.mxu1 }
  0x8a   :  { %v205_v38 = vpop.f32.mrf.mxu3 }
  0x8c   :  { %v202_v51 = vpop.f32.mrf.mxu1 }
  0x92   :  { %v207_v39 = vpop.f32.mrf.mxu3 }
  0x9a   :  { %v210_v40 = vpop.f32.mrf.mxu3 }
  0x9e   :  { %v167_v43 = vpop.f32.mrf.mxu0 }
  0x9f   :  { %v168_v44 = vadd.f32 %v345_v42, %v167_v43 }
  0xa1   :  { %v201_v45 = vadd.f32 %v200_v41, %v168_v44 }
  0xa2   :  { %v212_v46 = vpop.f32.mrf.mxu3 }
  0xa3   :  { %v224_v47 = vmax.f32 %v201_v45, 0.0 }
  0xa4   :  { %v177_v48 = vpop.f32.mrf.mxu2 }
  0xa5   :  { %v178_v49 = vadd.f32 %v345_v42, %v177_v48  ;;  %233 = vst [vmem:[%s482_s3] sm:$0xff] %v224_v47 }
  0xa6   :  { %v169_v50 = vpop.f32.mrf.mxu0 }
  0xa7   :  { %v211_v52 = vadd.f32 %v210_v40, %v178_v49  ;;  %v170_v53 = vadd.f32 %v345_v42, %v169_v50 }
  0xa9   :  { %v228_v54 = vmax.f32 %v211_v52, 0.0  ;;  %v203_v55 = vadd.f32 %v202_v51, %v170_v53 }
  0xaa   :  { %v215_v56 = vpop.f32.mrf.mxu3 }
  0xab   :  { %237 = vst [vmem:[%s482_s3 + $0x20] sm:$0xff] %v228_v54  ;;  %v225_v57 = vmax.f32 %v203_v55, 0.0 }
  0xac   :  { %v179_v58 = vpop.f32.mrf.mxu2 }
  0xad   :  { %v180_v59 = vadd.f32 %v345_v42, %v179_v58  ;;  %234 = vst [vmem:[%s482_s3 + $0x8] sm:$0xff] %v225_v57 }
  0xae   :  { %v172_v60 = vpop.f32.mrf.mxu0 }
  0xaf   :  { %v213_v61 = vadd.f32 %v212_v46, %v180_v59  ;;  %v173_v62 = vadd.f32 %v345_v42, %v172_v60 }
  0xb1   :  { %v229_v63 = vmax.f32 %v213_v61, 0.0  ;;  %v206_v0 = vadd.f32 %v205_v38, %v173_v62 }
  0xb2   :  { %v217_v1 = vpop.f32.mrf.mxu3 }
  0xb3   :  { %238 = vst [vmem:[%s482_s3 + $0x28] sm:$0xff] %v229_v63  ;;  %v226_v2 = vmax.f32 %v206_v0, 0.0 }
  0xb4   :  { %v182_v3 = vpop.f32.mrf.mxu2 }
  0xb5   :  { %235 = vst [vmem:[%s482_s3 + $0x10] sm:$0xff] %v226_v2  ;;  %v183_v4 = vadd.f32 %v345_v42, %v182_v3 }
  0xb6   :  { %v174_v5 = vpop.f32.mrf.mxu0 }
  0xb7   :  { %v216_v6 = vadd.f32 %v215_v56, %v183_v4  ;;  %v175_v7 = vadd.f32 %v345_v42, %v174_v5 }
  0xb9   :  { %v230_v8 = vmax.f32 %v216_v6, 0.0  ;;  %v208_v9 = vadd.f32 %v207_v39, %v175_v7 }
  0xba   :  { %v220_v10 = vpop.f32.mrf.mxu3 }
  0xbb   :  { %239 = vst [vmem:[%s482_s3 + $0x30] sm:$0xff] %v230_v8  ;;  %v227_v11 = vmax.f32 %v208_v9, 0.0 }
  0xbc   :  { %v184_v12 = vpop.f32.mrf.mxu2 }
  0xbd   :  { %236 = vst [vmem:[%s482_s3 + $0x18] sm:$0xff] %v227_v11  ;;  %v185_v13 = vadd.f32 %v345_v42, %v184_v12 }
  0xbf   :  { %v218_v14 = vadd.f32 %v217_v1, %v185_v13 }
  0xc1   :  { %v231_v15 = vmax.f32 %v218_v14, 0.0 }
  0xc2   :  { %v222_v16 = vpop.f32.mrf.mxu3 }
  0xc3   :  { %240 = vst [vmem:[%s482_s3 + $0x38] sm:$0xff] %v231_v15 }
  0xc4   :  { %v187_v17 = vpop.f32.mrf.mxu2 }
  0xc5   :  { %v188_v18 = vadd.f32 %v345_v42, %v187_v17 }
  0xc7   :  { %v221_v19 = vadd.f32 %v220_v10, %v188_v18 }
  0xc9   :  { %v232_v20 = vmax.f32 %v221_v19, 0.0 }
  0xcb   :  { %241 = vst [vmem:[%s482_s3 + $0x40] sm:$0xff] %v232_v20 }
  0xcc   :  { %v189_v21 = vpop.f32.mrf.mxu2 }

// kernel: pspnet2_forward.17
= control target key start
LH: loop header
LB: loop body
LE: loop exit
PB: predicated region body
PF: predicated region fallthrough
CT: control target
= control target key end

     0   :  { %vm251_vm0 = vcmask 261120   ;;  %s758_s1 = inlined_call_operand.vmem [shape: bf16[288,128], index: 1, kind: input, shape index: {}]   ;;  %s759_s0 = inlined_call_operand.vmem [shape: bf16[72,288], index: 0, kind: input, shape index: {}]   ;;  %s760_s2 = inlined_call_operand.vmem [shape: f32[1,128], index: 2, kind: input, shape index: {}]   ;;  %s761_s3 = inlined_call_operand.vmem [shape: f32[72,128], index: 3, kind: output, shape index: {}]  }
   0x1   :  { %v532_v0 = vld [vmem:[%s758_s1 + $0x38] sm:$0xff]  ;;  %v542_v2 = vld [vmem:[%s758_s1 + $0x88] sm:$0xff]  ;;  %v531_v3 = vld [vmem:[%s758_s1 + $0x30] sm:$0xff] }
   0x2   :  { %v540_v1 = vld [vmem:[%s758_s1 + $0x78] sm:$0xff]  ;;  %267 = vmatpush.bf16.msra.mxu0 %v532_v0  ;;  %543 = vmatpush.bf16.msra.mxu3 %v532_v0  ;;  %v539_v4 = vld [vmem:[%s758_s1 + $0x70] sm:$0xff]  ;;  %v541_v5 = vld [vmem:[%s758_s1 + $0x80] sm:$0xff] }
   0x3   :  { %551 = vmatpush.bf16.msra.mxu1 %v540_v1  ;;  %339 = vmatpush.bf16.msra.mxu2 %v542_v2  ;;  %v398_v6 = vld [vmem:[%s759_s0 + $0x8] sm:$0xf]  ;;  %v515_v7 = vld [vmem:[%s759_s0 + $0x10] sm:$0xf0]  ;;  %v529_v11 = vld [vmem:[%s758_s1 + $0x20] sm:$0xff] }
   0x4   :  { %v530_v8 = vld [vmem:[%s758_s1 + $0x28] sm:$0xff]  ;;  %v399_v10 = vor.u32 %v515_v7, %v398_v6  ;;  %v537_v12 = vld [vmem:[%s758_s1 + $0x60] sm:$0xff]  ;;  %v528_v13 = vld [vmem:[%s758_s1 + $0x18] sm:$0xff] }
   0x5   :  { %v538_v9 = vld [vmem:[%s758_s1 + $0x68] sm:$0xff]  ;;  %v536_v14 = vld [vmem:[%s758_s1 + $0x58] sm:$0xff]  ;;  %v527_v15 = vld [vmem:[%s758_s1 + $0x10] sm:$0xff] }
   0x6   :  { %268 = vmatpush.bf16.msra.mxu0 %v531_v3  ;;  %544 = vmatpush.bf16.msra.mxu3 %v531_v3  ;;  %v535_v16 = vld [vmem:[%s758_s1 + $0x50] sm:$0xff]  ;;  %v410_v17 = vld [vmem:[%s759_s0 + $0x20] sm:$0xf]  ;;  %v518_v18 = vld [vmem:[%s759_s0 + $0x28] sm:$0xf0] }
   0x7   :  { %552 = vmatpush.bf16.msra.mxu1 %v539_v4  ;;  %340 = vmatpush.bf16.msra.mxu2 %v541_v5  ;;  %v526_v19 = vld [vmem:[%s758_s1 + $0x8] sm:$0xff]  ;;  %v411_v21 = vor.u32 %v518_v18, %v410_v17  ;;  %v525_v22 = vld [vmem:[%s758_s1] sm:$0xff]  ;;  %v402_v23 = vld [vmem:[%s759_s0 + $0x18] sm:$0xf] }
   0x8   :  { %v534_v20 = vld [vmem:[%s758_s1 + $0x48] sm:$0xff]  ;;  %v517_v24 = vld [vmem:[%s759_s0 + $0x20] sm:$0xf0]  ;;  %v390_v25 = vld [vmem:[%s759_s0] sm:$0xf] }
   0x9   :  { %v514_v26 = vld [vmem:[%s759_s0 + $0x8] sm:$0xf0]  ;;  %v533_v27 = vld [vmem:[%s758_s1 + $0x40] sm:$0xff]  ;;  %v516_v28 = vld [vmem:[%s759_s0 + $0x1c] sm:$0xf]  ;;  %v403_v30 = vor.u32 %v517_v24, %v402_v23 }
   0xa   :  { %269 = vmatpush.bf16.msra.mxu0 %v530_v8  ;;  %545 = vmatpush.bf16.msra.mxu3 %v530_v8  ;;  %v404_v29 = vld [vmem:[%s759_s0 + $0x24] sm:$0xf0]  ;;  %v391_v31 = vor.u32 %v514_v26, %v390_v25  ;;  %v422_v33 = vld [vmem:[%s759_s0 + $0x38] sm:$0xf]  ;;  %v521_v34 = vld [vmem:[%s759_s0 + $0x40] sm:$0xf0] }
   0xb   :  { %553 = vmatpush.bf16.msra.mxu1 %v538_v9  ;;  %508 = vmatmul.msk.bf16.vlgmr.msra.gmra.mxu2 %vm251_vm0, %v399_v10  ;;  %v407_v32 = vor.u32 %v516_v28, %v404_v29  ;;  %v423_v35 = vor.u32 %v521_v34, %v422_v33  ;;  %v414_v36 = vld [vmem:[%s759_s0 + $0x30] sm:$0xf]  ;;  %v520_v37 = vld [vmem:[%s759_s0 + $0x38] sm:$0xf0]  ;;  %v519_v38 = vld [vmem:[%s759_s0 + $0x34] sm:$0xf] }
   0xc   :  { %v416_v39 = vld [vmem:[%s759_s0 + $0x3c] sm:$0xf0]  ;;  %v415_v40 = vor.u32 %v520_v37, %v414_v36  ;;  %v434_v42 = vld [vmem:[%s759_s0 + $0x50] sm:$0xf]  ;;  %v524_v43 = vld [vmem:[%s759_s0 + $0x58] sm:$0xf0] }
   0xd   :  { %v419_v41 = vor.u32 %v519_v38, %v416_v39  ;;  %v435_v44 = vor.u32 %v524_v43, %v434_v42  ;;  %v513_v45 = vld [vmem:[%s759_s0 + $0x4] sm:$0xf]  ;;  %v392_v46 = vld [vmem:[%s759_s0 + $0xc] sm:$0xf0]  ;;  %v426_v48 = vld [vmem:[%s759_s0 + $0x48] sm:$0xf] }
   0xe   :  { %270 = vmatpush.bf16.msra.mxu0 %v529_v11  ;;  %546 = vmatpush.bf16.msra.mxu3 %v529_v11  ;;  %v395_v47 = vor.u32 %v513_v45, %v392_v46  ;;  %v523_v49 = vld [vmem:[%s759_s0 + $0x50] sm:$0xf0]  ;;  %v522_v50 = vld [vmem:[%s759_s0 + $0x4c] sm:$0xf]  ;;  %v428_v51 = vld [vmem:[%s759_s0 + $0x54] sm:$0xf0] }
   0xf   :  { %554 = vmatpush.bf16.msra.mxu1 %v537_v12  ;;  %v427_v52 = vor.u32 %v523_v49, %v426_v48  ;;  %v431_v53 = vor.u32 %v522_v50, %v428_v51  ;;  %v32_v54 = vld [vmem:[%s759_s0 + $0x68] sm:$0xf]  ;;  %v31_v56 = vld [vmem:[%s759_s0 + $0x60] sm:$0xff] }
  0x10   :  { %v117_v55 = vunpack.c.l.b16 %v32_v54  ;;  %v115_v58 = vunpack.c.l.b16 %v31_v56  ;;  %v116_v59 = vunpack.c.h.b16 %v31_v56  ;;  %v720_v2 = vld [vmem:[%s760_s2] ss:$0 sm:$0xff] }
  0x12   :  { %271 = vmatpush.bf16.msra.mxu0 %v528_v13  ;;  %547 = vmatpush.bf16.msra.mxu3 %v528_v13  ;;  %v132_v57 = vpack.c.b16 %v117_v55, %v117_v55  ;;  %v130_v60 = vpack.c.b16 %v115_v58, %v115_v58  ;;  %v131_v61 = vpack.c.b16 %v116_v59, %v116_v59 }
  0x13   :  { %555 = vmatpush.bf16.msra.mxu1 %v536_v14 }
  0x16   :  { %272 = vmatpush.bf16.msra.mxu0 %v527_v15  ;;  %548 = vmatpush.bf16.msra.mxu3 %v527_v15 }
  0x17   :  { %556 = vmatpush.bf16.msra.mxu1 %v535_v16 }
  0x1a   :  { %273 = vmatpush.bf16.msra.mxu0 %v526_v19  ;;  %549 = vmatpush.bf16.msra.mxu3 %v526_v19 }
  0x1b   :  { %557 = vmatpush.bf16.msra.mxu1 %v534_v20  ;;  %509 = vmatmul.msk.bf16.gmra.mxu2 %vm251_vm0, %v411_v21 }
  0x1e   :  { %274 = vmatpush.bf16.msra.mxu0 %v525_v22  ;;  %550 = vmatpush.bf16.msra.mxu3 %v525_v22 }
  0x1f   :  { %558 = vmatpush.bf16.msra.mxu1 %v533_v27 }
  0x21   :  { %280 = vmatmul.bf16.vlgmr.msra.gmra.mxu3 %v403_v30  ;;  %275 = vmatmul.bf16.vlgmr.msra.gmra.mxu0 %v391_v31 }
  0x22   :  { %300 = vmatpush.bf16.msrb.mxu0 %v540_v1  ;;  %313 = vmatmul.bf16.vlgmr.msra.gmra.mxu1 %v407_v32 }
  0x26   :  { %301 = vmatpush.bf16.msrb.mxu0 %v539_v4 }
  0x2a   :  { %302 = vmatpush.bf16.msrb.mxu0 %v538_v9 }
  0x2b   :  { %510 = vmatmul.msk.bf16.gmra.mxu2 %vm251_vm0, %v423_v35 }
  0x2e   :  { %303 = vmatpush.bf16.msrb.mxu0 %v537_v12 }
  0x31   :  { %285 = vmatmul.bf16.gmra.mxu3 %v415_v40 }
  0x32   :  { %304 = vmatpush.bf16.msrb.mxu0 %v536_v14  ;;  %318 = vmatmul.bf16.gmra.mxu1 %v419_v41 }
  0x36   :  { %305 = vmatpush.bf16.msrb.mxu0 %v535_v16 }
  0x3a   :  { %306 = vmatpush.bf16.msrb.mxu0 %v534_v20 }
  0x3b   :  { %511 = vmatmul.msk.bf16.gmra.mxu2 %vm251_vm0, %v435_v44 }
  0x3e   :  { %307 = vmatpush.bf16.msrb.mxu0 %v533_v27 }
  0x41   :  { %308 = vmatmul.bf16.vlgmr.msrb.gmra.mxu0 %v395_v47  ;;  %290 = vmatmul.bf16.gmra.mxu3 %v427_v52 }
  0x42   :  { %323 = vmatmul.bf16.gmra.mxu1 %v431_v53 }
  0x4b   :  { %512 = vmatmul.msk.bf16.gmra.mxu2 %vm251_vm0, %v132_v57 }
  0x51   :  { %295 = vmatmul.bf16.gmra.mxu3 %v130_v60 }
  0x52   :  { %328 = vmatmul.bf16.gmra.mxu1 %v131_v61 }
  0x8e   :  { %v342_v62 = vpop.f32.mrf.mxu2 }
  0x96   :  { %v344_v63 = vpop.f32.mrf.mxu2 }
  0x9e   :  { %v347_v0 = vpop.f32.mrf.mxu2  ;;  %v276_v8 = vpop.f32.mrf.mxu0 }
  0x9f   :  { %v314_v1 = vpop.f32.mrf.mxu1  ;;  %v277_v24 = vadd.f32 %v720_v2, %v276_v8 }
  0xa4   :  { %v281_v3 = vpop.f32.mrf.mxu3 }
  0xa5   :  { %v282_v4 = vadd.f32 %v720_v2, %v281_v3 }
  0xa6   :  { %v349_v5 = vpop.f32.mrf.mxu2  ;;  %v278_v17 = vpop.f32.mrf.mxu0 }
  0xa7   :  { %v315_v6 = vadd.f32 %v314_v1, %v282_v4  ;;  %v316_v7 = vpop.f32.mrf.mxu1  ;;  %v279_v37 = vadd.f32 %v720_v2, %v278_v17 }
  0xa9   :  { %v348_v9 = vadd.f32 %v347_v0, %v315_v6 }
  0xab   :  { %v368_v10 = vmax.f32 %v348_v9, 0.0 }
  0xac   :  { %v283_v11 = vpop.f32.mrf.mxu3 }
  0xad   :  { %377 = vst [vmem:[%s761_s3 + $0x10] sm:$0xff] %v368_v10  ;;  %v284_v12 = vadd.f32 %v720_v2, %v283_v11 }
  0xae   :  { %v352_v13 = vpop.f32.mrf.mxu2 }
  0xaf   :  { %v317_v14 = vadd.f32 %v316_v7, %v284_v12  ;;  %v319_v15 = vpop.f32.mrf.mxu1 }
  0xb1   :  { %v350_v16 = vadd.f32 %v349_v5, %v317_v14 }
  0xb3   :  { %v369_v18 = vmax.f32 %v350_v16, 0.0 }
  0xb4   :  { %v286_v19 = vpop.f32.mrf.mxu3 }
  0xb5   :  { %378 = vst [vmem:[%s761_s3 + $0x18] sm:$0xff] %v369_v18  ;;  %v287_v20 = vadd.f32 %v720_v2, %v286_v19 }
  0xb6   :  { %v354_v21 = vpop.f32.mrf.mxu2 }
  0xb7   :  { %v320_v22 = vadd.f32 %v319_v15, %v287_v20  ;;  %v321_v23 = vpop.f32.mrf.mxu1 }
  0xb9   :  { %v353_v25 = vadd.f32 %v352_v13, %v320_v22 }
  0xbb   :  { %v370_v26 = vmax.f32 %v353_v25, 0.0 }
  0xbc   :  { %v288_v29 = vpop.f32.mrf.mxu3 }
  0xbd   :  { %379 = vst [vmem:[%s761_s3 + $0x20] sm:$0xff] %v370_v26  ;;  %v289_v30 = vadd.f32 %v720_v2, %v288_v29 }
  0xbe   :  { %v309_v27 = vpop.f32.mrf.mxu0  ;;  %v357_v32 = vpop.f32.mrf.mxu2 }
  0xbf   :  { %v310_v28 = vadd.f32 %v309_v27, %v277_v24  ;;  %v322_v33 = vadd.f32 %v321_v23, %v289_v30  ;;  %v324_v34 = vpop.f32.mrf.mxu1 }
  0xc1   :  { %v343_v31 = vadd.f32 %v342_v62, %v310_v28  ;;  %v355_v36 = vadd.f32 %v354_v21, %v322_v33 }
  0xc3   :  { %v366_v35 = vmax.f32 %v343_v31, 0.0  ;;  %v371_v38 = vmax.f32 %v355_v36, 0.0 }
  0xc4   :  { %v291_v41 = vpop.f32.mrf.mxu3 }
  0xc5   :  { %375 = vst [vmem:[%s761_s3] sm:$0xff] %v366_v35  ;;  %v292_v42 = vadd.f32 %v720_v2, %v291_v41 }
  0xc6   :  { %v311_v39 = vpop.f32.mrf.mxu0  ;;  %380 = vst [vmem:[%s761_s3 + $0x28] sm:$0xff] %v371_v38  ;;  %v359_v44 = vpop.f32.mrf.mxu2 }
  0xc7   :  { %v312_v40 = vadd.f32 %v311_v39, %v279_v37  ;;  %v325_v45 = vadd.f32 %v324_v34, %v292_v42  ;;  %v326_v46 = vpop.f32.mrf.mxu1 }
  0xc9   :  { %v345_v43 = vadd.f32 %v344_v63, %v312_v40  ;;  %v358_v48 = vadd.f32 %v357_v32, %v325_v45 }
  0xcb   :  { %v367_v47 = vmax.f32 %v345_v43, 0.0  ;;  %v372_v49 = vmax.f32 %v358_v48, 0.0 }
  0xcc   :  { %v293_v50 = vpop.f32.mrf.mxu3 }
  0xcd   :  { %376 = vst [vmem:[%s761_s3 + $0x8] sm:$0xff] %v367_v47  ;;  %v294_v51 = vadd.f32 %v720_v2, %v293_v50 }
  0xce   :  { %381 = vst [vmem:[%s761_s3 + $0x30] sm:$0xff] %v372_v49  ;;  %v362_v52 = vpop.f32.mrf.mxu2 }
  0xcf   :  { %v327_v53 = vadd.f32 %v326_v46, %v294_v51  ;;  %v329_v54 = vpop.f32.mrf.mxu1 }
  0xd1   :  { %v360_v55 = vadd.f32 %v359_v44, %v327_v53 }
  0xd3   :  { %v373_v56 = vmax.f32 %v360_v55, 0.0 }
  0xd4   :  { %v296_v57 = vpop.f32.mrf.mxu3 }
  0xd5   :  { %382 = vst [vmem:[%s761_s3 + $0x38] sm:$0xff] %v373_v56  ;;  %v297_v58 = vadd.f32 %v720_v2, %v296_v57 }
  0xd6   :  { %v364_v59 = vpop.f32.mrf.mxu2 }
  0xd7   :  { %v330_v60 = vadd.f32 %v329_v54, %v297_v58  ;;  %v331_v61 = vpop.f32.mrf.mxu1 }
  0xd9   :  { %v363_v62 = vadd.f32 %v362_v52, %v330_v60 }
  0xdb   :  { %v374_v63 = vmax.f32 %v363_v62, 0.0 }
  0xdc   :  { %v298_v0 = vpop.f32.mrf.mxu3 }
  0xdd   :  { %383 = vst [vmem:[%s761_s3 + $0x40] sm:$0xff] %v374_v63 }

// kernel: pspnet2_forward.19
= control target key start
LH: loop header
LB: loop body
LE: loop exit
PB: predicated region body
PF: predicated region fallthrough
CT: control target
= control target key end

     0   :  { %vm77_vm0 = vcmask 1041408   ;;  %vm64_vm1 = vcmask 293888   ;;  %s224_s1 = inlined_call_operand.vmem [shape: bf16[36,128], index: 1, kind: input, shape index: {}]   ;;  %s225_s2 = inlined_call_operand.vmem [shape: f32[1,128], index: 2, kind: input, shape index: {}]   ;;  %s226_s0 = inlined_call_operand.vmem [shape: bf16[56,36], index: 0, kind: input, shape index: {}]   ;;  %s227_s3 = inlined_call_operand.vmem [shape: f32[56,128], index: 3, kind: output, shape index: {}]  }
   0x1   :  { %v26_v0 = vld [vmem:[%s224_s1 + $0x10] sm:$0x3]  ;;  %v148_v4 = vld [vmem:[%s224_s1 + $0x8] sm:$0xff]  ;;  %v21_v5 = vld [vmem:[%s226_s0 + $0x18] sm:$0xf] }
   0x2   :  { %v58_v1 = vunpack.c.l.b16 %v26_v0  ;;  %v147_v6 = vld [vmem:[%s224_s1] sm:$0xff]  ;;  %v44_v7 = vunpack.c.l.b16 %v21_v5  ;;  %v145_v9 = vld [vmem:[%s226_s0 + $0x8] sm:$0xff]  ;;  %v146_v10 = vld [vmem:[%s226_s0 + $0x10] sm:$0xff] }
   0x3   :  { %v144_v8 = vld [vmem:[%s226_s0] sm:$0xff] }
   0x4   :  { %v61_v2 = vpack.c.b16 %v58_v1, %v58_v1  ;;  %v48_v11 = vpack.c.b16 %v44_v7, %v44_v7  ;;  %v158_v12 = vld [vmem:[%s225_s2] ss:$0 sm:$0xff] }
   0x6   :  { %v79_v3 = vsel %vm77_vm0, %v61_v2, 0 }
   0x7   :  { %86 = vmatpush.bf16.msra.mxu0 %v79_v3  ;;  %149 = vmatpush.bf16.msra.mxu1 %v79_v3 }
   0x8   :  { %150 = vmatpush.bf16.msra.mxu2 %v79_v3  ;;  %151 = vmatpush.bf16.msra.mxu3 %v79_v3 }
   0xb   :  { %87 = vmatpush.bf16.msra.mxu0 %v148_v4  ;;  %152 = vmatpush.bf16.msra.mxu1 %v148_v4 }
   0xc   :  { %153 = vmatpush.bf16.msra.mxu2 %v148_v4  ;;  %154 = vmatpush.bf16.msra.mxu3 %v148_v4 }
   0xf   :  { %88 = vmatpush.bf16.msra.mxu0 %v147_v6  ;;  %155 = vmatpush.bf16.msra.mxu1 %v147_v6 }
  0x10   :  { %156 = vmatpush.bf16.msra.mxu2 %v147_v6  ;;  %157 = vmatpush.bf16.msra.mxu3 %v147_v6 }
  0x12   :  { %140 = vmatmul.msk.bf16.vlgmr.msra.gmra.mxu0 %vm64_vm1, %v144_v8  ;;  %141 = vmatmul.msk.bf16.vlgmr.msra.gmra.mxu1 %vm64_vm1, %v145_v9 }
  0x13   :  { %142 = vmatmul.msk.bf16.vlgmr.msra.gmra.mxu2 %vm64_vm1, %v146_v10  ;;  %143 = vmatmul.msk.bf16.vlgmr.msra.gmra.mxu3 %vm64_vm1, %v48_v11 }
  0x8f   :  { %v90_v13 = vpop.f32.mrf.mxu0  ;;  %v95_v14 = vpop.f32.mrf.mxu1 }
  0x90   :  { %v91_v15 = vadd.f32 %v158_v12, %v90_v13  ;;  %v96_v16 = vadd.f32 %v158_v12, %v95_v14 }
  0x92   :  { %109 = vst [vmem:[%s227_s3] sm:$0xff] %v91_v15 }
  0x93   :  { %111 = vst [vmem:[%s227_s3 + $0x10] sm:$0xff] %v96_v16 }
  0x96   :  { %v100_v17 = vpop.f32.mrf.mxu2  ;;  %v105_v18 = vpop.f32.mrf.mxu3 }
  0x97   :  { %v101_v19 = vadd.f32 %v158_v12, %v100_v17  ;;  %v106_v20 = vadd.f32 %v158_v12, %v105_v18  ;;  %v92_v21 = vpop.f32.mrf.mxu0  ;;  %v97_v22 = vpop.f32.mrf.mxu1 }
  0x98   :  { %v93_v23 = vadd.f32 %v158_v12, %v92_v21  ;;  %v98_v24 = vadd.f32 %v158_v12, %v97_v22 }
  0x99   :  { %113 = vst [vmem:[%s227_s3 + $0x20] sm:$0xff] %v101_v19 }
  0x9a   :  { %115 = vst [vmem:[%s227_s3 + $0x30] sm:$0xff] %v106_v20 }
  0x9b   :  { %110 = vst [vmem:[%s227_s3 + $0x8] sm:$0xff] %v93_v23 }
  0x9c   :  { %112 = vst [vmem:[%s227_s3 + $0x18] sm:$0xff] %v98_v24 }
  0x9e   :  { %v102_v25 = vpop.f32.mrf.mxu2  ;;  %v107_v26 = vpop.f32.mrf.mxu3 }
  0x9f   :  { %v103_v27 = vadd.f32 %v158_v12, %v102_v25 }
  0xa1   :  { %114 = vst [vmem:[%s227_s3 + $0x28] sm:$0xff] %v103_v27 }

// kernel: pspnet2_forward.18
= control target key start
LH: loop header
LB: loop body
LE: loop exit
PB: predicated region body
PF: predicated region fallthrough
CT: control target
= control target key end

     0   :  { %vm342_vm0 = vcmask 392192   ;;  %s982_s1 = inlined_call_operand.vmem [shape: bf16[432,128], index: 1, kind: input, shape index: {}]   ;;  %s983_s0 = inlined_call_operand.vmem [shape: bf16[72,432], index: 0, kind: input, shape index: {}]   ;;  %s984_s2 = inlined_call_operand.vmem [shape: f32[1,128], index: 2, kind: input, shape index: {}]   ;;  %s985_s3 = inlined_call_operand.vmem [shape: f32[72,128], index: 3, kind: output, shape index: {}]  }
   0x1   :  { %v712_v0 = vld [vmem:[%s982_s1 + $0x38] sm:$0xff]  ;;  %v711_v3 = vld [vmem:[%s982_s1 + $0x30] sm:$0xff]  ;;  %v710_v7 = vld [vmem:[%s982_s1 + $0x28] sm:$0xff] }
   0x2   :  { %v720_v1 = vld [vmem:[%s982_s1 + $0x78] sm:$0xff]  ;;  %358 = vmatpush.bf16.msra.mxu0 %v712_v0  ;;  %v719_v4 = vld [vmem:[%s982_s1 + $0x70] sm:$0xff]  ;;  %v718_v8 = vld [vmem:[%s982_s1 + $0x68] sm:$0xff] }
   0x3   :  { %v728_v2 = vld [vmem:[%s982_s1 + $0xb8] sm:$0xff]  ;;  %391 = vmatpush.bf16.msra.mxu1 %v720_v1  ;;  %v727_v5 = vld [vmem:[%s982_s1 + $0xb0] sm:$0xff]  ;;  %v726_v9 = vld [vmem:[%s982_s1 + $0xa8] sm:$0xff] }
   0x4   :  { %424 = vmatpush.bf16.msra.mxu2 %v728_v2  ;;  %v731_v6 = vld [vmem:[%s982_s1 + $0xd0] sm:$0xff]  ;;  %v730_v10 = vld [vmem:[%s982_s1 + $0xc8] sm:$0xff]  ;;  %v709_v11 = vld [vmem:[%s982_s1 + $0x20] sm:$0xff] }
   0x5   :  { %462 = vmatpush.bf16.msra.mxu3 %v731_v6  ;;  %v717_v12 = vld [vmem:[%s982_s1 + $0x60] sm:$0xff]  ;;  %v690_v15 = vld [vmem:[%s983_s0 + $0xc] sm:$0xf]  ;;  %v524_v16 = vld [vmem:[%s983_s0 + $0x18] sm:$0xf0] }
   0x6   :  { %359 = vmatpush.bf16.msra.mxu0 %v711_v3  ;;  %v725_v13 = vld [vmem:[%s982_s1 + $0xa0] sm:$0xff]  ;;  %v708_v17 = vld [vmem:[%s982_s1 + $0x18] sm:$0xff]  ;;  %v527_v20 = vor.u32 %v690_v15, %v524_v16  ;;  %v707_v21 = vld [vmem:[%s982_s1 + $0x10] sm:$0xff] }
   0x7   :  { %392 = vmatpush.bf16.msra.mxu1 %v719_v4  ;;  %v729_v14 = vld [vmem:[%s982_s1 + $0xc0] sm:$0xff]  ;;  %v716_v18 = vld [vmem:[%s982_s1 + $0x58] sm:$0xff]  ;;  %v715_v22 = vld [vmem:[%s982_s1 + $0x50] sm:$0xff] }
   0x8   :  { %425 = vmatpush.bf16.msra.mxu2 %v727_v5  ;;  %v724_v19 = vld [vmem:[%s982_s1 + $0x98] sm:$0xff]  ;;  %v723_v23 = vld [vmem:[%s982_s1 + $0x90] sm:$0xff]  ;;  %v706_v24 = vld [vmem:[%s982_s1 + $0x8] sm:$0xff] }
   0x9   :  { %463 = vmatpush.bf16.msra.mxu3 %v730_v10  ;;  %v714_v25 = vld [vmem:[%s982_s1 + $0x48] sm:$0xff]  ;;  %v705_v27 = vld [vmem:[%s982_s1] sm:$0xff]  ;;  %v691_v30 = vld [vmem:[%s983_s0 + $0xc] sm:$0xf0] }
   0xa   :  { %360 = vmatpush.bf16.msra.mxu0 %v710_v7  ;;  %v722_v26 = vld [vmem:[%s982_s1 + $0x88] sm:$0xff]  ;;  %v713_v28 = vld [vmem:[%s982_s1 + $0x40] sm:$0xff]  ;;  %v516_v32 = vld [vmem:[%s983_s0 + $0x10] sm:$0xf0] }
   0xb   :  { %393 = vmatpush.bf16.msra.mxu1 %v718_v8  ;;  %v514_v29 = vld [vmem:[%s983_s0] sm:$0xf]  ;;  %v689_v31 = vld [vmem:[%s983_s0 + $0x4] sm:$0xf]  ;;  %v522_v34 = vld [vmem:[%s983_s0 + $0x8] sm:$0xf] }
   0xc   :  { %426 = vmatpush.bf16.msra.mxu2 %v726_v9  ;;  %v721_v33 = vld [vmem:[%s982_s1 + $0x80] sm:$0xff]  ;;  %v692_v35 = vld [vmem:[%s983_s0 + $0x14] sm:$0xf0]  ;;  %v694_v36 = vld [vmem:[%s983_s0 + $0x2c] sm:$0xf]  ;;  %v515_v38 = vor.u32 %v691_v30, %v514_v29  ;;  %v519_v39 = vor.u32 %v689_v31, %v516_v32 }
   0xd   :  { %464 = vmatpush.bf16.msra.mxu3 %v729_v14  ;;  %v540_v37 = vld [vmem:[%s983_s0 + $0x38] sm:$0xf0]  ;;  %v523_v40 = vor.u32 %v692_v35, %v522_v34  ;;  %v530_v42 = vld [vmem:[%s983_s0 + $0x20] sm:$0xf]  ;;  %v695_v43 = vld [vmem:[%s983_s0 + $0x2c] sm:$0xf0] }
   0xe   :  { %361 = vmatpush.bf16.msra.mxu0 %v709_v11  ;;  %v543_v41 = vor.u32 %v694_v36, %v540_v37  ;;  %v693_v44 = vld [vmem:[%s983_s0 + $0x24] sm:$0xf]  ;;  %v532_v45 = vld [vmem:[%s983_s0 + $0x30] sm:$0xf0]  ;;  %v538_v46 = vld [vmem:[%s983_s0 + $0x28] sm:$0xf]  ;;  %v531_v50 = vor.u32 %v695_v43, %v530_v42 }
   0xf   :  { %394 = vmatpush.bf16.msra.mxu1 %v717_v12  ;;  %v696_v47 = vld [vmem:[%s983_s0 + $0x34] sm:$0xf0]  ;;  %v698_v48 = vld [vmem:[%s983_s0 + $0x4c] sm:$0xf]  ;;  %v556_v49 = vld [vmem:[%s983_s0 + $0x58] sm:$0xf0]  ;;  %v535_v51 = vor.u32 %v693_v44, %v532_v45 }
  0x10   :  { %427 = vmatpush.bf16.msra.mxu2 %v725_v13  ;;  %684 = vmatmul.msk.bf16.vlgmr.msra.gmra.mxu3 %vm342_vm0, %v527_v20  ;;  %v539_v52 = vor.u32 %v696_v47, %v538_v46  ;;  %v559_v53 = vor.u32 %v698_v48, %v556_v49  ;;  %v546_v54 = vld [vmem:[%s983_s0 + $0x40] sm:$0xf]  ;;  %v699_v55 = vld [vmem:[%s983_s0 + $0x4c] sm:$0xf0]  ;;  %v697_v56 = vld [vmem:[%s983_s0 + $0x44] sm:$0xf] }
  0x11   :  { %v548_v57 = vld [vmem:[%s983_s0 + $0x50] sm:$0xf0]  ;;  %v554_v58 = vld [vmem:[%s983_s0 + $0x48] sm:$0xf]  ;;  %v700_v59 = vld [vmem:[%s983_s0 + $0x54] sm:$0xf0]  ;;  %v547_v62 = vor.u32 %v699_v55, %v546_v54 }
  0x12   :  { %362 = vmatpush.bf16.msra.mxu0 %v708_v17  ;;  %v702_v60 = vld [vmem:[%s983_s0 + $0x6c] sm:$0xf]  ;;  %v572_v61 = vld [vmem:[%s983_s0 + $0x78] sm:$0xf0]  ;;  %v551_v63 = vor.u32 %v697_v56, %v548_v57  ;;  %v555_v0 = vor.u32 %v700_v59, %v554_v58  ;;  %v562_v3 = vld [vmem:[%s983_s0 + $0x60] sm:$0xf] }
  0x13   :  { %395 = vmatpush.bf16.msra.mxu1 %v716_v18  ;;  %v575_v1 = vor.u32 %v702_v60, %v572_v61  ;;  %v32_v2 = vld [vmem:[%s983_s0 + $0x88] sm:$0xff]  ;;  %v703_v4 = vld [vmem:[%s983_s0 + $0x6c] sm:$0xf0]  ;;  %v701_v5 = vld [vmem:[%s983_s0 + $0x64] sm:$0xf] }
  0x14   :  { %428 = vmatpush.bf16.msra.mxu2 %v724_v19  ;;  %v564_v6 = vld [vmem:[%s983_s0 + $0x70] sm:$0xf0]  ;;  %v570_v7 = vld [vmem:[%s983_s0 + $0x68] sm:$0xf]  ;;  %v704_v8 = vld [vmem:[%s983_s0 + $0x74] sm:$0xf0]  ;;  %v144_v9 = vunpack.c.h.b16 %v32_v2  ;;  %v563_v10 = vor.u32 %v703_v4, %v562_v3  ;;  %v143_v17 = vunpack.c.l.b16 %v32_v2 }
  0x15   :  { %v567_v11 = vor.u32 %v701_v5, %v564_v6  ;;  %v571_v12 = vor.u32 %v704_v8, %v570_v7  ;;  %v31_v14 = vld [vmem:[%s983_s0 + $0x80] sm:$0xff] }
  0x16   :  { %363 = vmatpush.bf16.msra.mxu0 %v707_v21  ;;  %v164_v13 = vpack.c.b16 %v144_v9, %v144_v9  ;;  %v141_v15 = vunpack.c.l.b16 %v31_v14  ;;  %v142_v16 = vunpack.c.h.b16 %v31_v14  ;;  %v163_v20 = vpack.c.b16 %v143_v17, %v143_v17 }
  0x17   :  { %396 = vmatpush.bf16.msra.mxu1 %v715_v22  ;;  %v944_v22 = vld [vmem:[%s984_s2] ss:$0 sm:$0xff] }
  0x18   :  { %429 = vmatpush.bf16.msra.mxu2 %v723_v23  ;;  %v161_v18 = vpack.c.b16 %v141_v15, %v141_v15  ;;  %v162_v19 = vpack.c.b16 %v142_v16, %v142_v16 }
  0x1a   :  { %364 = vmatpush.bf16.msra.mxu0 %v706_v24 }
  0x1b   :  { %397 = vmatpush.bf16.msra.mxu1 %v714_v25 }
  0x1c   :  { %430 = vmatpush.bf16.msra.mxu2 %v722_v26 }
  0x1e   :  { %365 = vmatpush.bf16.msra.mxu0 %v705_v27 }
  0x1f   :  { %398 = vmatpush.bf16.msra.mxu1 %v713_v28 }
  0x20   :  { %431 = vmatpush.bf16.msra.mxu2 %v721_v33  ;;  %685 = vmatmul.msk.bf16.gmra.mxu3 %vm342_vm0, %v543_v41 }
  0x21   :  { %366 = vmatmul.bf16.vlgmr.msra.gmra.mxu0 %v515_v38 }
  0x22   :  { %399 = vmatmul.bf16.vlgmr.msra.gmra.mxu1 %v519_v39 }
  0x23   :  { %432 = vmatmul.bf16.vlgmr.msra.gmra.mxu2 %v523_v40 }
  0x30   :  { %686 = vmatmul.msk.bf16.gmra.mxu3 %vm342_vm0, %v559_v53 }
  0x31   :  { %371 = vmatmul.bf16.gmra.mxu0 %v531_v50 }
  0x32   :  { %404 = vmatmul.bf16.gmra.mxu1 %v535_v51 }
  0x33   :  { %437 = vmatmul.bf16.gmra.mxu2 %v539_v52 }
  0x40   :  { %687 = vmatmul.msk.bf16.gmra.mxu3 %vm342_vm0, %v575_v1 }
  0x41   :  { %376 = vmatmul.bf16.gmra.mxu0 %v547_v62 }
  0x42   :  { %409 = vmatmul.bf16.gmra.mxu1 %v551_v63 }
  0x43   :  { %442 = vmatmul.bf16.gmra.mxu2 %v555_v0 }
  0x50   :  { %688 = vmatmul.msk.bf16.gmra.mxu3 %vm342_vm0, %v164_v13 }
  0x51   :  { %381 = vmatmul.bf16.gmra.mxu0 %v563_v10 }
  0x52   :  { %414 = vmatmul.bf16.gmra.mxu1 %v567_v11 }
  0x53   :  { %447 = vmatmul.bf16.gmra.mxu2 %v571_v12 }
  0x61   :  { %386 = vmatmul.bf16.gmra.mxu0 %v161_v18 }
  0x62   :  { %419 = vmatmul.bf16.gmra.mxu1 %v162_v19 }
  0x63   :  { %452 = vmatmul.bf16.gmra.mxu2 %v163_v20 }
  0x93   :  { %v466_v21 = vpop.f32.mrf.mxu3 }
  0x9b   :  { %v468_v26 = vpop.f32.mrf.mxu3 }
  0x9e   :  { %v367_v23 = vpop.f32.mrf.mxu0 }
  0x9f   :  { %v400_v24 = vpop.f32.mrf.mxu1  ;;  %v368_v25 = vadd.f32 %v944_v22, %v367_v23 }
  0xa1   :  { %v401_v27 = vadd.f32 %v400_v24, %v368_v25 }
  0xa3   :  { %v471_v32 = vpop.f32.mrf.mxu3 }
  0xa6   :  { %v433_v28 = vpop.f32.mrf.mxu2  ;;  %v369_v30 = vpop.f32.mrf.mxu0 }
  0xa7   :  { %v434_v29 = vadd.f32 %v433_v28, %v401_v27  ;;  %v402_v31 = vpop.f32.mrf.mxu1  ;;  %v370_v34 = vadd.f32 %v944_v22, %v369_v30 }
  0xa9   :  { %v467_v33 = vadd.f32 %v466_v21, %v434_v29  ;;  %v403_v36 = vadd.f32 %v402_v31, %v370_v34 }
  0xab   :  { %v490_v35 = vmax.f32 %v467_v33, 0.0  ;;  %v473_v42 = vpop.f32.mrf.mxu3 }
  0xad   :  { %499 = vst [vmem:[%s985_s3] sm:$0xff] %v490_v35 }
  0xae   :  { %v435_v37 = vpop.f32.mrf.mxu2  ;;  %v372_v39 = vpop.f32.mrf.mxu0 }
  0xaf   :  { %v436_v38 = vadd.f32 %v435_v37, %v403_v36  ;;  %v405_v40 = vpop.f32.mrf.mxu1  ;;  %v373_v41 = vadd.f32 %v944_v22, %v372_v39 }
  0xb1   :  { %v469_v43 = vadd.f32 %v468_v26, %v436_v38  ;;  %v406_v45 = vadd.f32 %v405_v40, %v373_v41 }
  0xb3   :  { %v491_v44 = vmax.f32 %v469_v43, 0.0  ;;  %v476_v50 = vpop.f32.mrf.mxu3 }
  0xb5   :  { %500 = vst [vmem:[%s985_s3 + $0x8] sm:$0xff] %v491_v44 }
  0xb6   :  { %v438_v46 = vpop.f32.mrf.mxu2  ;;  %v374_v48 = vpop.f32.mrf.mxu0 }
  0xb7   :  { %v439_v47 = vadd.f32 %v438_v46, %v406_v45  ;;  %v407_v49 = vpop.f32.mrf.mxu1  ;;  %v375_v52 = vadd.f32 %v944_v22, %v374_v48 }
  0xb9   :  { %v472_v51 = vadd.f32 %v471_v32, %v439_v47  ;;  %v408_v54 = vadd.f32 %v407_v49, %v375_v52 }
  0xbb   :  { %v492_v53 = vmax.f32 %v472_v51, 0.0  ;;  %v478_v60 = vpop.f32.mrf.mxu3 }
  0xbd   :  { %501 = vst [vmem:[%s985_s3 + $0x10] sm:$0xff] %v492_v53 }
  0xbe   :  { %v440_v55 = vpop.f32.mrf.mxu2  ;;  %v377_v57 = vpop.f32.mrf.mxu0 }
  0xbf   :  { %v441_v56 = vadd.f32 %v440_v55, %v408_v54  ;;  %v410_v58 = vpop.f32.mrf.mxu1  ;;  %v378_v59 = vadd.f32 %v944_v22, %v377_v57 }
  0xc1   :  { %v474_v61 = vadd.f32 %v473_v42, %v441_v56  ;;  %v411_v63 = vadd.f32 %v410_v58, %v378_v59 }
  0xc3   :  { %v493_v62 = vmax.f32 %v474_v61, 0.0  ;;  %v481_v4 = vpop.f32.mrf.mxu3 }
  0xc5   :  { %502 = vst [vmem:[%s985_s3 + $0x18] sm:$0xff] %v493_v62 }
  0xc6   :  { %v443_v0 = vpop.f32.mrf.mxu2  ;;  %v379_v2 = vpop.f32.mrf.mxu0 }
  0xc7   :  { %v444_v1 = vadd.f32 %v443_v0, %v411_v63  ;;  %v412_v3 = vpop.f32.mrf.mxu1  ;;  %v380_v6 = vadd.f32 %v944_v22, %v379_v2 }
  0xc9   :  { %v477_v5 = vadd.f32 %v476_v50, %v444_v1  ;;  %v413_v8 = vadd.f32 %v412_v3, %v380_v6 }
  0xcb   :  { %v494_v7 = vmax.f32 %v477_v5, 0.0  ;;  %v483_v14 = vpop.f32.mrf.mxu3 }
  0xcd   :  { %503 = vst [vmem:[%s985_s3 + $0x20] sm:$0xff] %v494_v7 }
  0xce   :  { %v445_v9 = vpop.f32.mrf.mxu2  ;;  %v382_v11 = vpop.f32.mrf.mxu0 }
  0xcf   :  { %v446_v10 = vadd.f32 %v445_v9, %v413_v8  ;;  %v415_v12 = vpop.f32.mrf.mxu1  ;;  %v383_v13 = vadd.f32 %v944_v22, %v382_v11 }
  0xd1   :  { %v479_v15 = vadd.f32 %v478_v60, %v446_v10  ;;  %v416_v17 = vadd.f32 %v415_v12, %v383_v13 }
  0xd3   :  { %v495_v16 = vmax.f32 %v479_v15, 0.0  ;;  %v486_v23 = vpop.f32.mrf.mxu3 }
  0xd5   :  { %504 = vst [vmem:[%s985_s3 + $0x28] sm:$0xff] %v495_v16 }
  0xd6   :  { %v448_v18 = vpop.f32.mrf.mxu2  ;;  %v384_v20 = vpop.f32.mrf.mxu0 }
  0xd7   :  { %v449_v19 = vadd.f32 %v448_v18, %v416_v17  ;;  %v417_v21 = vpop.f32.mrf.mxu1  ;;  %v385_v25 = vadd.f32 %v944_v22, %v384_v20 }
  0xd9   :  { %v482_v24 = vadd.f32 %v481_v4, %v449_v19  ;;  %v418_v27 = vadd.f32 %v417_v21, %v385_v25 }
  0xdb   :  { %v496_v26 = vmax.f32 %v482_v24, 0.0  ;;  %v488_v33 = vpop.f32.mrf.mxu3 }
  0xdd   :  { %505 = vst [vmem:[%s985_s3 + $0x30] sm:$0xff] %v496_v26 }
  0xde   :  { %v450_v28 = vpop.f32.mrf.mxu2  ;;  %v387_v30 = vpop.f32.mrf.mxu0 }
  0xdf   :  { %v451_v29 = vadd.f32 %v450_v28, %v418_v27  ;;  %v420_v31 = vpop.f32.mrf.mxu1  ;;  %v388_v32 = vadd.f32 %v944_v22, %v387_v30 }
  0xe1   :  { %v484_v34 = vadd.f32 %v483_v14, %v451_v29  ;;  %v421_v36 = vadd.f32 %v420_v31, %v388_v32 }
  0xe3   :  { %v497_v35 = vmax.f32 %v484_v34, 0.0 }
  0xe5   :  { %506 = vst [vmem:[%s985_s3 + $0x38] sm:$0xff] %v497_v35 }
  0xe6   :  { %v453_v37 = vpop.f32.mrf.mxu2  ;;  %v389_v39 = vpop.f32.mrf.mxu0 }
  0xe7   :  { %v454_v38 = vadd.f32 %v453_v37, %v421_v36  ;;  %v422_v40 = vpop.f32.mrf.mxu1 }
  0xe9   :  { %v487_v41 = vadd.f32 %v486_v23, %v454_v38 }
  0xeb   :  { %v498_v42 = vmax.f32 %v487_v41, 0.0 }
  0xed   :  { %507 = vst [vmem:[%s985_s3 + $0x40] sm:$0xff] %v498_v42 }
  0xee   :  { %v455_v43 = vpop.f32.mrf.mxu2 }

// kernel: pspnet2_forward.20
= control target key start
LH: loop header
LB: loop body
LE: loop exit
PB: predicated region body
PF: predicated region fallthrough
CT: control target
= control target key end

     0   :  { %vm97_vm0 = vcmask 523264   ;;  %s364_s1 = inlined_call_operand.vmem [shape: bf16[64,128], index: 1, kind: input, shape index: {}]   ;;  %s365_s2 = inlined_call_operand.vmem [shape: f32[1,128], index: 2, kind: input, shape index: {}]   ;;  %s366_s0 = inlined_call_operand.vmem [shape: bf16[104,64], index: 0, kind: input, shape index: {}]   ;;  %s367_s3 = inlined_call_operand.vmem [shape: f32[104,128], index: 3, kind: output, shape index: {}]  }
   0x1   :  { %v248_v0 = vld [vmem:[%s364_s1 + $0x18] sm:$0xff]  ;;  %v247_v1 = vld [vmem:[%s364_s1 + $0x10] sm:$0xff]  ;;  %v246_v2 = vld [vmem:[%s364_s1 + $0x8] sm:$0xff] }
   0x2   :  { %123 = vmatpush.bf16.msra.mxu0 %v248_v0  ;;  %249 = vmatpush.bf16.msra.mxu1 %v248_v0  ;;  %v245_v3 = vld [vmem:[%s364_s1] sm:$0xff]  ;;  %v241_v5 = vld [vmem:[%s366_s0 + $0x10] sm:$0xff]  ;;  %v244_v6 = vld [vmem:[%s366_s0 + $0x28] sm:$0xff] }
   0x3   :  { %251 = vmatpush.bf16.msra.mxu3 %v248_v0  ;;  %250 = vmatpush.bf16.msra.mxu2 %v248_v0  ;;  %v239_v4 = vld [vmem:[%s366_s0] sm:$0xff]  ;;  %v27_v8 = vld [vmem:[%s366_s0 + $0x30] sm:$0xf]  ;;  %v240_v10 = vld [vmem:[%s366_s0 + $0x8] sm:$0xff] }
   0x4   :  { %v243_v7 = vld [vmem:[%s366_s0 + $0x20] sm:$0xff]  ;;  %v65_v9 = vunpack.c.l.b16 %v27_v8  ;;  %v242_v11 = vld [vmem:[%s366_s0 + $0x18] sm:$0xff] }
   0x5   :  { %v261_v13 = vld [vmem:[%s365_s2] ss:$0 sm:$0xff] }
   0x6   :  { %124 = vmatpush.bf16.msra.mxu0 %v247_v1  ;;  %252 = vmatpush.bf16.msra.mxu1 %v247_v1  ;;  %v72_v12 = vpack.c.b16 %v65_v9, %v65_v9 }
   0x7   :  { %254 = vmatpush.bf16.msra.mxu3 %v247_v1  ;;  %253 = vmatpush.bf16.msra.mxu2 %v247_v1 }
   0xa   :  { %125 = vmatpush.bf16.msra.mxu0 %v246_v2  ;;  %255 = vmatpush.bf16.msra.mxu1 %v246_v2 }
   0xb   :  { %257 = vmatpush.bf16.msra.mxu3 %v246_v2  ;;  %256 = vmatpush.bf16.msra.mxu2 %v246_v2 }
   0xe   :  { %126 = vmatpush.bf16.msra.mxu0 %v245_v3  ;;  %258 = vmatpush.bf16.msra.mxu1 %v245_v3 }
   0xf   :  { %260 = vmatpush.bf16.msra.mxu3 %v245_v3  ;;  %259 = vmatpush.bf16.msra.mxu2 %v245_v3 }
  0x11   :  { %232 = vmatmul.msk.bf16.vlgmr.msra.gmra.mxu0 %vm97_vm0, %v239_v4  ;;  %234 = vmatmul.msk.bf16.vlgmr.msra.gmra.mxu1 %vm97_vm0, %v241_v5 }
  0x12   :  { %237 = vmatmul.msk.bf16.vlgmr.msra.gmra.mxu3 %vm97_vm0, %v244_v6  ;;  %236 = vmatmul.msk.bf16.vlgmr.msra.gmra.mxu2 %vm97_vm0, %v243_v7 }
  0x21   :  { %233 = vmatmul.msk.bf16.gmra.mxu0 %vm97_vm0, %v240_v10  ;;  %235 = vmatmul.msk.bf16.gmra.mxu1 %vm97_vm0, %v242_v11 }
  0x22   :  { %238 = vmatmul.msk.bf16.gmra.mxu3 %vm97_vm0, %v72_v12 }
  0x8e   :  { %v128_v14 = vpop.f32.mrf.mxu0  ;;  %v138_v15 = vpop.f32.mrf.mxu1 }
  0x8f   :  { %v129_v16 = vadd.f32 %v261_v13, %v128_v14  ;;  %v139_v17 = vadd.f32 %v261_v13, %v138_v15 }
  0x91   :  { %v162_v18 = vmax.f32 %v129_v16, 0.0  ;;  %v166_v19 = vmax.f32 %v139_v17, 0.0 }
  0x93   :  { %175 = vst [vmem:[%s367_s3] sm:$0xff] %v162_v18 }
  0x94   :  { %179 = vst [vmem:[%s367_s3 + $0x20] sm:$0xff] %v166_v19 }
  0x95   :  { %v153_v20 = vpop.f32.mrf.mxu3  ;;  %v148_v21 = vpop.f32.mrf.mxu2 }
  0x96   :  { %v154_v22 = vadd.f32 %v261_v13, %v153_v20  ;;  %v130_v23 = vpop.f32.mrf.mxu0  ;;  %v140_v24 = vpop.f32.mrf.mxu1  ;;  %v149_v25 = vadd.f32 %v261_v13, %v148_v21 }
  0x97   :  { %v131_v26 = vadd.f32 %v261_v13, %v130_v23  ;;  %v141_v27 = vadd.f32 %v261_v13, %v140_v24 }
  0x98   :  { %v172_v28 = vmax.f32 %v154_v22, 0.0  ;;  %v170_v31 = vmax.f32 %v149_v25, 0.0 }
  0x99   :  { %v163_v29 = vmax.f32 %v131_v26, 0.0  ;;  %v167_v30 = vmax.f32 %v141_v27, 0.0 }
  0x9a   :  { %185 = vst [vmem:[%s367_s3 + $0x50] sm:$0xff] %v172_v28 }
  0x9b   :  { %176 = vst [vmem:[%s367_s3 + $0x8] sm:$0xff] %v163_v29 }
  0x9c   :  { %180 = vst [vmem:[%s367_s3 + $0x28] sm:$0xff] %v167_v30 }
  0x9d   :  { %183 = vst [vmem:[%s367_s3 + $0x40] sm:$0xff] %v170_v31  ;;  %v155_v32 = vpop.f32.mrf.mxu3  ;;  %v150_v33 = vpop.f32.mrf.mxu2 }
  0x9e   :  { %v156_v34 = vadd.f32 %v261_v13, %v155_v32  ;;  %v133_v35 = vpop.f32.mrf.mxu0  ;;  %v143_v36 = vpop.f32.mrf.mxu1  ;;  %v151_v37 = vadd.f32 %v261_v13, %v150_v33 }
  0x9f   :  { %v134_v38 = vadd.f32 %v261_v13, %v133_v35  ;;  %v144_v39 = vadd.f32 %v261_v13, %v143_v36 }
  0xa0   :  { %v173_v40 = vmax.f32 %v156_v34, 0.0  ;;  %v171_v43 = vmax.f32 %v151_v37, 0.0 }
  0xa1   :  { %v164_v41 = vmax.f32 %v134_v38, 0.0  ;;  %v168_v42 = vmax.f32 %v144_v39, 0.0 }
  0xa2   :  { %186 = vst [vmem:[%s367_s3 + $0x58] sm:$0xff] %v173_v40 }
  0xa3   :  { %177 = vst [vmem:[%s367_s3 + $0x10] sm:$0xff] %v164_v41 }
  0xa4   :  { %181 = vst [vmem:[%s367_s3 + $0x30] sm:$0xff] %v168_v42 }
  0xa5   :  { %184 = vst [vmem:[%s367_s3 + $0x48] sm:$0xff] %v171_v43  ;;  %v158_v44 = vpop.f32.mrf.mxu3 }
  0xa6   :  { %v159_v45 = vadd.f32 %v261_v13, %v158_v44  ;;  %v135_v46 = vpop.f32.mrf.mxu0  ;;  %v145_v47 = vpop.f32.mrf.mxu1 }
  0xa7   :  { %v136_v48 = vadd.f32 %v261_v13, %v135_v46  ;;  %v146_v49 = vadd.f32 %v261_v13, %v145_v47 }
  0xa8   :  { %v174_v50 = vmax.f32 %v159_v45, 0.0 }
  0xa9   :  { %v165_v51 = vmax.f32 %v136_v48, 0.0  ;;  %v169_v52 = vmax.f32 %v146_v49, 0.0 }
  0xaa   :  { %187 = vst [vmem:[%s367_s3 + $0x60] sm:$0xff] %v174_v50 }
  0xab   :  { %178 = vst [vmem:[%s367_s3 + $0x18] sm:$0xff] %v165_v51 }
  0xac   :  { %182 = vst [vmem:[%s367_s3 + $0x38] sm:$0xff] %v169_v52 }
  0xad   :  { %v160_v53 = vpop.f32.mrf.mxu3 }

// kernel: pspnet2_forward.21
= control target key start
LH: loop header
LB: loop body
LE: loop exit
PB: predicated region body
PF: predicated region fallthrough
CT: control target
= control target key end

     0   :  { %vm75_vm0 = vcmask 1040384   ;;  %vm65_vm1 = vcmask 408576   ;;  %s207_s1 = inlined_call_operand.vmem [shape: bf16[50,128], index: 1, kind: input, shape index: {}]   ;;  %s208_s2 = inlined_call_operand.vmem [shape: f32[1,128], index: 2, kind: input, shape index: {}]   ;;  %s209_s0 = inlined_call_operand.vmem [shape: bf16[40,50], index: 0, kind: input, shape index: {}]   ;;  %s210_s3 = inlined_call_operand.vmem [shape: f32[40,128], index: 3, kind: output, shape index: {}]  }
   0x1   :  { %v26_v0 = vld [vmem:[%s207_s1 + $0x18] sm:$0x1]  ;;  %v138_v4 = vld [vmem:[%s207_s1 + $0x10] sm:$0xff]  ;;  %v137_v5 = vld [vmem:[%s207_s1 + $0x8] sm:$0xff] }
   0x2   :  { %v57_v1 = vunpack.c.l.b16 %v26_v0  ;;  %v19_v6 = vld [vmem:[%s209_s0 + $0x10] sm:$0xf]  ;;  %v136_v7 = vld [vmem:[%s207_s1] sm:$0xff]  ;;  %v135_v10 = vld [vmem:[%s209_s0 + $0x8] sm:$0xff] }
   0x3   :  { %v40_v8 = vunpack.c.l.b16 %v19_v6  ;;  %v134_v9 = vld [vmem:[%s209_s0] sm:$0xff] }
   0x4   :  { %v61_v2 = vpack.c.b16 %v57_v1, %v57_v1  ;;  %v147_v12 = vld [vmem:[%s208_s2] ss:$0 sm:$0xff] }
   0x5   :  { %v43_v11 = vpack.c.b16 %v40_v8, %v40_v8 }
   0x6   :  { %v77_v3 = vsel %vm75_vm0, %v61_v2, 0 }
   0x7   :  { %83 = vmatpush.bf16.msra.mxu0 %v77_v3  ;;  %139 = vmatpush.bf16.msra.mxu1 %v77_v3 }
   0x8   :  { %140 = vmatpush.bf16.msra.mxu2 %v77_v3 }
   0xb   :  { %84 = vmatpush.bf16.msra.mxu0 %v138_v4  ;;  %141 = vmatpush.bf16.msra.mxu1 %v138_v4 }
   0xc   :  { %142 = vmatpush.bf16.msra.mxu2 %v138_v4 }
   0xf   :  { %85 = vmatpush.bf16.msra.mxu0 %v137_v5  ;;  %143 = vmatpush.bf16.msra.mxu1 %v137_v5 }
  0x10   :  { %144 = vmatpush.bf16.msra.mxu2 %v137_v5 }
  0x13   :  { %86 = vmatpush.bf16.msra.mxu0 %v136_v7  ;;  %145 = vmatpush.bf16.msra.mxu1 %v136_v7 }
  0x14   :  { %146 = vmatpush.bf16.msra.mxu2 %v136_v7 }
  0x16   :  { %131 = vmatmul.msk.bf16.vlgmr.msra.gmra.mxu0 %vm65_vm1, %v134_v9  ;;  %132 = vmatmul.msk.bf16.vlgmr.msra.gmra.mxu1 %vm65_vm1, %v135_v10 }
  0x17   :  { %133 = vmatmul.msk.bf16.vlgmr.msra.gmra.mxu2 %vm65_vm1, %v43_v11 }
  0x93   :  { %v88_v13 = vpop.f32.mrf.mxu0  ;;  %v93_v14 = vpop.f32.mrf.mxu1 }
  0x94   :  { %v89_v15 = vadd.f32 %v147_v12, %v88_v13  ;;  %v94_v16 = vadd.f32 %v147_v12, %v93_v14 }
  0x96   :  { %102 = vst [vmem:[%s210_s3] sm:$0xff] %v89_v15 }
  0x97   :  { %104 = vst [vmem:[%s210_s3 + $0x10] sm:$0xff] %v94_v16 }
  0x9a   :  { %v98_v17 = vpop.f32.mrf.mxu2 }
  0x9b   :  { %v99_v18 = vadd.f32 %v147_v12, %v98_v17  ;;  %v90_v19 = vpop.f32.mrf.mxu0  ;;  %v95_v20 = vpop.f32.mrf.mxu1 }
  0x9c   :  { %v91_v21 = vadd.f32 %v147_v12, %v90_v19  ;;  %v96_v22 = vadd.f32 %v147_v12, %v95_v20 }
  0x9d   :  { %106 = vst [vmem:[%s210_s3 + $0x20] sm:$0xff] %v99_v18 }
  0x9e   :  { %103 = vst [vmem:[%s210_s3 + $0x8] sm:$0xff] %v91_v21 }
  0x9f   :  { %105 = vst [vmem:[%s210_s3 + $0x18] sm:$0xff] %v96_v22 }
  0xa2   :  { %v100_v23 = vpop.f32.mrf.mxu2 }

// kernel: pspnet2_forward.23
= control target key start
LH: loop header
LB: loop body
LE: loop exit
PB: predicated region body
PF: predicated region fallthrough
CT: control target
= control target key end

     0   :  { %vm59_vm0 = vcmask 130048   ;;  %s223_s1 = inlined_call_operand.vmem [shape: bf16[16,128], index: 1, kind: input, shape index: {}]   ;;  %s224_s0 = inlined_call_operand.vmem [shape: bf16[72,16], index: 0, kind: input, shape index: {}]   ;;  %s225_s2 = inlined_call_operand.vmem [shape: f32[1,128], index: 2, kind: input, shape index: {}]   ;;  %s226_s3 = inlined_call_operand.vmem [shape: f32[72,128], index: 3, kind: output, shape index: {}]  }
   0x1   :  { %v150_v0 = vld [vmem:[%s223_s1] sm:$0xff]  ;;  %v148_v2 = vld [vmem:[%s224_s0 + $0x10] sm:$0xff]  ;;  %v147_v5 = vld [vmem:[%s224_s0 + $0x8] sm:$0xff] }
   0x2   :  { %v23_v1 = vld [vmem:[%s224_s0 + $0x20] sm:$0xf]  ;;  %152 = vmatpush.bf16.msra.mxu2 %v150_v0  ;;  %153 = vmatpush.bf16.msra.mxu3 %v150_v0  ;;  %v149_v7 = vld [vmem:[%s224_s0 + $0x18] sm:$0xff] }
   0x3   :  { %v47_v3 = vunpack.c.l.b16 %v23_v1  ;;  %v146_v4 = vld [vmem:[%s224_s0] sm:$0xff]  ;;  %82 = vmatpush.bf16.msra.mxu0 %v150_v0  ;;  %151 = vmatpush.bf16.msra.mxu1 %v150_v0 }
   0x4   :  { %v154_v8 = vld [vmem:[%s225_s2] ss:$0 sm:$0xff] }
   0x5   :  { %v52_v6 = vpack.c.b16 %v47_v3, %v47_v3  ;;  %143 = vmatmul.msk.bf16.vlgmr.msra.gmra.mxu2 %vm59_vm0, %v148_v2 }
   0x6   :  { %141 = vmatmul.msk.bf16.vlgmr.msra.gmra.mxu0 %vm59_vm0, %v146_v4  ;;  %142 = vmatmul.msk.bf16.vlgmr.msra.gmra.mxu1 %vm59_vm0, %v147_v5 }
   0x7   :  { %145 = vmatmul.msk.bf16.vlgmr.msra.gmra.mxu3 %vm59_vm0, %v52_v6 }
  0x15   :  { %144 = vmatmul.msk.bf16.gmra.mxu2 %vm59_vm0, %v149_v7 }
  0x83   :  { %v84_v9 = vpop.f32.mrf.mxu0  ;;  %v89_v10 = vpop.f32.mrf.mxu1 }
  0x84   :  { %v85_v11 = vadd.f32 %v154_v8, %v84_v9  ;;  %v90_v12 = vadd.f32 %v154_v8, %v89_v10 }
  0x86   :  { %108 = vst [vmem:[%s226_s3] sm:$0xff] %v85_v11 }
  0x87   :  { %110 = vst [vmem:[%s226_s3 + $0x10] sm:$0xff] %v90_v12 }
  0x88   :  { %v94_v13 = vpop.f32.mrf.mxu2 }
  0x89   :  { %v95_v15 = vadd.f32 %v154_v8, %v94_v13 }
  0x8a   :  { %v104_v14 = vpop.f32.mrf.mxu3 }
  0x8b   :  { %v105_v16 = vadd.f32 %v154_v8, %v104_v14  ;;  %112 = vst [vmem:[%s226_s3 + $0x20] sm:$0xff] %v95_v15  ;;  %v86_v17 = vpop.f32.mrf.mxu0  ;;  %v91_v18 = vpop.f32.mrf.mxu1 }
  0x8c   :  { %v87_v19 = vadd.f32 %v154_v8, %v86_v17  ;;  %v92_v20 = vadd.f32 %v154_v8, %v91_v18 }
  0x8d   :  { %116 = vst [vmem:[%s226_s3 + $0x40] sm:$0xff] %v105_v16 }
  0x8e   :  { %109 = vst [vmem:[%s226_s3 + $0x8] sm:$0xff] %v87_v19 }
  0x8f   :  { %111 = vst [vmem:[%s226_s3 + $0x18] sm:$0xff] %v92_v20 }
  0x90   :  { %v96_v21 = vpop.f32.mrf.mxu2 }
  0x91   :  { %v97_v23 = vadd.f32 %v154_v8, %v96_v21 }
  0x92   :  { %v106_v22 = vpop.f32.mrf.mxu3 }
  0x93   :  { %113 = vst [vmem:[%s226_s3 + $0x28] sm:$0xff] %v97_v23 }
  0x98   :  { %v99_v24 = vpop.f32.mrf.mxu2 }
  0x99   :  { %v100_v25 = vadd.f32 %v154_v8, %v99_v24 }
  0x9b   :  { %114 = vst [vmem:[%s226_s3 + $0x30] sm:$0xff] %v100_v25 }
  0xa0   :  { %v101_v26 = vpop.f32.mrf.mxu2 }
  0xa1   :  { %v102_v27 = vadd.f32 %v154_v8, %v101_v26 }
  0xa3   :  { %115 = vst [vmem:[%s226_s3 + $0x38] sm:$0xff] %v102_v27 }

// kernel: pspnet2_forward.24
= control target key start
LH: loop header
LB: loop body
LE: loop exit
PB: predicated region body
PF: predicated region fallthrough
CT: control target
= control target key end

     0   :  { %vm58_vm0 = vcmask 1042432   ;;  %vm48_vm1 = vcmask 48128   ;;  %s223_s1 = inlined_call_operand.vmem [shape: bf16[6,256], index: 1, kind: input, shape index: {}]   ;;  %s224_s0 = inlined_call_operand.vmem [shape: bf16[48,6], index: 0, kind: input, shape index: {}]   ;;  %s225_s2 = inlined_call_operand.vmem [shape: f32[1,256], index: 2, kind: input, shape index: {}]   ;;  %s226_s3 = inlined_call_operand.vmem [shape: f32[48,256], index: 3, kind: output, shape index: {}]  }
   0x1   :  { %v21_v0 = vld [vmem:[%s223_s1] sm:$0x77]  ;;  %v148_v7 = vld [vmem:[%s224_s0 + $0x8] sm:$0xff]  ;;  %v149_v9 = vld [vmem:[%s224_s0 + $0x10] sm:$0xff] }
   0x2   :  { %v44_v1 = vunpack.c.l.b16 %v21_v0  ;;  %v45_v2 = vunpack.c.h.b16 %v21_v0  ;;  %v147_v8 = vld [vmem:[%s224_s0] sm:$0xff] }
   0x3   :  { %v22_v10 = vld [vmem:[%s225_s2] sm:$0x3] }
   0x4   :  { %v46_v3 = vpack.c.b16 %v44_v1, %v44_v1  ;;  %v47_v4 = vpack.c.b16 %v45_v2, %v45_v2  ;;  %v24_v11 = vperm.slane %v22_v10, 0  ;;  %v25_v12 = vperm.slane %v22_v10, 1 }
   0x6   :  { %v60_v5 = vsel %vm58_vm0, %v46_v3, 0  ;;  %v63_v6 = vsel %vm58_vm0, %v47_v4, 0 }
   0x7   :  { %150 = vmatpush.bf16.msra.mxu2 %v60_v5  ;;  %151 = vmatpush.bf16.msra.mxu3 %v63_v6 }
   0x8   :  { %72 = vmatpush.bf16.msra.mxu0 %v60_v5  ;;  %96 = vmatpush.bf16.msra.mxu1 %v63_v6 }
   0xa   :  { %142 = vmatmul.msk.bf16.vlgmr.msra.gmra.mxu2 %vm48_vm1, %v148_v7  ;;  %145 = vmatmul.msk.bf16.vlgmr.msra.gmra.mxu3 %vm48_vm1, %v148_v7 }
   0xb   :  { %141 = vmatmul.msk.bf16.vlgmr.msra.gmra.mxu0 %vm48_vm1, %v147_v8  ;;  %144 = vmatmul.msk.bf16.vlgmr.msra.gmra.mxu1 %vm48_vm1, %v147_v8 }
  0x1a   :  { %143 = vmatmul.msk.bf16.gmra.mxu2 %vm48_vm1, %v149_v9  ;;  %146 = vmatmul.msk.bf16.gmra.mxu3 %vm48_vm1, %v149_v9 }
  0x88   :  { %v74_v13 = vpop.f32.mrf.mxu0  ;;  %v98_v14 = vpop.f32.mrf.mxu1 }
  0x89   :  { %v75_v15 = vadd.f32 %v74_v13, %v24_v11  ;;  %v99_v16 = vadd.f32 %v98_v14, %v25_v12 }
  0x8b   :  { %113 = vst [vmem:[%s226_s3] sm:$0xff] %v75_v15 }
  0x8c   :  { %114 = vst [vmem:[%s226_s3 + $0x8] sm:$0xff] %v99_v16 }
  0x8d   :  { %v79_v17 = vpop.f32.mrf.mxu2  ;;  %v103_v18 = vpop.f32.mrf.mxu3 }
  0x8e   :  { %v80_v19 = vadd.f32 %v79_v17, %v24_v11  ;;  %v104_v20 = vadd.f32 %v103_v18, %v25_v12 }
  0x90   :  { %117 = vst [vmem:[%s226_s3 + $0x20] sm:$0xff] %v80_v19  ;;  %v76_v21 = vpop.f32.mrf.mxu0  ;;  %v100_v22 = vpop.f32.mrf.mxu1 }
  0x91   :  { %118 = vst [vmem:[%s226_s3 + $0x28] sm:$0xff] %v104_v20  ;;  %v77_v23 = vadd.f32 %v76_v21, %v24_v11  ;;  %v101_v24 = vadd.f32 %v100_v22, %v25_v12 }
  0x93   :  { %115 = vst [vmem:[%s226_s3 + $0x10] sm:$0xff] %v77_v23 }
  0x94   :  { %116 = vst [vmem:[%s226_s3 + $0x18] sm:$0xff] %v101_v24 }
  0x95   :  { %v81_v25 = vpop.f32.mrf.mxu2  ;;  %v105_v26 = vpop.f32.mrf.mxu3 }
  0x96   :  { %v82_v27 = vadd.f32 %v81_v25, %v24_v11  ;;  %v106_v28 = vadd.f32 %v105_v26, %v25_v12 }
  0x98   :  { %119 = vst [vmem:[%s226_s3 + $0x30] sm:$0xff] %v82_v27 }
  0x99   :  { %120 = vst [vmem:[%s226_s3 + $0x38] sm:$0xff] %v106_v28 }
  0x9d   :  { %v84_v29 = vpop.f32.mrf.mxu2  ;;  %v108_v30 = vpop.f32.mrf.mxu3 }
  0x9e   :  { %v85_v31 = vadd.f32 %v84_v29, %v24_v11  ;;  %v109_v32 = vadd.f32 %v108_v30, %v25_v12 }
  0xa0   :  { %121 = vst [vmem:[%s226_s3 + $0x40] sm:$0xff] %v85_v31 }
  0xa1   :  { %122 = vst [vmem:[%s226_s3 + $0x48] sm:$0xff] %v109_v32 }
  0xa5   :  { %v86_v33 = vpop.f32.mrf.mxu2  ;;  %v110_v34 = vpop.f32.mrf.mxu3 }
  0xa6   :  { %v87_v35 = vadd.f32 %v86_v33, %v24_v11  ;;  %v111_v36 = vadd.f32 %v110_v34, %v25_v12 }
  0xa8   :  { %123 = vst [vmem:[%s226_s3 + $0x50] sm:$0xff] %v87_v35 }
  0xa9   :  { %124 = vst [vmem:[%s226_s3 + $0x58] sm:$0xff] %v111_v36 }

// kernel: pspnet2_forward.22
= control target key start
LH: loop header
LB: loop body
LE: loop exit
PB: predicated region body
PF: predicated region fallthrough
CT: control target
= control target key end

     0   :  { %s2289_s1 = inlined_call_operand.vmem [shape: bf16[1152,128], index: 1, kind: input, shape index: {}]   ;;  %s2290_s2 = inlined_call_operand.vmem [shape: f32[1,128], index: 2, kind: input, shape index: {}]   ;;  %s2291_s0 = inlined_call_operand.vmem [shape: bf16[72,1152], index: 0, kind: input, shape index: {}]   ;;  %s2292_s3 = inlined_call_operand.vmem [shape: f32[72,128], index: 3, kind: output, shape index: {}]  }
   0x1   :  { %v1649_v0 = vld [vmem:[%s2289_s1 + $0x38] sm:$0xff]  ;;  %v1648_v1 = vld [vmem:[%s2289_s1 + $0x30] sm:$0xff]  ;;  %v1647_v4 = vld [vmem:[%s2289_s1 + $0x28] sm:$0xff] }
   0x2   :  { %855 = vmatpush.bf16.msra.mxu0 %v1649_v0  ;;  %1714 = vmatpush.bf16.msra.mxu1 %v1649_v0  ;;  %v1673_v2 = vld [vmem:[%s2289_s1 + $0xf8] sm:$0xff]  ;;  %v1672_v3 = vld [vmem:[%s2289_s1 + $0xf0] sm:$0xff]  ;;  %v1671_v5 = vld [vmem:[%s2289_s1 + $0xe8] sm:$0xff] }
   0x3   :  { %1715 = vmatpush.bf16.msra.mxu2 %v1649_v0  ;;  %954 = vmatpush.bf16.msra.mxu3 %v1673_v2  ;;  %v1646_v6 = vld [vmem:[%s2289_s1 + $0x20] sm:$0xff]  ;;  %v1645_v8 = vld [vmem:[%s2289_s1 + $0x18] sm:$0xff]  ;;  %v1644_v10 = vld [vmem:[%s2289_s1 + $0x10] sm:$0xff] }
   0x4   :  { %v1670_v7 = vld [vmem:[%s2289_s1 + $0xe0] sm:$0xff]  ;;  %v1669_v9 = vld [vmem:[%s2289_s1 + $0xd8] sm:$0xff]  ;;  %v1668_v11 = vld [vmem:[%s2289_s1 + $0xd0] sm:$0xff] }
   0x5   :  { %v1643_v12 = vld [vmem:[%s2289_s1 + $0x8] sm:$0xff]  ;;  %v1793_v13 = vld [vmem:[%s2291_s0 + $0x120] sm:$0xff]  ;;  %v1248_v18 = vld [vmem:[%s2291_s0 + $0x90] sm:$0xf] }
   0x6   :  { %856 = vmatpush.bf16.msra.mxu0 %v1648_v1  ;;  %1716 = vmatpush.bf16.msra.mxu1 %v1648_v1  ;;  %v1667_v14 = vld [vmem:[%s2289_s1 + $0xc8] sm:$0xff]  ;;  %v1642_v15 = vld [vmem:[%s2289_s1] sm:$0xff]  ;;  %v1628_v19 = vld [vmem:[%s2291_s0 + $0xb0] sm:$0xf0]  ;;  %v324_v20 = vunpack.c.l.b16 %v1793_v13 }
   0x7   :  { %1717 = vmatpush.bf16.msra.mxu2 %v1648_v1  ;;  %955 = vmatpush.bf16.msra.mxu3 %v1672_v3  ;;  %v1176_v16 = vld [vmem:[%s2291_s0] sm:$0xf]  ;;  %v1610_v17 = vld [vmem:[%s2291_s0 + $0x20] sm:$0xf0]  ;;  %v1657_v21 = vld [vmem:[%s2289_s1 + $0x78] sm:$0xff]  ;;  %v1249_v25 = vor.u32 %v1628_v19, %v1248_v18 }
   0x8   :  { %v1665_v22 = vld [vmem:[%s2289_s1 + $0xb8] sm:$0xff]  ;;  %v1177_v24 = vor.u32 %v1610_v17, %v1176_v16  ;;  %v369_v26 = vpack.c.b16 %v324_v20, %v324_v20  ;;  %v1666_v27 = vld [vmem:[%s2289_s1 + $0xc0] sm:$0xff]  ;;  %v1607_v28 = vld [vmem:[%s2291_s0 + $0xc] sm:$0xf] }
   0x9   :  { %v1681_v23 = vld [vmem:[%s2289_s1 + $0x138] sm:$0xff]  ;;  %v1186_v29 = vld [vmem:[%s2291_s0 + $0x2c] sm:$0xf0]  ;;  %v1655_v35 = vld [vmem:[%s2289_s1 + $0x68] sm:$0xff] }
   0xa   :  { %857 = vmatpush.bf16.msra.mxu0 %v1647_v4  ;;  %1718 = vmatpush.bf16.msra.mxu1 %v1647_v4  ;;  %v1656_v30 = vld [vmem:[%s2289_s1 + $0x70] sm:$0xff]  ;;  %v1705_v31 = vld [vmem:[%s2289_s1 + $0x1f8] sm:$0xff]  ;;  %v1189_v34 = vor.u32 %v1607_v28, %v1186_v29  ;;  %v1663_v37 = vld [vmem:[%s2289_s1 + $0xa8] sm:$0xff] }
   0xb   :  { %1719 = vmatpush.bf16.msra.mxu2 %v1647_v4  ;;  %956 = vmatpush.bf16.msra.mxu3 %v1671_v5  ;;  %v1664_v32 = vld [vmem:[%s2289_s1 + $0xb0] sm:$0xff]  ;;  %v1679_v38 = vld [vmem:[%s2289_s1 + $0x128] sm:$0xff]  ;;  %v1654_v39 = vld [vmem:[%s2289_s1 + $0x60] sm:$0xff] }
   0xc   :  { %v1680_v33 = vld [vmem:[%s2289_s1 + $0x130] sm:$0xff]  ;;  %v1662_v40 = vld [vmem:[%s2289_s1 + $0xa0] sm:$0xff]  ;;  %v1212_v42 = vld [vmem:[%s2291_s0 + $0x48] sm:$0xf] }
   0xd   :  { %v1704_v36 = vld [vmem:[%s2289_s1 + $0x1f0] sm:$0xff]  ;;  %v1678_v41 = vld [vmem:[%s2289_s1 + $0x120] sm:$0xff]  ;;  %v1619_v43 = vld [vmem:[%s2291_s0 + $0x68] sm:$0xf0] }
   0xe   :  { %858 = vmatpush.bf16.msra.mxu0 %v1646_v6  ;;  %1720 = vmatpush.bf16.msra.mxu1 %v1646_v6  ;;  %v1284_v44 = vld [vmem:[%s2291_s0 + $0xd8] sm:$0xf]  ;;  %v1637_v45 = vld [vmem:[%s2291_s0 + $0xf8] sm:$0xf0]  ;;  %v1213_v49 = vor.u32 %v1619_v43, %v1212_v42  ;;  %v1616_v51 = vld [vmem:[%s2291_s0 + $0x54] sm:$0xf] }
   0xf   :  { %1721 = vmatpush.bf16.msra.mxu2 %v1646_v6  ;;  %957 = vmatpush.bf16.msra.mxu3 %v1670_v7  ;;  %v1653_v46 = vld [vmem:[%s2289_s1 + $0x58] sm:$0xff]  ;;  %v1285_v50 = vor.u32 %v1637_v45, %v1284_v44  ;;  %v1652_v53 = vld [vmem:[%s2289_s1 + $0x50] sm:$0xff]  ;;  %v1703_v57 = vld [vmem:[%s2289_s1 + $0x1e8] sm:$0xff] }
  0x10   :  { %v1661_v47 = vld [vmem:[%s2289_s1 + $0x98] sm:$0xff]  ;;  %v1660_v54 = vld [vmem:[%s2289_s1 + $0x90] sm:$0xff]  ;;  %v1651_v58 = vld [vmem:[%s2289_s1 + $0x48] sm:$0xff] }
  0x11   :  { %v1677_v48 = vld [vmem:[%s2289_s1 + $0x118] sm:$0xff]  ;;  %v1676_v55 = vld [vmem:[%s2289_s1 + $0x110] sm:$0xff]  ;;  %v1702_v59 = vld [vmem:[%s2289_s1 + $0x1e0] sm:$0xff] }
  0x12   :  { %859 = vmatpush.bf16.msra.mxu0 %v1645_v8  ;;  %1722 = vmatpush.bf16.msra.mxu1 %v1645_v8  ;;  %v1222_v52 = vld [vmem:[%s2291_s0 + $0x74] sm:$0xf0]  ;;  %v1659_v60 = vld [vmem:[%s2289_s1 + $0x88] sm:$0xff]  ;;  %v1658_v62 = vld [vmem:[%s2289_s1 + $0x80] sm:$0xff] }
  0x13   :  { %1723 = vmatpush.bf16.msra.mxu2 %v1645_v8  ;;  %958 = vmatpush.bf16.msra.mxu3 %v1669_v9  ;;  %v1225_v56 = vor.u32 %v1616_v51, %v1222_v52  ;;  %v1675_v61 = vld [vmem:[%s2289_s1 + $0x108] sm:$0xff]  ;;  %v1650_v63 = vld [vmem:[%s2289_s1 + $0x40] sm:$0xff]  ;;  %v1697_v3 = vld [vmem:[%s2289_s1 + $0x1b8] sm:$0xff] }
  0x14   :  { %v1184_v0 = vld [vmem:[%s2291_s0 + $0x8] sm:$0xf]  ;;  %v1611_v1 = vld [vmem:[%s2291_s0 + $0x28] sm:$0xf0]  ;;  %v1674_v2 = vld [vmem:[%s2289_s1 + $0x100] sm:$0xff] }
  0x15   :  { %v1606_v4 = vld [vmem:[%s2291_s0 + $0x4] sm:$0xf]  ;;  %v1178_v5 = vld [vmem:[%s2291_s0 + $0x24] sm:$0xf0]  ;;  %v1689_v6 = vld [vmem:[%s2289_s1 + $0x178] sm:$0xff] }
  0x16   :  { %860 = vmatpush.bf16.msra.mxu0 %v1644_v10  ;;  %1724 = vmatpush.bf16.msra.mxu1 %v1644_v10  ;;  %v1192_v7 = vld [vmem:[%s2291_s0 + $0x10] sm:$0xf]  ;;  %v1612_v8 = vld [vmem:[%s2291_s0 + $0x30] sm:$0xf0]  ;;  %v1713_v9 = vld [vmem:[%s2289_s1 + $0x238] sm:$0xff] }
  0x17   :  { %1725 = vmatpush.bf16.msra.mxu2 %v1644_v10  ;;  %959 = vmatpush.bf16.msra.mxu3 %v1668_v11  ;;  %v1185_v10 = vor.u32 %v1611_v1, %v1184_v0  ;;  %v1181_v11 = vor.u32 %v1606_v4, %v1178_v5  ;;  %v1625_v16 = vld [vmem:[%s2291_s0 + $0x9c] sm:$0xf]  ;;  %v1258_v17 = vld [vmem:[%s2291_s0 + $0xbc] sm:$0xf0]  ;;  %v1712_v18 = vld [vmem:[%s2289_s1 + $0x230] sm:$0xff] }
  0x18   :  { %v1261_v19 = vor.u32 %v1625_v16, %v1258_v17  ;;  %v1695_v20 = vld [vmem:[%s2289_s1 + $0x1a8] sm:$0xff]  ;;  %v1620_v28 = vld [vmem:[%s2291_s0 + $0x70] sm:$0xf0]  ;;  %v1250_v51 = vld [vmem:[%s2291_s0 + $0xb4] sm:$0xf0]  ;;  %v325_v17 = vunpack.c.h.b16 %v1793_v13 }
  0x19   :  { %v1615_v29 = vld [vmem:[%s2291_s0 + $0x4c] sm:$0xf]  ;;  %v1700_v43 = vld [vmem:[%s2289_s1 + $0x1d0] sm:$0xff]  ;;  %v1264_v52 = vld [vmem:[%s2291_s0 + $0xa0] sm:$0xf] }
  0x1a   :  { %861 = vmatpush.bf16.msra.mxu0 %v1643_v12  ;;  %1726 = vmatpush.bf16.msra.mxu1 %v1643_v12  ;;  %v1684_v44 = vld [vmem:[%s2289_s1 + $0x150] sm:$0xff]  ;;  %v1682_v0 = vld [vmem:[%s2289_s1 + $0x140] sm:$0xff]  ;;  %v1633_v4 = vld [vmem:[%s2291_s0 + $0xdc] sm:$0xf] }
  0x1b   :  { %1727 = vmatpush.bf16.msra.mxu2 %v1643_v12  ;;  %960 = vmatpush.bf16.msra.mxu3 %v1667_v14  ;;  %v1193_v12 = vor.u32 %v1612_v8, %v1192_v7  ;;  %v1696_v14 = vld [vmem:[%s2289_s1 + $0x1b0] sm:$0xff]  ;;  %v1706_v1 = vld [vmem:[%s2289_s1 + $0x200] sm:$0xff]  ;;  %v1639_v7 = vld [vmem:[%s2291_s0 + $0x108] sm:$0xf0] }
  0x1c   :  { %v1708_v45 = vld [vmem:[%s2289_s1 + $0x210] sm:$0xff]  ;;  %v1286_v5 = vld [vmem:[%s2291_s0 + $0xfc] sm:$0xf0]  ;;  %v1200_v13 = vld [vmem:[%s2291_s0 + $0x18] sm:$0xf] }
  0x1e   :  { %862 = vmatpush.bf16.msra.mxu0 %v1642_v15  ;;  %1728 = vmatpush.bf16.msra.mxu1 %v1642_v15 }
  0x1f   :  { %1729 = vmatpush.bf16.msra.mxu2 %v1642_v15  ;;  %961 = vmatpush.bf16.msra.mxu3 %v1666_v27  ;;  %v1688_v15 = vld [vmem:[%s2289_s1 + $0x170] sm:$0xff] }
  0x20   :  { %v1220_v27 = vld [vmem:[%s2291_s0 + $0x50] sm:$0xf] }
  0x21   :  { %863 = vmatmul.bf16.vlgmr.msra.gmra.mxu0 %v1177_v24  ;;  %873 = vmatmul.bf16.vlgmr.msra.gmra.mxu1 %v1249_v25  ;;  %v1694_v24 = vld [vmem:[%s2289_s1 + $0x1a0] sm:$0xff] }
  0x22   :  { %888 = vmatpush.bf16.msrb.mxu1 %v1657_v21  ;;  %987 = vmatpush.bf16.msrb.mxu0 %v1681_v23  ;;  %v1687_v21 = vld [vmem:[%s2289_s1 + $0x168] sm:$0xff]  ;;  %v1686_v25 = vld [vmem:[%s2289_s1 + $0x160] sm:$0xff] }
  0x23   :  { %921 = vmatpush.bf16.msrb.mxu2 %v1665_v22  ;;  %1086 = vmatpush.bf16.msrb.mxu3 %v1705_v31  ;;  %v1701_v22 = vld [vmem:[%s2289_s1 + $0x1d8] sm:$0xff]  ;;  %v1711_v23 = vld [vmem:[%s2289_s1 + $0x228] sm:$0xff] }
  0x24   :  { %883 = vmatmul.bf16.vlgmr.msra.gmra.mxu2 %v369_v26  ;;  %962 = vmatmul.bf16.vlgmr.msra.gmra.mxu3 %v1189_v34  ;;  %v1710_v26 = vld [vmem:[%s2289_s1 + $0x220] sm:$0xff]  ;;  %v1228_v31 = vld [vmem:[%s2291_s0 + $0x58] sm:$0xf] }
  0x25   :  { %v1685_v34 = vld [vmem:[%s2289_s1 + $0x158] sm:$0xff] }
  0x26   :  { %889 = vmatpush.bf16.msrb.mxu1 %v1656_v30  ;;  %988 = vmatpush.bf16.msrb.mxu0 %v1680_v33  ;;  %v1214_v30 = vld [vmem:[%s2291_s0 + $0x6c] sm:$0xf0]  ;;  %v1693_v33 = vld [vmem:[%s2289_s1 + $0x198] sm:$0xff] }
  0x27   :  { %922 = vmatpush.bf16.msrb.mxu2 %v1664_v32  ;;  %1087 = vmatpush.bf16.msrb.mxu3 %v1704_v36  ;;  %v1621_v32 = vld [vmem:[%s2291_s0 + $0x78] sm:$0xf0] }
  0x28   :  { %v1709_v36 = vld [vmem:[%s2289_s1 + $0x218] sm:$0xff] }
  0x2a   :  { %890 = vmatpush.bf16.msrb.mxu1 %v1655_v35  ;;  %989 = vmatpush.bf16.msrb.mxu0 %v1679_v38  ;;  %v1221_v35 = vor.u32 %v1620_v28, %v1220_v27  ;;  %v1229_v38 = vor.u32 %v1621_v32, %v1228_v31  ;;  %v1194_v27 = vld [vmem:[%s2291_s0 + $0x34] sm:$0xf0]  ;;  %v1208_v28 = vld [vmem:[%s2291_s0 + $0x20] sm:$0xf] }
  0x2b   :  { %923 = vmatpush.bf16.msrb.mxu2 %v1663_v37  ;;  %1088 = vmatpush.bf16.msrb.mxu3 %v1703_v57  ;;  %v1217_v37 = vor.u32 %v1615_v29, %v1214_v30  ;;  %v1614_v29 = vld [vmem:[%s2291_s0 + $0x40] sm:$0xf0] }
  0x2c   :  { %v1209_v32 = vor.u32 %v1614_v29, %v1208_v28 }
  0x2e   :  { %891 = vmatpush.bf16.msrb.mxu1 %v1654_v39  ;;  %990 = vmatpush.bf16.msrb.mxu0 %v1678_v41  ;;  %v1634_v39 = vld [vmem:[%s2291_s0 + $0xe4] sm:$0xf]  ;;  %v1692_v41 = vld [vmem:[%s2289_s1 + $0x190] sm:$0xff] }
  0x2f   :  { %924 = vmatpush.bf16.msrb.mxu2 %v1662_v40  ;;  %1089 = vmatpush.bf16.msrb.mxu3 %v1702_v59  ;;  %v1294_v40 = vld [vmem:[%s2291_s0 + $0x104] sm:$0xf0] }
  0x30   :  { %v1297_v42 = vor.u32 %v1634_v39, %v1294_v40  ;;  %v1683_v59 = vld [vmem:[%s2289_s1 + $0x148] sm:$0xff]  ;;  %v1230_v39 = vld [vmem:[%s2291_s0 + $0x7c] sm:$0xf0] }
  0x31   :  { %868 = vmatmul.bf16.gmra.mxu0 %v1213_v49  ;;  %878 = vmatmul.bf16.gmra.mxu1 %v1285_v50  ;;  %v1629_v49 = vld [vmem:[%s2291_s0 + $0xb8] sm:$0xf0]  ;;  %v1624_v50 = vld [vmem:[%s2291_s0 + $0x94] sm:$0xf]  ;;  %v1244_v40 = vld [vmem:[%s2291_s0 + $0x68] sm:$0xf] }
  0x32   :  { %892 = vmatpush.bf16.msrb.mxu1 %v1653_v46  ;;  %991 = vmatpush.bf16.msrb.mxu0 %v1677_v48  ;;  %v1691_v46 = vld [vmem:[%s2289_s1 + $0x188] sm:$0xff]  ;;  %v1256_v48 = vld [vmem:[%s2291_s0 + $0x98] sm:$0xf] }
  0x33   :  { %925 = vmatpush.bf16.msrb.mxu2 %v1661_v47  ;;  %1090 = vmatpush.bf16.msrb.mxu3 %v1701_v22  ;;  %v1699_v47 = vld [vmem:[%s2289_s1 + $0x1c8] sm:$0xff]  ;;  %v1618_v22 = vld [vmem:[%s2291_s0 + $0x64] sm:$0xf] }
  0x34   :  { %967 = vmatmul.bf16.gmra.mxu3 %v1225_v56  ;;  %v1253_v56 = vor.u32 %v1624_v50, %v1250_v51  ;;  %v2168_v50 = vld [vmem:[%s2290_s2] ss:$0 sm:$0xff] }
  0x36   :  { %893 = vmatpush.bf16.msrb.mxu1 %v1652_v53  ;;  %992 = vmatpush.bf16.msrb.mxu0 %v1676_v55  ;;  %v1630_v53 = vld [vmem:[%s2291_s0 + $0xc0] sm:$0xf0]  ;;  %v1257_v55 = vor.u32 %v1629_v49, %v1256_v48  ;;  %v1310_v48 = vld [vmem:[%s2291_s0 + $0x114] sm:$0xf0] }
  0x37   :  { %926 = vmatpush.bf16.msrb.mxu2 %v1660_v54  ;;  %1091 = vmatpush.bf16.msrb.mxu3 %v1700_v43  ;;  %v55_v54 = vld [vmem:[%s2291_s0 + $0x128] sm:$0xff]  ;;  %v1265_v57 = vor.u32 %v1630_v53, %v1264_v52 }
  0x38   :  { %v326_v16 = vunpack.c.l.b16 %v55_v54 }
  0x3a   :  { %894 = vmatpush.bf16.msrb.mxu1 %v1651_v58  ;;  %993 = vmatpush.bf16.msrb.mxu0 %v1675_v61  ;;  %v327_v58 = vunpack.c.h.b16 %v55_v54  ;;  %v1707_v61 = vld [vmem:[%s2289_s1 + $0x208] sm:$0xff] }
  0x3b   :  { %927 = vmatpush.bf16.msrb.mxu2 %v1659_v60  ;;  %1092 = vmatpush.bf16.msrb.mxu3 %v1699_v47  ;;  %v1636_v47 = vld [vmem:[%s2291_s0 + $0xf4] sm:$0xf] }
  0x3c   :  { %v372_v60 = vpack.c.b16 %v327_v58, %v327_v58  ;;  %v1313_v49 = vor.u32 %v1636_v47, %v1310_v48  ;;  %v1626_v58 = vld [vmem:[%s2291_s0 + $0xa4] sm:$0xf] }
  0x3e   :  { %895 = vmatpush.bf16.msrb.mxu1 %v1650_v63  ;;  %994 = vmatpush.bf16.msrb.mxu0 %v1674_v2  ;;  %v1698_v63 = vld [vmem:[%s2289_s1 + $0x1c0] sm:$0xff] }
  0x3f   :  { %928 = vmatpush.bf16.msrb.mxu2 %v1658_v62  ;;  %v1690_v62 = vld [vmem:[%s2289_s1 + $0x180] sm:$0xff]  ;;  %1093 = vmatpush.bf16.msrb.mxu3 %v1698_v63 }
  0x40   :  { %v1292_v2 = vld [vmem:[%s2291_s0 + $0xe0] sm:$0xf] }
  0x41   :  { %896 = vmatmul.bf16.vlgmr.msrb.gmra.mxu1 %v1181_v11  ;;  %995 = vmatmul.bf16.vlgmr.msrb.gmra.mxu0 %v1193_v12  ;;  %v1609_v11 = vld [vmem:[%s2291_s0 + $0x1c] sm:$0xf]  ;;  %v1202_v12 = vld [vmem:[%s2291_s0 + $0x3c] sm:$0xf0] }
  0x42   :  { %1020 = vmatpush.bf16.msra.mxu1 %v1689_v6  ;;  %1119 = vmatpush.bf16.msra.mxu0 %v1713_v9  ;;  %v1300_v6 = vld [vmem:[%s2291_s0 + $0xe8] sm:$0xf]  ;;  %v1289_v9 = vor.u32 %v1633_v4, %v1286_v5 }
  0x43   :  { %1053 = vmatpush.bf16.msra.mxu2 %v1697_v3  ;;  %v1638_v3 = vld [vmem:[%s2291_s0 + $0x100] sm:$0xf0] }
  0x44   :  { %929 = vmatmul.bf16.vlgmr.msrb.gmra.mxu2 %v1185_v10  ;;  %972 = vmatmul.bf16.gmra.mxu3 %v1261_v19  ;;  %v1293_v8 = vor.u32 %v1638_v3, %v1292_v2  ;;  %v1301_v10 = vor.u32 %v1639_v7, %v1300_v6  ;;  %v371_v19 = vpack.c.b16 %v326_v16, %v326_v16  ;;  %v1302_v16 = vld [vmem:[%s2291_s0 + $0x10c] sm:$0xf0] }
  0x46   :  { %1021 = vmatpush.bf16.msra.mxu1 %v1688_v15  ;;  %1120 = vmatpush.bf16.msra.mxu0 %v1712_v18  ;;  %v2105_v15 = vld [vmem:[%s2291_s0 + $0x130] sm:$0xff] }
  0x47   :  { %1054 = vmatpush.bf16.msra.mxu2 %v1696_v14  ;;  %v1205_v14 = vor.u32 %v1609_v11, %v1202_v12  ;;  %v328_v18 = vunpack.c.l.b16 %v2105_v15  ;;  %v1640_v11 = vld [vmem:[%s2291_s0 + $0x110] sm:$0xf0] }
  0x4a   :  { %1022 = vmatpush.bf16.msra.mxu1 %v1687_v21  ;;  %1121 = vmatpush.bf16.msra.mxu0 %v1711_v23  ;;  %v373_v21 = vpack.c.b16 %v328_v18, %v328_v18  ;;  %v1238_v23 = vld [vmem:[%s2291_s0 + $0x84] sm:$0xf0]  ;;  %v1641_v18 = vld [vmem:[%s2291_s0 + $0x118] sm:$0xf0] }
  0x4b   :  { %1055 = vmatpush.bf16.msra.mxu2 %v1695_v20  ;;  %v370_v20 = vpack.c.b16 %v325_v17, %v325_v17  ;;  %v1316_v17 = vld [vmem:[%s2291_s0 + $0xf8] sm:$0xf] }
  0x4e   :  { %1023 = vmatpush.bf16.msra.mxu1 %v1686_v25  ;;  %1122 = vmatpush.bf16.msra.mxu0 %v1710_v26  ;;  %v1613_v25 = vld [vmem:[%s2291_s0 + $0x38] sm:$0xf0]  ;;  %v1608_v26 = vld [vmem:[%s2291_s0 + $0x14] sm:$0xf] }
  0x4f   :  { %1056 = vmatpush.bf16.msra.mxu2 %v1694_v24  ;;  %v1241_v24 = vor.u32 %v1618_v22, %v1238_v23  ;;  %v1201_v30 = vor.u32 %v1613_v25, %v1200_v13  ;;  %v1197_v31 = vor.u32 %v1608_v26, %v1194_v27  ;;  %v1317_v22 = vor.u32 %v1641_v18, %v1316_v17 }
  0x51   :  { %901 = vmatmul.bf16.gmra.mxu1 %v1217_v37  ;;  %1000 = vmatmul.bf16.gmra.mxu0 %v1229_v38  ;;  %v1622_v37 = vld [vmem:[%s2291_s0 + $0x80] sm:$0xf0]  ;;  %v1617_v38 = vld [vmem:[%s2291_s0 + $0x5c] sm:$0xf] }
  0x52   :  { %1024 = vmatpush.bf16.msra.mxu1 %v1685_v34  ;;  %1123 = vmatpush.bf16.msra.mxu0 %v1709_v36  ;;  %v1274_v34 = vld [vmem:[%s2291_s0 + $0xcc] sm:$0xf0]  ;;  %v1236_v36 = vld [vmem:[%s2291_s0 + $0x60] sm:$0xf]  ;;  %v1233_v43 = vor.u32 %v1617_v38, %v1230_v39 }
  0x53   :  { %1057 = vmatpush.bf16.msra.mxu2 %v1693_v33  ;;  %v1627_v33 = vld [vmem:[%s2291_s0 + $0xac] sm:$0xf] }
  0x54   :  { %934 = vmatmul.bf16.gmra.mxu2 %v1221_v35  ;;  %977 = vmatmul.bf16.gmra.mxu3 %v1297_v42  ;;  %v1277_v35 = vor.u32 %v1627_v33, %v1274_v34  ;;  %v1237_v42 = vor.u32 %v1622_v37, %v1236_v36  ;;  %v329_v37 = vunpack.c.h.b16 %v2105_v15 }
  0x56   :  { %1025 = vmatpush.bf16.msra.mxu1 %v1684_v44  ;;  %1124 = vmatpush.bf16.msra.mxu0 %v1708_v45 }
  0x57   :  { %1058 = vmatpush.bf16.msra.mxu2 %v1692_v41  ;;  %v1623_v41 = vld [vmem:[%s2291_s0 + $0x88] sm:$0xf0] }
  0x58   :  { %v1245_v44 = vor.u32 %v1623_v41, %v1244_v40 }
  0x5a   :  { %1026 = vmatpush.bf16.msra.mxu1 %v1683_v59  ;;  %1125 = vmatpush.bf16.msra.mxu0 %v1707_v61  ;;  %v1266_v59 = vld [vmem:[%s2291_s0 + $0xc4] sm:$0xf0]  ;;  %v1632_v61 = vld [vmem:[%s2291_s0 + $0xd0] sm:$0xf0] }
  0x5b   :  { %1059 = vmatpush.bf16.msra.mxu2 %v1691_v46 }
  0x5e   :  { %1027 = vmatpush.bf16.msra.mxu1 %v1682_v0  ;;  %1126 = vmatpush.bf16.msra.mxu0 %v1706_v1  ;;  %v1269_v1 = vor.u32 %v1626_v58, %v1266_v59 }
  0x5f   :  { %1060 = vmatpush.bf16.msra.mxu2 %v1690_v62  ;;  %v57_v62 = vld [vmem:[%s2291_s0 + $0x138] sm:$0xff] }
  0x60   :  { %v331_v3 = vunpack.c.h.b16 %v57_v62  ;;  %v330_v34 = vunpack.c.l.b16 %v57_v62 }
  0x61   :  { %906 = vmatmul.bf16.gmra.mxu1 %v1253_v56  ;;  %1005 = vmatmul.bf16.gmra.mxu0 %v1265_v57  ;;  %v1631_v56 = vld [vmem:[%s2291_s0 + $0xc8] sm:$0xf0] }
  0x62   :  { %v376_v7 = vpack.c.b16 %v331_v3, %v331_v3  ;;  %v375_v41 = vpack.c.b16 %v330_v34, %v330_v34 }
  0x64   :  { %939 = vmatmul.bf16.gmra.mxu2 %v1257_v55  ;;  %982 = vmatmul.bf16.gmra.mxu3 %v372_v60  ;;  %v1272_v55 = vld [vmem:[%s2291_s0 + $0xa8] sm:$0xf]  ;;  %v1280_v60 = vld [vmem:[%s2291_s0 + $0xb0] sm:$0xf] }
  0x65   :  { %v1273_v63 = vor.u32 %v1631_v56, %v1272_v55  ;;  %v1281_v2 = vor.u32 %v1632_v61, %v1280_v60 }
  0x71   :  { %911 = vmatmul.bf16.gmra.mxu1 %v1289_v9  ;;  %1010 = vmatmul.bf16.gmra.mxu0 %v1301_v10  ;;  %v1308_v10 = vld [vmem:[%s2291_s0 + $0xf0] sm:$0xf] }
  0x74   :  { %944 = vmatmul.bf16.gmra.mxu2 %v1293_v8  ;;  %1094 = vmatmul.bf16.vlgmr.msrb.gmra.mxu3 %v1205_v14  ;;  %v1635_v14 = vld [vmem:[%s2291_s0 + $0xec] sm:$0xf] }
  0x81   :  { %916 = vmatmul.bf16.gmra.mxu1 %v370_v20  ;;  %1015 = vmatmul.bf16.gmra.mxu0 %v373_v21  ;;  %v1305_v21 = vor.u32 %v1635_v14, %v1302_v16 }
  0x84   :  { %949 = vmatmul.bf16.gmra.mxu2 %v371_v19  ;;  %1099 = vmatmul.bf16.gmra.mxu3 %v1241_v24  ;;  %v1309_v19 = vor.u32 %v1640_v11, %v1308_v10 }
  0x91   :  { %1028 = vmatmul.bf16.vlgmr.msra.gmra.mxu1 %v1197_v31  ;;  %1127 = vmatmul.bf16.vlgmr.msra.gmra.mxu0 %v1209_v32  ;;  %v58_v32 = vld [vmem:[%s2291_s0 + $0x140] sm:$0xf] }
  0x92   :  { %v332_v38 = vunpack.c.l.b16 %v58_v32 }
  0x94   :  { %1061 = vmatmul.bf16.vlgmr.msra.gmra.mxu2 %v1201_v30  ;;  %1104 = vmatmul.bf16.gmra.mxu3 %v1277_v35 }
  0x9e   :  { %v864_v45 = vpop.f32.mrf.mxu0  ;;  %v2157_v46 = vpop.f32.mrf.mxu1 }
  0x9f   :  { %v865_v20 = vadd.f32 %v2168_v50, %v864_v45  ;;  %v377_v45 = vpack.c.b16 %v332_v38, %v332_v38 }
  0xa1   :  { %1033 = vmatmul.bf16.gmra.mxu1 %v1233_v43  ;;  %1132 = vmatmul.bf16.gmra.mxu0 %v1245_v44  ;;  %v374_v44 = vpack.c.b16 %v329_v37, %v329_v37 }
  0xa4   :  { %1066 = vmatmul.bf16.gmra.mxu2 %v1237_v42  ;;  %1109 = vmatmul.bf16.gmra.mxu3 %v1313_v49 }
  0xa6   :  { %v866_v52 = vpop.f32.mrf.mxu0  ;;  %v2170_v53 = vpop.f32.mrf.mxu1 }
  0xa7   :  { %v884_v51 = vpop.f32.mrf.mxu2  ;;  %v963_v57 = vpop.f32.mrf.mxu3  ;;  %v867_v28 = vadd.f32 %v2168_v50, %v866_v52 }
  0xa8   :  { %v2173_v54 = vadd.f32 %v2168_v50, %v884_v51 }
  0xae   :  { %v869_v4 = vpop.f32.mrf.mxu0  ;;  %v2196_v5 = vpop.f32.mrf.mxu1 }
  0xaf   :  { %v886_v0 = vpop.f32.mrf.mxu2  ;;  %v965_v6 = vpop.f32.mrf.mxu3  ;;  %v870_v42 = vadd.f32 %v2168_v50, %v869_v4 }
  0xb1   :  { %1038 = vmatmul.bf16.gmra.mxu1 %v1269_v1  ;;  %1137 = vmatmul.bf16.gmra.mxu0 %v1281_v2  ;;  %v875_v1 = vadd.f32 %v2168_v50, %v2157_v46 }
  0xb4   :  { %1071 = vmatmul.bf16.gmra.mxu2 %v1273_v63  ;;  %1114 = vmatmul.bf16.gmra.mxu3 %v376_v7 }
  0xb6   :  { %v871_v8 = vpop.f32.mrf.mxu0  ;;  %v2198_v9 = vpop.f32.mrf.mxu1 }
  0xb7   :  { %v968_v12 = vpop.f32.mrf.mxu3  ;;  %v872_v56 = vadd.f32 %v2168_v50, %v871_v8 }
  0xbe   :  { %v897_v23 = vpop.f32.mrf.mxu1  ;;  %v996_v24 = vpop.f32.mrf.mxu0 }
  0xbf   :  { %v898_v13 = vadd.f32 %v897_v23, %v865_v20  ;;  %v970_v25 = vpop.f32.mrf.mxu3 }
  0xc1   :  { %1043 = vmatmul.bf16.gmra.mxu1 %v1305_v21  ;;  %1142 = vmatmul.bf16.gmra.mxu0 %v1317_v22  ;;  %v880_v22 = vadd.f32 %v2168_v50, %v2196_v5 }
  0xc4   :  { %1076 = vmatmul.bf16.gmra.mxu2 %v1309_v19 }
  0xc6   :  { %v899_v30 = vpop.f32.mrf.mxu1  ;;  %v998_v31 = vpop.f32.mrf.mxu0 }
  0xc7   :  { %v930_v26 = vpop.f32.mrf.mxu2  ;;  %v900_v33 = vadd.f32 %v899_v30, %v867_v28  ;;  %v973_v36 = vpop.f32.mrf.mxu3 }
  0xc8   :  { %v931_v27 = vadd.f32 %v930_v26, %v898_v13 }
  0xca   :  { %v964_v29 = vadd.f32 %v963_v57, %v931_v27 }
  0xcc   :  { %v2223_v35 = vadd.f32 %v996_v24, %v964_v29  ;;  %v882_v29 = vadd.f32 %v2168_v50, %v2198_v9 }
  0xce   :  { %v902_v47 = vpop.f32.mrf.mxu1  ;;  %v1001_v48 = vpop.f32.mrf.mxu0 }
  0xcf   :  { %v932_v39 = vpop.f32.mrf.mxu2  ;;  %v903_v49 = vadd.f32 %v902_v47, %v870_v42  ;;  %v975_v52 = vpop.f32.mrf.mxu3 }
  0xd0   :  { %v933_v40 = vadd.f32 %v932_v39, %v900_v33 }
  0xd1   :  { %1048 = vmatmul.bf16.gmra.mxu1 %v374_v44  ;;  %1147 = vmatmul.bf16.gmra.mxu0 %v377_v45 }
  0xd2   :  { %v966_v43 = vadd.f32 %v965_v6, %v933_v40 }
  0xd4   :  { %1081 = vmatmul.bf16.gmra.mxu2 %v375_v41  ;;  %v2227_v51 = vadd.f32 %v998_v31, %v966_v43 }
  0xd6   :  { %v904_v58 = vpop.f32.mrf.mxu1  ;;  %v1003_v59 = vpop.f32.mrf.mxu0 }
  0xd7   :  { %v935_v55 = vpop.f32.mrf.mxu2  ;;  %v905_v60 = vadd.f32 %v904_v58, %v872_v56  ;;  %v978_v62 = vpop.f32.mrf.mxu3 }
  0xd8   :  { %v936_v15 = vadd.f32 %v935_v55, %v903_v49 }
  0xda   :  { %v969_v57 = vadd.f32 %v968_v12, %v936_v15  ;;  %v877_v12 = vadd.f32 %v2168_v50, %v2170_v53 }
  0xdc   :  { %v2230_v61 = vadd.f32 %v1001_v48, %v969_v57 }
  0xde   :  { %v907_v3 = vpop.f32.mrf.mxu1  ;;  %v1006_v4 = vpop.f32.mrf.mxu0 }
  0xdf   :  { %v937_v63 = vpop.f32.mrf.mxu2  ;;  %v908_v6 = vadd.f32 %v907_v3, %v875_v1  ;;  %v980_v10 = vpop.f32.mrf.mxu3 }
  0xe0   :  { %v938_v0 = vadd.f32 %v937_v63, %v905_v60 }
  0xe2   :  { %v971_v2 = vadd.f32 %v970_v25, %v938_v0 }
  0xe4   :  { %v2234_v7 = vadd.f32 %v1003_v59, %v971_v2 }
  0xe6   :  { %v909_v16 = vpop.f32.mrf.mxu1  ;;  %v1008_v17 = vpop.f32.mrf.mxu0 }
  0xe7   :  { %v940_v8 = vpop.f32.mrf.mxu2  ;;  %v910_v18 = vadd.f32 %v909_v16, %v877_v12  ;;  %v983_v20 = vpop.f32.mrf.mxu3 }
  0xe8   :  { %v941_v11 = vadd.f32 %v940_v8, %v908_v6 }
  0xea   :  { %v974_v14 = vadd.f32 %v973_v36, %v941_v11 }
  0xec   :  { %v2238_v19 = vadd.f32 %v1006_v4, %v974_v14 }
  0xee   :  { %v912_v24 = vpop.f32.mrf.mxu1  ;;  %v1011_v13 = vpop.f32.mrf.mxu0 }
  0xef   :  { %v942_v46 = vpop.f32.mrf.mxu2  ;;  %v913_v25 = vadd.f32 %v912_v24, %v880_v22  ;;  %v985_v27 = vpop.f32.mrf.mxu3 }
  0xf0   :  { %v943_v21 = vadd.f32 %v942_v46, %v910_v18 }
  0xf2   :  { %v976_v23 = vadd.f32 %v975_v52, %v943_v21 }
  0xf4   :  { %v2242_v26 = vadd.f32 %v1008_v17, %v976_v23 }
  0xf6   :  { %v914_v31 = vpop.f32.mrf.mxu1  ;;  %v1013_v32 = vpop.f32.mrf.mxu0 }
  0xf7   :  { %v945_v53 = vpop.f32.mrf.mxu2  ;;  %v915_v33 = vadd.f32 %v914_v31, %v882_v29  ;;  %v1095_v36 = vpop.f32.mrf.mxu3 }
  0xf8   :  { %v946_v28 = vadd.f32 %v945_v53, %v913_v25 }
  0xfa   :  { %v979_v30 = vadd.f32 %v978_v62, %v946_v28 }
  0xfc   :  { %v2246_v34 = vadd.f32 %v1011_v13, %v979_v30 }
  0xfe   :  { %v917_v39 = vpop.f32.mrf.mxu1  ;;  %v1016_v40 = vpop.f32.mrf.mxu0 }
  0xff   :  { %v947_v5 = vpop.f32.mrf.mxu2  ;;  %v918_v41 = vadd.f32 %v917_v39, %v2173_v54  ;;  %v1097_v43 = vpop.f32.mrf.mxu3 }
 0x100   :  { %v948_v37 = vadd.f32 %v947_v5, %v915_v33 }
 0x102   :  { %v981_v38 = vadd.f32 %v980_v10, %v948_v37 }
 0x104   :  { %v2249_v42 = vadd.f32 %v1013_v32, %v981_v38 }
 0x106   :  { %v919_v9 = vpop.f32.mrf.mxu1  ;;  %v1018_v47 = vpop.f32.mrf.mxu0 }
 0x107   :  { %v950_v44 = vpop.f32.mrf.mxu2  ;;  %v1100_v49 = vpop.f32.mrf.mxu3 }
 0x108   :  { %v951_v45 = vadd.f32 %v950_v44, %v918_v41 }
 0x10a   :  { %v984_v50 = vadd.f32 %v983_v20, %v951_v45 }
 0x10c   :  { %v2251_v48 = vadd.f32 %v1016_v40, %v984_v50 }
 0x10e   :  { %v1029_v55 = vpop.f32.mrf.mxu1  ;;  %v1128_v15 = vpop.f32.mrf.mxu0 }
 0x10f   :  { %v952_v52 = vpop.f32.mrf.mxu2  ;;  %v1030_v56 = vadd.f32 %v1029_v55, %v2223_v35  ;;  %v1102_v57 = vpop.f32.mrf.mxu3 }
 0x116   :  { %v1031_v60 = vpop.f32.mrf.mxu1  ;;  %v1130_v62 = vpop.f32.mrf.mxu0 }
 0x117   :  { %v1062_v58 = vpop.f32.mrf.mxu2  ;;  %v1032_v0 = vadd.f32 %v1031_v60, %v2227_v51  ;;  %v1105_v1 = vpop.f32.mrf.mxu3 }
 0x118   :  { %v1063_v59 = vadd.f32 %v1062_v58, %v1030_v56 }
 0x11a   :  { %v1096_v54 = vadd.f32 %v1095_v36, %v1063_v59 }
 0x11c   :  { %v1129_v63 = vadd.f32 %v1128_v15, %v1096_v54 }
 0x11e   :  { %v1152_v2 = vmax.f32 %v1129_v63, 0.0  ;;  %v1034_v10 = vpop.f32.mrf.mxu1  ;;  %v1133_v35 = vpop.f32.mrf.mxu0 }
 0x11f   :  { %v1064_v3 = vpop.f32.mrf.mxu2  ;;  %v1035_v11 = vadd.f32 %v1034_v10, %v2230_v61  ;;  %v1107_v12 = vpop.f32.mrf.mxu3 }
 0x120   :  { %1161 = vst [vmem:[%s2292_s3] sm:$0xff] %v1152_v2  ;;  %v1065_v4 = vadd.f32 %v1064_v3, %v1032_v0 }
 0x122   :  { %v1098_v6 = vadd.f32 %v1097_v43, %v1065_v4 }
 0x124   :  { %v1131_v8 = vadd.f32 %v1130_v62, %v1098_v6 }
 0x126   :  { %v1153_v14 = vmax.f32 %v1131_v8, 0.0  ;;  %v1036_v18 = vpop.f32.mrf.mxu1  ;;  %v1135_v20 = vpop.f32.mrf.mxu0 }
 0x127   :  { %v1067_v16 = vpop.f32.mrf.mxu2  ;;  %v1037_v21 = vadd.f32 %v1036_v18, %v2234_v7  ;;  %v1110_v22 = vpop.f32.mrf.mxu3 }
 0x128   :  { %1162 = vst [vmem:[%s2292_s3 + $0x8] sm:$0xff] %v1153_v14  ;;  %v1068_v51 = vadd.f32 %v1067_v16, %v1035_v11 }
 0x12a   :  { %v1101_v17 = vadd.f32 %v1100_v49, %v1068_v51 }
 0x12c   :  { %v1134_v46 = vadd.f32 %v1133_v35, %v1101_v17 }
 0x12e   :  { %v1154_v23 = vmax.f32 %v1134_v46, 0.0  ;;  %v1039_v25 = vpop.f32.mrf.mxu1  ;;  %v1138_v27 = vpop.f32.mrf.mxu0 }
 0x12f   :  { %v1069_v24 = vpop.f32.mrf.mxu2  ;;  %v1040_v28 = vadd.f32 %v1039_v25, %v2238_v19  ;;  %v1112_v29 = vpop.f32.mrf.mxu3 }
 0x130   :  { %1163 = vst [vmem:[%s2292_s3 + $0x10] sm:$0xff] %v1154_v23  ;;  %v1070_v61 = vadd.f32 %v1069_v24, %v1037_v21 }
 0x132   :  { %v1103_v13 = vadd.f32 %v1102_v57, %v1070_v61 }
 0x134   :  { %v1136_v53 = vadd.f32 %v1135_v20, %v1103_v13 }
 0x136   :  { %v1155_v30 = vmax.f32 %v1136_v53, 0.0  ;;  %v1041_v33 = vpop.f32.mrf.mxu1  ;;  %v1140_v36 = vpop.f32.mrf.mxu0 }
 0x137   :  { %v1072_v31 = vpop.f32.mrf.mxu2  ;;  %v1042_v37 = vadd.f32 %v1041_v33, %v2242_v26  ;;  %v1115_v38 = vpop.f32.mrf.mxu3 }
 0x138   :  { %1164 = vst [vmem:[%s2292_s3 + $0x18] sm:$0xff] %v1155_v30  ;;  %v1073_v7 = vadd.f32 %v1072_v31, %v1040_v28 }
 0x13a   :  { %v1106_v32 = vadd.f32 %v1105_v1, %v1073_v7 }
 0x13c   :  { %v1139_v5 = vadd.f32 %v1138_v27, %v1106_v32 }
 0x13e   :  { %v1156_v39 = vmax.f32 %v1139_v5, 0.0  ;;  %v1044_v43 = vpop.f32.mrf.mxu1  ;;  %v1143_v44 = vpop.f32.mrf.mxu0 }
 0x13f   :  { %v1074_v40 = vpop.f32.mrf.mxu2  ;;  %v1045_v50 = vadd.f32 %v1044_v43, %v2246_v34  ;;  %v1117_v9 = vpop.f32.mrf.mxu3 }
 0x140   :  { %1165 = vst [vmem:[%s2292_s3 + $0x20] sm:$0xff] %v1156_v39  ;;  %v1075_v19 = vadd.f32 %v1074_v40, %v1042_v37 }
 0x142   :  { %v1108_v41 = vadd.f32 %v1107_v12, %v1075_v19 }
 0x144   :  { %v1141_v45 = vadd.f32 %v1140_v36, %v1108_v41 }
 0x146   :  { %v1157_v47 = vmax.f32 %v1141_v45, 0.0  ;;  %v1046_v55 = vpop.f32.mrf.mxu1  ;;  %v1145_v15 = vpop.f32.mrf.mxu0 }
 0x147   :  { %v1077_v49 = vpop.f32.mrf.mxu2  ;;  %v1047_v57 = vadd.f32 %v1046_v55, %v2249_v42 }
 0x148   :  { %1166 = vst [vmem:[%s2292_s3 + $0x28] sm:$0xff] %v1157_v47  ;;  %v1078_v26 = vadd.f32 %v1077_v49, %v1045_v50 }
 0x14a   :  { %v1111_v52 = vadd.f32 %v1110_v22, %v1078_v26 }
 0x14c   :  { %v1144_v56 = vadd.f32 %v1143_v44, %v1111_v52 }
 0x14e   :  { %v1158_v58 = vmax.f32 %v1144_v56, 0.0  ;;  %v1049_v60 = vpop.f32.mrf.mxu1  ;;  %v1148_v62 = vpop.f32.mrf.mxu0 }
 0x14f   :  { %v1079_v59 = vpop.f32.mrf.mxu2  ;;  %v1050_v0 = vadd.f32 %v1049_v60, %v2251_v48 }
 0x150   :  { %1167 = vst [vmem:[%s2292_s3 + $0x30] sm:$0xff] %v1158_v58  ;;  %v1080_v34 = vadd.f32 %v1079_v59, %v1047_v57 }
 0x152   :  { %v1113_v54 = vadd.f32 %v1112_v29, %v1080_v34 }
 0x154   :  { %v1146_v63 = vadd.f32 %v1145_v15, %v1113_v54 }
 0x156   :  { %v1159_v1 = vmax.f32 %v1146_v63, 0.0  ;;  %v1051_v4 = vpop.f32.mrf.mxu1  ;;  %v1150_v6 = vpop.f32.mrf.mxu0 }
 0x157   :  { %v1082_v2 = vpop.f32.mrf.mxu2 }
 0x158   :  { %1168 = vst [vmem:[%s2292_s3 + $0x38] sm:$0xff] %v1159_v1  ;;  %v1083_v42 = vadd.f32 %v1082_v2, %v1050_v0 }
 0x15a   :  { %v1116_v3 = vadd.f32 %v1115_v38, %v1083_v42 }
 0x15c   :  { %v1149_v10 = vadd.f32 %v1148_v62, %v1116_v3 }
 0x15e   :  { %v1160_v35 = vmax.f32 %v1149_v10, 0.0 }
 0x15f   :  { %v1084_v8 = vpop.f32.mrf.mxu2 }
 0x160   :  { %1169 = vst [vmem:[%s2292_s3 + $0x40] sm:$0xff] %v1160_v35 }

// kernel: pspnet2_forward.25
= control target key start
LH: loop header
LB: loop body
LE: loop exit
PB: predicated region body
PF: predicated region fallthrough
CT: control target
= control target key end

     0   :  { %vm130_vm0 = vcmask 1042432   ;;  %vm120_vm1 = vcmask 48128   ;;  %s1339_s1 = inlined_call_operand.vmem [shape: bf16[6,2048], index: 1, kind: input, shape index: {}]   ;;  %s1340_s0 = inlined_call_operand.vmem [shape: bf16[48,6], index: 0, kind: input, shape index: {}]   ;;  %s1341_s2 = inlined_call_operand.vmem [shape: f32[1,2048], index: 2, kind: input, shape index: {}]   ;;  %s1342_s3 = inlined_call_operand.vmem [shape: f32[48,2048], index: 3, kind: output, shape index: {}]  }
   0x1   :  { %v21_v0 = vld [vmem:[%s1339_s1] sm:$0x77]  ;;  %v22_v1 = vld [vmem:[%s1339_s1 + $0x8] sm:$0x77]  ;;  %v24_v6 = vld [vmem:[%s1339_s1 + $0x18] sm:$0x77] }
   0x2   :  { %v88_v2 = vunpack.c.l.b16 %v21_v0  ;;  %v89_v3 = vunpack.c.h.b16 %v21_v0  ;;  %v90_v4 = vunpack.c.l.b16 %v22_v1  ;;  %v91_v5 = vunpack.c.h.b16 %v22_v1  ;;  %v23_v7 = vld [vmem:[%s1339_s1 + $0x10] sm:$0x77]  ;;  %v765_v24 = vld [vmem:[%s1340_s0] sm:$0xff]  ;;  %v782_v29 = vld [vmem:[%s1340_s0 + $0x8] sm:$0xff] }
   0x3   :  { %v94_v8 = vunpack.c.l.b16 %v24_v6  ;;  %v95_v9 = vunpack.c.h.b16 %v24_v6  ;;  %v92_v10 = vunpack.c.l.b16 %v23_v7  ;;  %v93_v11 = vunpack.c.h.b16 %v23_v7  ;;  %v26_v30 = vld [vmem:[%s1339_s1 + $0x28] sm:$0x77]  ;;  %v25_v31 = vld [vmem:[%s1339_s1 + $0x20] sm:$0x77]  ;;  %v805_v44 = vld [vmem:[%s1340_s0 + $0x10] sm:$0xff] }
   0x4   :  { %v104_v12 = vpack.c.b16 %v88_v2, %v88_v2  ;;  %v105_v13 = vpack.c.b16 %v89_v3, %v89_v3  ;;  %v106_v14 = vpack.c.b16 %v90_v4, %v90_v4  ;;  %v107_v15 = vpack.c.b16 %v91_v5, %v91_v5  ;;  %v28_v45 = vld [vmem:[%s1339_s1 + $0x38] sm:$0x77]  ;;  %v27_v46 = vld [vmem:[%s1339_s1 + $0x30] sm:$0x77]  ;;  %v868_v59 = vld [vmem:[%s1341_s2] sm:$0xff] }
   0x5   :  { %v110_v16 = vpack.c.b16 %v94_v8, %v94_v8  ;;  %v111_v17 = vpack.c.b16 %v95_v9, %v95_v9  ;;  %v108_v18 = vpack.c.b16 %v92_v10, %v92_v10  ;;  %v109_v19 = vpack.c.b16 %v93_v11, %v93_v11 }
   0x6   :  { %v132_v20 = vsel %vm130_vm0, %v104_v12, 0  ;;  %v135_v21 = vsel %vm130_vm0, %v105_v13, 0  ;;  %v138_v22 = vsel %vm130_vm0, %v106_v14, 0  ;;  %v141_v23 = vsel %vm130_vm0, %v107_v15, 0 }
   0x7   :  { %186 = vmatpush.bf16.msra.mxu0 %v132_v20  ;;  %210 = vmatpush.bf16.msra.mxu1 %v135_v21  ;;  %v150_v25 = vsel %vm130_vm0, %v110_v16, 0  ;;  %v153_v26 = vsel %vm130_vm0, %v111_v17, 0  ;;  %v144_v27 = vsel %vm130_vm0, %v108_v18, 0  ;;  %v147_v28 = vsel %vm130_vm0, %v109_v19, 0 }
   0x8   :  { %234 = vmatpush.bf16.msra.mxu2 %v138_v22  ;;  %258 = vmatpush.bf16.msra.mxu3 %v141_v23  ;;  %v98_v32 = vunpack.c.l.b16 %v26_v30  ;;  %v99_v33 = vunpack.c.h.b16 %v26_v30  ;;  %v96_v34 = vunpack.c.l.b16 %v25_v31  ;;  %v97_v35 = vunpack.c.h.b16 %v25_v31 }
   0x9   :  { %v102_v47 = vunpack.c.l.b16 %v28_v45  ;;  %v103_v48 = vunpack.c.h.b16 %v28_v45  ;;  %v100_v49 = vunpack.c.l.b16 %v27_v46  ;;  %v101_v50 = vunpack.c.h.b16 %v27_v46 }
   0xa   :  { %675 = vmatmul.msk.bf16.vlgmr.msra.gmra.mxu0 %vm120_vm1, %v765_v24  ;;  %678 = vmatmul.msk.bf16.vlgmr.msra.gmra.mxu1 %vm120_vm1, %v765_v24  ;;  %v114_v36 = vpack.c.b16 %v98_v32, %v98_v32  ;;  %v115_v37 = vpack.c.b16 %v99_v33, %v99_v33  ;;  %v112_v38 = vpack.c.b16 %v96_v34, %v96_v34  ;;  %v871_v60 = vperm.slane %v868_v59, 0 }
   0xb   :  { %681 = vmatmul.msk.bf16.vlgmr.msra.gmra.mxu2 %vm120_vm1, %v765_v24  ;;  %684 = vmatmul.msk.bf16.vlgmr.msra.gmra.mxu3 %vm120_vm1, %v765_v24  ;;  %v113_v39 = vpack.c.b16 %v97_v35, %v97_v35  ;;  %v118_v51 = vpack.c.b16 %v102_v47, %v102_v47  ;;  %v119_v52 = vpack.c.b16 %v103_v48, %v103_v48  ;;  %v874_v61 = vperm.slane %v868_v59, 1 }
   0xc   :  { %330 = vmatpush.bf16.msrb.mxu2 %v150_v25  ;;  %354 = vmatpush.bf16.msrb.mxu3 %v153_v26  ;;  %v162_v40 = vsel %vm130_vm0, %v114_v36, 0  ;;  %v165_v41 = vsel %vm130_vm0, %v115_v37, 0  ;;  %v156_v42 = vsel %vm130_vm0, %v112_v38, 0  ;;  %v116_v53 = vpack.c.b16 %v100_v49, %v100_v49 }
   0xd   :  { %282 = vmatpush.bf16.msrb.mxu0 %v144_v27  ;;  %306 = vmatpush.bf16.msrb.mxu1 %v147_v28  ;;  %v159_v43 = vsel %vm130_vm0, %v113_v39, 0  ;;  %v117_v54 = vpack.c.b16 %v101_v50, %v101_v50  ;;  %v174_v55 = vsel %vm130_vm0, %v118_v51, 0  ;;  %v177_v56 = vsel %vm130_vm0, %v119_v52, 0 }
   0xe   :  { %v168_v57 = vsel %vm130_vm0, %v116_v53, 0  ;;  %v893_v2 = vperm.slane %v868_v59, 2  ;;  %v896_v3 = vperm.slane %v868_v59, 3  ;;  %v998_v46 = vperm.slane %v868_v59, 5 }
   0xf   :  { %v171_v58 = vsel %vm130_vm0, %v117_v54, 0 }
  0x10   :  { %426 = vmatpush.bf16.msra.mxu2 %v162_v40  ;;  %450 = vmatpush.bf16.msra.mxu3 %v165_v41 }
  0x11   :  { %378 = vmatpush.bf16.msra.mxu0 %v156_v42  ;;  %402 = vmatpush.bf16.msra.mxu1 %v159_v43 }
  0x1a   :  { %676 = vmatmul.msk.bf16.gmra.mxu0 %vm120_vm1, %v782_v29  ;;  %679 = vmatmul.msk.bf16.gmra.mxu1 %vm120_vm1, %v782_v29 }
  0x1b   :  { %682 = vmatmul.msk.bf16.gmra.mxu2 %vm120_vm1, %v782_v29  ;;  %685 = vmatmul.msk.bf16.gmra.mxu3 %vm120_vm1, %v782_v29 }
  0x2a   :  { %677 = vmatmul.msk.bf16.gmra.mxu0 %vm120_vm1, %v805_v44  ;;  %680 = vmatmul.msk.bf16.gmra.mxu1 %vm120_vm1, %v805_v44 }
  0x2b   :  { %683 = vmatmul.msk.bf16.gmra.mxu2 %vm120_vm1, %v805_v44  ;;  %686 = vmatmul.msk.bf16.gmra.mxu3 %vm120_vm1, %v805_v44 }
  0x3a   :  { %687 = vmatmul.msk.bf16.vlgmr.msrb.gmra.mxu0 %vm120_vm1, %v765_v24  ;;  %690 = vmatmul.msk.bf16.vlgmr.msrb.gmra.mxu1 %vm120_vm1, %v765_v24 }
  0x3b   :  { %693 = vmatmul.msk.bf16.vlgmr.msrb.gmra.mxu2 %vm120_vm1, %v765_v24  ;;  %696 = vmatmul.msk.bf16.vlgmr.msrb.gmra.mxu3 %vm120_vm1, %v765_v24 }
  0x3c   :  { %522 = vmatpush.bf16.msrb.mxu2 %v174_v55  ;;  %546 = vmatpush.bf16.msrb.mxu3 %v177_v56  ;;  %v1022_v55 = vperm.slane %v868_v59, 6  ;;  %v1025_v56 = vperm.slane %v868_v59, 7 }
  0x3d   :  { %474 = vmatpush.bf16.msrb.mxu0 %v168_v57  ;;  %498 = vmatpush.bf16.msrb.mxu1 %v171_v58 }
  0x4a   :  { %688 = vmatmul.msk.bf16.gmra.mxu0 %vm120_vm1, %v782_v29  ;;  %691 = vmatmul.msk.bf16.gmra.mxu1 %vm120_vm1, %v782_v29 }
  0x4b   :  { %694 = vmatmul.msk.bf16.gmra.mxu2 %vm120_vm1, %v782_v29  ;;  %697 = vmatmul.msk.bf16.gmra.mxu3 %vm120_vm1, %v782_v29 }
  0x5a   :  { %689 = vmatmul.msk.bf16.gmra.mxu0 %vm120_vm1, %v805_v44  ;;  %692 = vmatmul.msk.bf16.gmra.mxu1 %vm120_vm1, %v805_v44 }
  0x5b   :  { %695 = vmatmul.msk.bf16.gmra.mxu2 %vm120_vm1, %v805_v44  ;;  %698 = vmatmul.msk.bf16.gmra.mxu3 %vm120_vm1, %v805_v44 }
  0x6a   :  { %699 = vmatmul.msk.bf16.vlgmr.msra.gmra.mxu0 %vm120_vm1, %v765_v24  ;;  %702 = vmatmul.msk.bf16.vlgmr.msra.gmra.mxu1 %vm120_vm1, %v765_v24 }
  0x6b   :  { %705 = vmatmul.msk.bf16.vlgmr.msra.gmra.mxu2 %vm120_vm1, %v765_v24  ;;  %708 = vmatmul.msk.bf16.vlgmr.msra.gmra.mxu3 %vm120_vm1, %v765_v24 }
  0x7a   :  { %700 = vmatmul.msk.bf16.gmra.mxu0 %vm120_vm1, %v782_v29  ;;  %703 = vmatmul.msk.bf16.gmra.mxu1 %vm120_vm1, %v782_v29 }
  0x7b   :  { %706 = vmatmul.msk.bf16.gmra.mxu2 %vm120_vm1, %v782_v29  ;;  %709 = vmatmul.msk.bf16.gmra.mxu3 %vm120_vm1, %v782_v29 }
  0x87   :  { %v188_v62 = vpop.f32.mrf.mxu0  ;;  %v212_v63 = vpop.f32.mrf.mxu1 }
  0x88   :  { %v189_v0 = vadd.f32 %v188_v62, %v871_v60  ;;  %v213_v1 = vadd.f32 %v212_v63, %v874_v61 }
  0x8a   :  { %563 = vst [vmem:[%s1342_s3] sm:$0xff] %v189_v0  ;;  %701 = vmatmul.msk.bf16.gmra.mxu0 %vm120_vm1, %v805_v44  ;;  %704 = vmatmul.msk.bf16.gmra.mxu1 %vm120_vm1, %v805_v44 }
  0x8b   :  { %564 = vst [vmem:[%s1342_s3 + $0x8] sm:$0xff] %v213_v1  ;;  %707 = vmatmul.msk.bf16.gmra.mxu2 %vm120_vm1, %v805_v44  ;;  %710 = vmatmul.msk.bf16.gmra.mxu3 %vm120_vm1, %v805_v44 }
  0x8e   :  { %v236_v4 = vpop.f32.mrf.mxu2  ;;  %v260_v5 = vpop.f32.mrf.mxu3 }
  0x8f   :  { %v237_v6 = vadd.f32 %v236_v4, %v893_v2  ;;  %v261_v7 = vadd.f32 %v260_v5, %v896_v3  ;;  %v190_v8 = vpop.f32.mrf.mxu0  ;;  %v214_v9 = vpop.f32.mrf.mxu1 }
  0x90   :  { %v191_v10 = vadd.f32 %v190_v8, %v871_v60  ;;  %v215_v11 = vadd.f32 %v214_v9, %v874_v61 }
  0x91   :  { %565 = vst [vmem:[%s1342_s3 + $0x10] sm:$0xff] %v237_v6 }
  0x92   :  { %566 = vst [vmem:[%s1342_s3 + $0x18] sm:$0xff] %v261_v7 }
  0x93   :  { %579 = vst [vmem:[%s1342_s3 + $0x80] sm:$0xff] %v191_v10 }
  0x94   :  { %580 = vst [vmem:[%s1342_s3 + $0x88] sm:$0xff] %v215_v11 }
  0x96   :  { %v238_v12 = vpop.f32.mrf.mxu2  ;;  %v262_v13 = vpop.f32.mrf.mxu3 }
  0x97   :  { %v239_v14 = vadd.f32 %v238_v12, %v893_v2  ;;  %v263_v15 = vadd.f32 %v262_v13, %v896_v3  ;;  %v193_v16 = vpop.f32.mrf.mxu0  ;;  %v217_v17 = vpop.f32.mrf.mxu1 }
  0x98   :  { %v194_v18 = vadd.f32 %v193_v16, %v871_v60  ;;  %v218_v19 = vadd.f32 %v217_v17, %v874_v61 }
  0x99   :  { %581 = vst [vmem:[%s1342_s3 + $0x90] sm:$0xff] %v239_v14 }
  0x9a   :  { %582 = vst [vmem:[%s1342_s3 + $0x98] sm:$0xff] %v263_v15  ;;  %711 = vmatmul.msk.bf16.vlgmr.msrb.gmra.mxu0 %vm120_vm1, %v765_v24  ;;  %714 = vmatmul.msk.bf16.vlgmr.msrb.gmra.mxu1 %vm120_vm1, %v765_v24 }
  0x9b   :  { %595 = vst [vmem:[%s1342_s3 + $0x100] sm:$0xff] %v194_v18  ;;  %717 = vmatmul.msk.bf16.vlgmr.msrb.gmra.mxu2 %vm120_vm1, %v765_v24  ;;  %720 = vmatmul.msk.bf16.vlgmr.msrb.gmra.mxu3 %vm120_vm1, %v765_v24 }
  0x9c   :  { %596 = vst [vmem:[%s1342_s3 + $0x108] sm:$0xff] %v218_v19 }
  0x9e   :  { %v241_v20 = vpop.f32.mrf.mxu2  ;;  %v265_v21 = vpop.f32.mrf.mxu3 }
  0x9f   :  { %v242_v22 = vadd.f32 %v241_v20, %v893_v2  ;;  %v266_v23 = vadd.f32 %v265_v21, %v896_v3  ;;  %v195_v25 = vpop.f32.mrf.mxu0  ;;  %v219_v26 = vpop.f32.mrf.mxu1 }
  0xa0   :  { %v196_v27 = vadd.f32 %v195_v25, %v871_v60  ;;  %v220_v28 = vadd.f32 %v219_v26, %v874_v61 }
  0xa1   :  { %597 = vst [vmem:[%s1342_s3 + $0x110] sm:$0xff] %v242_v22 }
  0xa2   :  { %598 = vst [vmem:[%s1342_s3 + $0x118] sm:$0xff] %v266_v23 }
  0xa3   :  { %611 = vst [vmem:[%s1342_s3 + $0x180] sm:$0xff] %v196_v27 }
  0xa4   :  { %612 = vst [vmem:[%s1342_s3 + $0x188] sm:$0xff] %v220_v28 }
  0xa6   :  { %v243_v24 = vpop.f32.mrf.mxu2  ;;  %v267_v30 = vpop.f32.mrf.mxu3 }
  0xa7   :  { %v244_v31 = vadd.f32 %v243_v24, %v893_v2  ;;  %v268_v32 = vadd.f32 %v267_v30, %v896_v3  ;;  %v198_v33 = vpop.f32.mrf.mxu0  ;;  %v222_v34 = vpop.f32.mrf.mxu1 }
  0xa8   :  { %v199_v35 = vadd.f32 %v198_v33, %v871_v60  ;;  %v223_v36 = vadd.f32 %v222_v34, %v874_v61  ;;  %v1104_v33 = vld [vmem:[%s1341_s2 + $0x8] sm:$0xff] }
  0xa9   :  { %613 = vst [vmem:[%s1342_s3 + $0x190] sm:$0xff] %v244_v31  ;;  %v1116_v34 = vperm.slane %v1104_v33, 0 }
  0xaa   :  { %614 = vst [vmem:[%s1342_s3 + $0x198] sm:$0xff] %v268_v32  ;;  %712 = vmatmul.msk.bf16.gmra.mxu0 %vm120_vm1, %v782_v29  ;;  %715 = vmatmul.msk.bf16.gmra.mxu1 %vm120_vm1, %v782_v29 }
  0xab   :  { %627 = vst [vmem:[%s1342_s3 + $0x200] sm:$0xff] %v199_v35  ;;  %718 = vmatmul.msk.bf16.gmra.mxu2 %vm120_vm1, %v782_v29  ;;  %721 = vmatmul.msk.bf16.gmra.mxu3 %vm120_vm1, %v782_v29  ;;  %v995_v29 = vperm.slane %v868_v59, 4  ;;  %v1119_v35 = vperm.slane %v1104_v33, 1 }
  0xac   :  { %628 = vst [vmem:[%s1342_s3 + $0x208] sm:$0xff] %v223_v36 }
  0xae   :  { %v246_v37 = vpop.f32.mrf.mxu2  ;;  %v270_v38 = vpop.f32.mrf.mxu3 }
  0xaf   :  { %v247_v39 = vadd.f32 %v246_v37, %v893_v2  ;;  %v271_v40 = vadd.f32 %v270_v38, %v896_v3  ;;  %v200_v41 = vpop.f32.mrf.mxu0  ;;  %v224_v42 = vpop.f32.mrf.mxu1 }
  0xb0   :  { %v201_v43 = vadd.f32 %v200_v41, %v871_v60  ;;  %v225_v45 = vadd.f32 %v224_v42, %v874_v61 }
  0xb1   :  { %629 = vst [vmem:[%s1342_s3 + $0x210] sm:$0xff] %v247_v39 }
  0xb2   :  { %630 = vst [vmem:[%s1342_s3 + $0x218] sm:$0xff] %v271_v40 }
  0xb3   :  { %643 = vst [vmem:[%s1342_s3 + $0x280] sm:$0xff] %v201_v43 }
  0xb4   :  { %644 = vst [vmem:[%s1342_s3 + $0x288] sm:$0xff] %v225_v45  ;;  %v1135_v45 = vperm.slane %v1104_v33, 2 }
  0xb6   :  { %v248_v47 = vpop.f32.mrf.mxu2  ;;  %v272_v48 = vpop.f32.mrf.mxu3 }
  0xb7   :  { %v249_v49 = vadd.f32 %v248_v47, %v893_v2  ;;  %v273_v50 = vadd.f32 %v272_v48, %v896_v3  ;;  %v284_v51 = vpop.f32.mrf.mxu0  ;;  %v308_v52 = vpop.f32.mrf.mxu1 }
  0xb8   :  { %v285_v53 = vadd.f32 %v284_v51, %v995_v29  ;;  %v309_v54 = vadd.f32 %v308_v52, %v998_v46 }
  0xb9   :  { %645 = vst [vmem:[%s1342_s3 + $0x290] sm:$0xff] %v249_v49 }
  0xba   :  { %646 = vst [vmem:[%s1342_s3 + $0x298] sm:$0xff] %v273_v50  ;;  %713 = vmatmul.msk.bf16.gmra.mxu0 %vm120_vm1, %v805_v44  ;;  %716 = vmatmul.msk.bf16.gmra.mxu1 %vm120_vm1, %v805_v44 }
  0xbb   :  { %567 = vst [vmem:[%s1342_s3 + $0x20] sm:$0xff] %v285_v53  ;;  %719 = vmatmul.msk.bf16.gmra.mxu2 %vm120_vm1, %v805_v44  ;;  %722 = vmatmul.msk.bf16.gmra.mxu3 %vm120_vm1, %v805_v44 }
  0xbc   :  { %568 = vst [vmem:[%s1342_s3 + $0x28] sm:$0xff] %v309_v54 }
  0xbe   :  { %v332_v57 = vpop.f32.mrf.mxu2  ;;  %v356_v58 = vpop.f32.mrf.mxu3 }
  0xbf   :  { %v333_v60 = vadd.f32 %v332_v57, %v1022_v55  ;;  %v357_v61 = vadd.f32 %v356_v58, %v1025_v56  ;;  %v286_v62 = vpop.f32.mrf.mxu0  ;;  %v310_v63 = vpop.f32.mrf.mxu1 }
  0xc0   :  { %v287_v44 = vadd.f32 %v286_v62, %v995_v29  ;;  %v311_v0 = vadd.f32 %v310_v63, %v998_v46 }
  0xc1   :  { %569 = vst [vmem:[%s1342_s3 + $0x30] sm:$0xff] %v333_v60 }
  0xc2   :  { %570 = vst [vmem:[%s1342_s3 + $0x38] sm:$0xff] %v357_v61 }
  0xc3   :  { %583 = vst [vmem:[%s1342_s3 + $0xa0] sm:$0xff] %v287_v44 }
  0xc4   :  { %584 = vst [vmem:[%s1342_s3 + $0xa8] sm:$0xff] %v311_v0 }
  0xc6   :  { %v334_v59 = vpop.f32.mrf.mxu2  ;;  %v358_v1 = vpop.f32.mrf.mxu3 }
  0xc7   :  { %v335_v2 = vadd.f32 %v334_v59, %v1022_v55  ;;  %v359_v3 = vadd.f32 %v358_v1, %v1025_v56  ;;  %v289_v4 = vpop.f32.mrf.mxu0  ;;  %v313_v5 = vpop.f32.mrf.mxu1 }
  0xc8   :  { %v290_v6 = vadd.f32 %v289_v4, %v995_v29  ;;  %v314_v7 = vadd.f32 %v313_v5, %v998_v46 }
  0xc9   :  { %585 = vst [vmem:[%s1342_s3 + $0xb0] sm:$0xff] %v335_v2 }
  0xca   :  { %586 = vst [vmem:[%s1342_s3 + $0xb8] sm:$0xff] %v359_v3 }
  0xcb   :  { %599 = vst [vmem:[%s1342_s3 + $0x120] sm:$0xff] %v290_v6 }
  0xcc   :  { %600 = vst [vmem:[%s1342_s3 + $0x128] sm:$0xff] %v314_v7 }
  0xce   :  { %v337_v8 = vpop.f32.mrf.mxu2  ;;  %v361_v9 = vpop.f32.mrf.mxu3 }
  0xcf   :  { %v338_v10 = vadd.f32 %v337_v8, %v1022_v55  ;;  %v362_v11 = vadd.f32 %v361_v9, %v1025_v56  ;;  %v291_v12 = vpop.f32.mrf.mxu0  ;;  %v315_v13 = vpop.f32.mrf.mxu1 }
  0xd0   :  { %v292_v14 = vadd.f32 %v291_v12, %v995_v29  ;;  %v316_v15 = vadd.f32 %v315_v13, %v998_v46 }
  0xd1   :  { %601 = vst [vmem:[%s1342_s3 + $0x130] sm:$0xff] %v338_v10 }
  0xd2   :  { %602 = vst [vmem:[%s1342_s3 + $0x138] sm:$0xff] %v362_v11 }
  0xd3   :  { %615 = vst [vmem:[%s1342_s3 + $0x1a0] sm:$0xff] %v292_v14 }
  0xd4   :  { %616 = vst [vmem:[%s1342_s3 + $0x1a8] sm:$0xff] %v316_v15 }
  0xd6   :  { %v339_v16 = vpop.f32.mrf.mxu2  ;;  %v363_v17 = vpop.f32.mrf.mxu3 }
  0xd7   :  { %v340_v18 = vadd.f32 %v339_v16, %v1022_v55  ;;  %v364_v19 = vadd.f32 %v363_v17, %v1025_v56  ;;  %v294_v20 = vpop.f32.mrf.mxu0  ;;  %v318_v21 = vpop.f32.mrf.mxu1 }
  0xd8   :  { %v295_v22 = vadd.f32 %v294_v20, %v995_v29  ;;  %v319_v23 = vadd.f32 %v318_v21, %v998_v46  ;;  %v1224_v21 = vperm.slane %v1104_v33, 4 }
  0xd9   :  { %617 = vst [vmem:[%s1342_s3 + $0x1b0] sm:$0xff] %v340_v18 }
  0xda   :  { %618 = vst [vmem:[%s1342_s3 + $0x1b8] sm:$0xff] %v364_v19 }
  0xdb   :  { %631 = vst [vmem:[%s1342_s3 + $0x220] sm:$0xff] %v295_v22  ;;  %v1227_v22 = vperm.slane %v1104_v33, 5 }
  0xdc   :  { %632 = vst [vmem:[%s1342_s3 + $0x228] sm:$0xff] %v319_v23 }
  0xde   :  { %v342_v25 = vpop.f32.mrf.mxu2  ;;  %v366_v26 = vpop.f32.mrf.mxu3 }
  0xdf   :  { %v343_v27 = vadd.f32 %v342_v25, %v1022_v55  ;;  %v367_v28 = vadd.f32 %v366_v26, %v1025_v56  ;;  %v296_v24 = vpop.f32.mrf.mxu0  ;;  %v320_v30 = vpop.f32.mrf.mxu1 }
  0xe0   :  { %v297_v31 = vadd.f32 %v296_v24, %v995_v29  ;;  %v321_v32 = vadd.f32 %v320_v30, %v998_v46  ;;  %v1138_v29 = vperm.slane %v1104_v33, 3 }
  0xe1   :  { %633 = vst [vmem:[%s1342_s3 + $0x230] sm:$0xff] %v343_v27 }
  0xe2   :  { %634 = vst [vmem:[%s1342_s3 + $0x238] sm:$0xff] %v367_v28 }
  0xe3   :  { %647 = vst [vmem:[%s1342_s3 + $0x2a0] sm:$0xff] %v297_v31 }
  0xe4   :  { %648 = vst [vmem:[%s1342_s3 + $0x2a8] sm:$0xff] %v321_v32  ;;  %v1243_v32 = vperm.slane %v1104_v33, 6 }
  0xe6   :  { %v344_v36 = vpop.f32.mrf.mxu2  ;;  %v368_v37 = vpop.f32.mrf.mxu3 }
  0xe7   :  { %v345_v38 = vadd.f32 %v344_v36, %v1022_v55  ;;  %v369_v39 = vadd.f32 %v368_v37, %v1025_v56  ;;  %v380_v40 = vpop.f32.mrf.mxu0  ;;  %v404_v41 = vpop.f32.mrf.mxu1 }
  0xe8   :  { %v381_v42 = vadd.f32 %v380_v40, %v1116_v34  ;;  %v405_v43 = vadd.f32 %v404_v41, %v1119_v35 }
  0xe9   :  { %649 = vst [vmem:[%s1342_s3 + $0x2b0] sm:$0xff] %v345_v38 }
  0xea   :  { %650 = vst [vmem:[%s1342_s3 + $0x2b8] sm:$0xff] %v369_v39 }
  0xeb   :  { %571 = vst [vmem:[%s1342_s3 + $0x40] sm:$0xff] %v381_v42 }
  0xec   :  { %572 = vst [vmem:[%s1342_s3 + $0x48] sm:$0xff] %v405_v43 }
  0xee   :  { %v428_v46 = vpop.f32.mrf.mxu2  ;;  %v452_v47 = vpop.f32.mrf.mxu3 }
  0xef   :  { %v429_v48 = vadd.f32 %v428_v46, %v1135_v45  ;;  %v453_v49 = vadd.f32 %v452_v47, %v1138_v29  ;;  %v382_v50 = vpop.f32.mrf.mxu0  ;;  %v406_v51 = vpop.f32.mrf.mxu1 }
  0xf0   :  { %v383_v52 = vadd.f32 %v382_v50, %v1116_v34  ;;  %v407_v53 = vadd.f32 %v406_v51, %v1119_v35 }
  0xf1   :  { %573 = vst [vmem:[%s1342_s3 + $0x50] sm:$0xff] %v429_v48 }
  0xf2   :  { %574 = vst [vmem:[%s1342_s3 + $0x58] sm:$0xff] %v453_v49 }
  0xf3   :  { %587 = vst [vmem:[%s1342_s3 + $0xc0] sm:$0xff] %v383_v52 }
  0xf4   :  { %588 = vst [vmem:[%s1342_s3 + $0xc8] sm:$0xff] %v407_v53 }
  0xf6   :  { %v430_v54 = vpop.f32.mrf.mxu2  ;;  %v454_v55 = vpop.f32.mrf.mxu3 }
  0xf7   :  { %v431_v56 = vadd.f32 %v430_v54, %v1135_v45  ;;  %v455_v57 = vadd.f32 %v454_v55, %v1138_v29  ;;  %v385_v58 = vpop.f32.mrf.mxu0  ;;  %v409_v60 = vpop.f32.mrf.mxu1 }
  0xf8   :  { %v386_v61 = vadd.f32 %v385_v58, %v1116_v34  ;;  %v410_v62 = vadd.f32 %v409_v60, %v1119_v35 }
  0xf9   :  { %589 = vst [vmem:[%s1342_s3 + $0xd0] sm:$0xff] %v431_v56 }
  0xfa   :  { %590 = vst [vmem:[%s1342_s3 + $0xd8] sm:$0xff] %v455_v57 }
  0xfb   :  { %603 = vst [vmem:[%s1342_s3 + $0x140] sm:$0xff] %v386_v61 }
  0xfc   :  { %604 = vst [vmem:[%s1342_s3 + $0x148] sm:$0xff] %v410_v62 }
  0xfe   :  { %v433_v63 = vpop.f32.mrf.mxu2  ;;  %v457_v44 = vpop.f32.mrf.mxu3 }
  0xff   :  { %v434_v0 = vadd.f32 %v433_v63, %v1135_v45  ;;  %v458_v59 = vadd.f32 %v457_v44, %v1138_v29  ;;  %v387_v1 = vpop.f32.mrf.mxu0  ;;  %v411_v2 = vpop.f32.mrf.mxu1 }
 0x100   :  { %v388_v3 = vadd.f32 %v387_v1, %v1116_v34  ;;  %v412_v4 = vadd.f32 %v411_v2, %v1119_v35 }
 0x101   :  { %605 = vst [vmem:[%s1342_s3 + $0x150] sm:$0xff] %v434_v0 }
 0x102   :  { %606 = vst [vmem:[%s1342_s3 + $0x158] sm:$0xff] %v458_v59 }
 0x103   :  { %619 = vst [vmem:[%s1342_s3 + $0x1c0] sm:$0xff] %v388_v3 }
 0x104   :  { %620 = vst [vmem:[%s1342_s3 + $0x1c8] sm:$0xff] %v412_v4 }
 0x106   :  { %v435_v5 = vpop.f32.mrf.mxu2  ;;  %v459_v6 = vpop.f32.mrf.mxu3 }
 0x107   :  { %v436_v7 = vadd.f32 %v435_v5, %v1135_v45  ;;  %v460_v8 = vadd.f32 %v459_v6, %v1138_v29  ;;  %v390_v9 = vpop.f32.mrf.mxu0  ;;  %v414_v10 = vpop.f32.mrf.mxu1 }
 0x108   :  { %v391_v11 = vadd.f32 %v390_v9, %v1116_v34  ;;  %v415_v12 = vadd.f32 %v414_v10, %v1119_v35 }
 0x109   :  { %621 = vst [vmem:[%s1342_s3 + $0x1d0] sm:$0xff] %v436_v7 }
 0x10a   :  { %622 = vst [vmem:[%s1342_s3 + $0x1d8] sm:$0xff] %v460_v8 }
 0x10b   :  { %635 = vst [vmem:[%s1342_s3 + $0x240] sm:$0xff] %v391_v11 }
 0x10c   :  { %636 = vst [vmem:[%s1342_s3 + $0x248] sm:$0xff] %v415_v12 }
 0x10e   :  { %v438_v13 = vpop.f32.mrf.mxu2  ;;  %v462_v14 = vpop.f32.mrf.mxu3 }
 0x10f   :  { %v439_v15 = vadd.f32 %v438_v13, %v1135_v45  ;;  %v463_v16 = vadd.f32 %v462_v14, %v1138_v29  ;;  %v392_v17 = vpop.f32.mrf.mxu0  ;;  %v416_v18 = vpop.f32.mrf.mxu1 }
 0x110   :  { %v393_v19 = vadd.f32 %v392_v17, %v1116_v34  ;;  %v417_v20 = vadd.f32 %v416_v18, %v1119_v35  ;;  %v1246_v34 = vperm.slane %v1104_v33, 7 }
 0x111   :  { %637 = vst [vmem:[%s1342_s3 + $0x250] sm:$0xff] %v439_v15 }
 0x112   :  { %638 = vst [vmem:[%s1342_s3 + $0x258] sm:$0xff] %v463_v16 }
 0x113   :  { %651 = vst [vmem:[%s1342_s3 + $0x2c0] sm:$0xff] %v393_v19 }
 0x114   :  { %652 = vst [vmem:[%s1342_s3 + $0x2c8] sm:$0xff] %v417_v20 }
 0x116   :  { %v440_v23 = vpop.f32.mrf.mxu2  ;;  %v464_v25 = vpop.f32.mrf.mxu3 }
 0x117   :  { %v441_v26 = vadd.f32 %v440_v23, %v1135_v45  ;;  %v465_v27 = vadd.f32 %v464_v25, %v1138_v29  ;;  %v476_v28 = vpop.f32.mrf.mxu0  ;;  %v500_v24 = vpop.f32.mrf.mxu1 }
 0x118   :  { %v477_v30 = vadd.f32 %v476_v28, %v1224_v21  ;;  %v501_v31 = vadd.f32 %v500_v24, %v1227_v22 }
 0x119   :  { %653 = vst [vmem:[%s1342_s3 + $0x2d0] sm:$0xff] %v441_v26 }
 0x11a   :  { %654 = vst [vmem:[%s1342_s3 + $0x2d8] sm:$0xff] %v465_v27 }
 0x11b   :  { %575 = vst [vmem:[%s1342_s3 + $0x60] sm:$0xff] %v477_v30 }
 0x11c   :  { %576 = vst [vmem:[%s1342_s3 + $0x68] sm:$0xff] %v501_v31 }
 0x11e   :  { %v524_v35 = vpop.f32.mrf.mxu2  ;;  %v548_v36 = vpop.f32.mrf.mxu3 }
 0x11f   :  { %v525_v37 = vadd.f32 %v524_v35, %v1243_v32  ;;  %v549_v38 = vadd.f32 %v548_v36, %v1246_v34  ;;  %v478_v39 = vpop.f32.mrf.mxu0  ;;  %v502_v40 = vpop.f32.mrf.mxu1 }
 0x120   :  { %v479_v41 = vadd.f32 %v478_v39, %v1224_v21  ;;  %v503_v42 = vadd.f32 %v502_v40, %v1227_v22 }
 0x121   :  { %577 = vst [vmem:[%s1342_s3 + $0x70] sm:$0xff] %v525_v37 }
 0x122   :  { %578 = vst [vmem:[%s1342_s3 + $0x78] sm:$0xff] %v549_v38 }
 0x123   :  { %591 = vst [vmem:[%s1342_s3 + $0xe0] sm:$0xff] %v479_v41 }
 0x124   :  { %592 = vst [vmem:[%s1342_s3 + $0xe8] sm:$0xff] %v503_v42 }
 0x126   :  { %v526_v33 = vpop.f32.mrf.mxu2  ;;  %v550_v43 = vpop.f32.mrf.mxu3 }
 0x127   :  { %v527_v45 = vadd.f32 %v526_v33, %v1243_v32  ;;  %v551_v29 = vadd.f32 %v550_v43, %v1246_v34  ;;  %v481_v46 = vpop.f32.mrf.mxu0  ;;  %v505_v47 = vpop.f32.mrf.mxu1 }
 0x128   :  { %v482_v48 = vadd.f32 %v481_v46, %v1224_v21  ;;  %v506_v49 = vadd.f32 %v505_v47, %v1227_v22 }
 0x129   :  { %593 = vst [vmem:[%s1342_s3 + $0xf0] sm:$0xff] %v527_v45 }
 0x12a   :  { %594 = vst [vmem:[%s1342_s3 + $0xf8] sm:$0xff] %v551_v29 }
 0x12b   :  { %607 = vst [vmem:[%s1342_s3 + $0x160] sm:$0xff] %v482_v48 }
 0x12c   :  { %608 = vst [vmem:[%s1342_s3 + $0x168] sm:$0xff] %v506_v49 }
 0x12e   :  { %v529_v50 = vpop.f32.mrf.mxu2  ;;  %v553_v51 = vpop.f32.mrf.mxu3 }
 0x12f   :  { %v530_v52 = vadd.f32 %v529_v50, %v1243_v32  ;;  %v554_v53 = vadd.f32 %v553_v51, %v1246_v34  ;;  %v483_v54 = vpop.f32.mrf.mxu0  ;;  %v507_v55 = vpop.f32.mrf.mxu1 }
 0x130   :  { %v484_v56 = vadd.f32 %v483_v54, %v1224_v21  ;;  %v508_v57 = vadd.f32 %v507_v55, %v1227_v22 }
 0x131   :  { %609 = vst [vmem:[%s1342_s3 + $0x170] sm:$0xff] %v530_v52 }
 0x132   :  { %610 = vst [vmem:[%s1342_s3 + $0x178] sm:$0xff] %v554_v53 }
 0x133   :  { %623 = vst [vmem:[%s1342_s3 + $0x1e0] sm:$0xff] %v484_v56 }
 0x134   :  { %624 = vst [vmem:[%s1342_s3 + $0x1e8] sm:$0xff] %v508_v57 }
 0x136   :  { %v531_v58 = vpop.f32.mrf.mxu2  ;;  %v555_v60 = vpop.f32.mrf.mxu3 }
 0x137   :  { %v532_v61 = vadd.f32 %v531_v58, %v1243_v32  ;;  %v556_v62 = vadd.f32 %v555_v60, %v1246_v34  ;;  %v486_v63 = vpop.f32.mrf.mxu0  ;;  %v510_v44 = vpop.f32.mrf.mxu1 }
 0x138   :  { %v487_v0 = vadd.f32 %v486_v63, %v1224_v21  ;;  %v511_v59 = vadd.f32 %v510_v44, %v1227_v22 }
 0x139   :  { %625 = vst [vmem:[%s1342_s3 + $0x1f0] sm:$0xff] %v532_v61 }
 0x13a   :  { %626 = vst [vmem:[%s1342_s3 + $0x1f8] sm:$0xff] %v556_v62 }
 0x13b   :  { %639 = vst [vmem:[%s1342_s3 + $0x260] sm:$0xff] %v487_v0 }
 0x13c   :  { %640 = vst [vmem:[%s1342_s3 + $0x268] sm:$0xff] %v511_v59 }
 0x13e   :  { %v534_v1 = vpop.f32.mrf.mxu2  ;;  %v558_v2 = vpop.f32.mrf.mxu3 }
 0x13f   :  { %v535_v3 = vadd.f32 %v534_v1, %v1243_v32  ;;  %v559_v4 = vadd.f32 %v558_v2, %v1246_v34  ;;  %v488_v5 = vpop.f32.mrf.mxu0  ;;  %v512_v6 = vpop.f32.mrf.mxu1 }
 0x140   :  { %v489_v7 = vadd.f32 %v488_v5, %v1224_v21  ;;  %v513_v8 = vadd.f32 %v512_v6, %v1227_v22 }
 0x141   :  { %641 = vst [vmem:[%s1342_s3 + $0x270] sm:$0xff] %v535_v3 }
 0x142   :  { %642 = vst [vmem:[%s1342_s3 + $0x278] sm:$0xff] %v559_v4 }
 0x143   :  { %655 = vst [vmem:[%s1342_s3 + $0x2e0] sm:$0xff] %v489_v7 }
 0x144   :  { %656 = vst [vmem:[%s1342_s3 + $0x2e8] sm:$0xff] %v513_v8 }
 0x146   :  { %v536_v9 = vpop.f32.mrf.mxu2  ;;  %v560_v10 = vpop.f32.mrf.mxu3 }
 0x147   :  { %v537_v11 = vadd.f32 %v536_v9, %v1243_v32  ;;  %v561_v12 = vadd.f32 %v560_v10, %v1246_v34 }
 0x149   :  { %657 = vst [vmem:[%s1342_s3 + $0x2f0] sm:$0xff] %v537_v11 }
 0x14a   :  { %658 = vst [vmem:[%s1342_s3 + $0x2f8] sm:$0xff] %v561_v12 }

</bundles_post_ra>
